<compile_context>
chip_gen: v5e
topology: v5e:2x2
jax: 0.10.0
libtpu: 0.0.40
codegen_flags: <defaults>
</compile_context>

<pallas_src>
import jax
import jax.numpy as jnp
from jax.experimental import pallas as pl
from jax.experimental.pallas import tpu as pltpu

_LANES = 128
_SUBLANES = 8


def _rup(d, m=_LANES):
    """Round d up to a multiple of m."""
    return pl.cdiv(d, m) * m


def _relu(x):
    return jnp.maximum(x, 0.0)


def _linear(h, w_ref, b_ref):
    # bf16 operands on the MXU, f32 accumulation; bias add stays f32 on the VPU.
    return (
        jnp.dot(h.astype(w_ref.dtype), w_ref[...],
                preferred_element_type=jnp.float32)
        + b_ref[...]
    )


def ae_kernel(
    x_ref,
    # encoder params (BN0 folded into ew0/eb0)
    ew0, eb0, ew1, eb1, ew2, eb2, ew3, eb3,
    # fused latent pair: Linear(n/8, 32) @ Linear(32, n/8)
    wl, bl,
    # decoder params (BN1 folded into dw4/db4)
    dw1, db1, dw2, db2, dw3, db3, dw4, db4,
    # output
    o_ref,
):
    h = x_ref[...]                      # bf16 tile straight off the DMA

    # ---- encoder ---- (Dropouts are identity in eval mode)
    h = _relu(_linear(h, ew0, eb0))     # Linear(n, n/2) (+Dropout+BN folded) + ReLU
    h = _relu(_linear(h, ew1, eb1))     # Linear(n/2, n/2) + ReLU
    h = _relu(_linear(h, ew2, eb2))     # Linear(n/2, n/4) (+Dropout) + ReLU
    h = _relu(_linear(h, ew3, eb3))     # Linear(n/4, n/8) + ReLU

    # ---- latent (fused) + decoder ----
    h = _relu(_linear(h, wl, bl))       # Linear(n/8,32) o Linear(32,n/8) fused + ReLU
    h = _relu(_linear(h, dw1, db1))     # Linear(n/8, n/4) (+Dropout) + ReLU
    h = _relu(_linear(h, dw2, db2))     # Linear(n/4, n/2) + ReLU
    h = _relu(_linear(h, dw3, db3))     # Linear(n/2, n/2) + ReLU
    h = _linear(h, dw4, db4)            # (BN folded) (+Dropout) + Linear(n/2, n)

    o_ref[...] = h.astype(o_ref.dtype)


def prepare_params(params):
    """Fold BNs, fuse the latent pair, zero-pad to 128 lanes, cast weights to bf16.

    All folding/fusion is done in f32 before the bf16 cast, so the padded
    network computes the same values (up to bf16 weight rounding) on the
    original lanes; padding rows/cols/biases are exactly zero.
    """
    (ew0, eb0, bn0_s, bn0_b,
     ew1, eb1, ew2, eb2, ew3, eb3, ew4, eb4,
     dw0, db0, dw1, db1, dw2, db2, dw3, db3, bn1_s, bn1_b, dw4, db4) = [
        jnp.asarray(p, jnp.float32) for p in params]

    # Fold eval-mode BatchNorm after the first encoder Linear:
    #   (x @ W0 + b0) * s + t  ==  x @ (W0 * s) + (b0 * s + t)
    eb0 = eb0 * bn0_s + bn0_b
    ew0 = ew0 * bn0_s

    # Fold eval-mode BatchNorm before the last decoder Linear:
    #   (h * s + t) @ W4 + b4  ==  h @ (diag(s) @ W4) + (t @ W4 + b4)
    db4 = db4 + bn1_b @ dw4            # bias term uses the unscaled W4
    dw4 = dw4 * bn1_s.reshape(-1, 1)   # scale rows

    # Fuse the latent pair (no nonlinearity between them):
    #   relu((h @ We4 + be4) @ Wd0 + bd0)  ==  relu(h @ (We4 @ Wd0) + (be4 @ Wd0 + bd0))
    wl = ew4 @ dw0
    bl = eb4 @ dw0 + db0

    def pw(w):  # weight (in, out) -> lane-padded bf16
        i, o = w.shape
        w = jnp.pad(w, ((0, _rup(i) - i), (0, _rup(o) - o)))
        return w.astype(jnp.bfloat16)

    def pv(v):  # bias vector (1, out) -> lane-padded f32
        o = v.shape[-1]
        return jnp.pad(v, ((0, 0), (0, _rup(o) - o))).astype(jnp.float32)

    return [
        pw(ew0), pv(eb0), pw(ew1), pv(eb1), pw(ew2), pv(eb2), pw(ew3), pv(eb3),
        pw(wl), pv(bl),
        pw(dw1), pv(db1), pw(dw2), pv(db2), pw(dw3), pv(db3), pw(dw4), pv(db4),
    ]


def _device_kind():
    try:
        return jax.devices()[0].device_kind.lower()
    except Exception:
        return ""


def _is_dual_tensorcore(kind):
    # v7x exposes 2 TensorCores per chip sharing the grid via "parallel";
    # v4 / v5p megacore behaves similarly.
    return any(tag in kind for tag in ("v7", "v5p", "v4"))


def _vmem_cap_bytes(kind):
    # Per-TensorCore physical VMEM: 64 MiB on v7x, 128 MiB on v5e/v6e.
    return (64 << 20) if "v7" in kind else (128 << 20)


def ae_forward(x, params, *, bm=None):
    """x: (B, n_feat) float32. params: flat list of (unpadded, f32) parameters."""
    B, n_feat = x.shape
    n_feat_p = _rup(n_feat)
    kind = _device_kind()

    # ---- batch tile (generation-aware) ----
    if bm is None:
        b8 = _rup(B, _SUBLANES)
        if _is_dual_tensorcore(kind):
            # Two TCs share the grid: aim for >=2 steps, even step count, M >= 256.
            bm = 512
            while bm > _SUBLANES and pl.cdiv(b8, bm) < 2:
                bm //= 2
            while pl.cdiv(b8, bm) % 2 == 1 and bm > 256:
                bm //= 2
        else:
            # Single TC: the grid is a serial loop; one big tile wins.
            bm = min(512, b8)
    bm = max(_SUBLANES, int(bm))
    Bp = pl.cdiv(B, bm) * bm

    # Stream x as bf16 (the first matmul rounds to bf16 anyway): halves x DMA.
    x_p = x.astype(jnp.bfloat16)
    if (Bp, n_feat_p) != (B, n_feat):
        x_p = jnp.pad(x_p, ((0, Bp - B), (0, n_feat_p - n_feat)))

    pparams = prepare_params(params)

    # ---- VMEM budget ----
    param_bytes = sum(int(p.size) * int(p.dtype.itemsize) for p in pparams)  # single-buffered
    stream_bytes = 2 * (bm * n_feat_p * 2) + 2 * (bm * n_feat_p * 4)         # x (bf16) + out (f32), double-buffered
    scratch_bytes = 6 * bm * n_feat_p * 4                                    # f32 intermediates headroom
    vmem_bytes = int(1.25 * (param_bytes + stream_bytes + scratch_bytes)) + (4 << 20)
    vmem_bytes = max(32 << 20, min(vmem_bytes, _vmem_cap_bytes(kind)))
    # TODO(synk): if param_bytes alone exceeds the cap (huge n_feat), tile ew0/dw4
    #             with a nested pltpu.emit_pipeline instead of keeping them resident.

    # Advisory cost estimate for XLA's scheduler.
    flops = 2 * Bp * sum(
        int(p.shape[0]) * int(p.shape[1])
        for p in pparams if p.ndim == 2 and p.dtype == jnp.bfloat16
    )
    bytes_accessed = x_p.size * 2 + Bp * n_feat_p * 4 + param_bytes

    def const_spec(shape):
        # Constant-index blocks are resident across grid steps: single-buffer them.
        return pl.BlockSpec(shape, lambda i, nd=len(shape): (0,) * nd,
                            pipeline_mode=pl.Buffered(1))

    in_specs = [pl.BlockSpec((bm, n_feat_p), lambda i: (i, 0))]
    in_specs += [const_spec(p.shape) for p in pparams]

    out = pl.pallas_call(
        ae_kernel,
        out_shape=jax.ShapeDtypeStruct((Bp, n_feat_p), jnp.float32),
        grid_spec=pltpu.PrefetchScalarGridSpec(
            num_scalar_prefetch=0,
            grid=(Bp // bm,),
            in_specs=in_specs,
            out_specs=pl.BlockSpec((bm, n_feat_p), lambda i: (i, 0)),
        ),
        compiler_params=pltpu.CompilerParams(
            dimension_semantics=("parallel",),
            vmem_limit_bytes=vmem_bytes,
        ),
        cost_estimate=pl.CostEstimate(
            flops=flops, transcendentals=0, bytes_accessed=bytes_accessed),
    )(x_p, *pparams)

    return out[:B, :n_feat]


def init_params(n_feat, key):
    """Deterministic parameter init mimicking PyTorch defaults (U(-1/sqrt(fan_in), ...))."""
    h2, h4, h8 = n_feat // 2, n_feat // 4, n_feat // 8

    def linear(key, fan_in, fan_out):
        kw, kb = jax.random.split(key)
        bound = 1.0 / jnp.sqrt(fan_in)
        w = jax.random.uniform(kw, (fan_in, fan_out), jnp.float32, -bound, bound)
        b = jax.random.uniform(kb, (1, fan_out), jnp.float32, -bound, bound)
        return w, b

    def batchnorm_folded(dim):
        # fresh BN (eval): gamma=1, beta=0, running_mean=0, running_var=1, eps=1e-5
        eps = 1e-5
        gamma = jnp.ones((1, dim), jnp.float32)
        beta = jnp.zeros((1, dim), jnp.float32)
        rm = jnp.zeros((1, dim), jnp.float32)
        rv = jnp.ones((1, dim), jnp.float32)
        scale = gamma / jnp.sqrt(rv + eps)
        shift = beta - rm * scale
        return scale, shift

    keys = jax.random.split(key, 10)
    ew0, eb0 = linear(keys[0], n_feat, h2)
    ew1, eb1 = linear(keys[1], h2, h2)
    ew2, eb2 = linear(keys[2], h2, h4)
    ew3, eb3 = linear(keys[3], h4, h8)
    ew4, eb4 = linear(keys[4], h8, 32)
    bn0_s, bn0_b = batchnorm_folded(h2)
    dw0, db0 = linear(keys[5], 32, h8)
    dw1, db1 = linear(keys[6], h8, h4)
    dw2, db2 = linear(keys[7], h4, h2)
    dw3, db3 = linear(keys[8], h2, h2)
    dw4, db4 = linear(keys[9], h2, n_feat)
    bn1_s, bn1_b = batchnorm_folded(h2)

    return [
        ew0, eb0, bn0_s, bn0_b,
        ew1, eb1, ew2, eb2, ew3, eb3, ew4, eb4,
        dw0, db0, dw1, db1, dw2, db2, dw3, db3, bn1_s, bn1_b, dw4, db4,
    ]


def ae_reference(x, params):
    """Pure-JAX layer-by-layer reference of the eval-mode forward (bf16 matmuls, f32 acc)."""
    (ew0, eb0, bn0_s, bn0_b,
     ew1, eb1, ew2, eb2, ew3, eb3, ew4, eb4,
     dw0, db0, dw1, db1, dw2, db2, dw3, db3, bn1_s, bn1_b, dw4, db4) = params

    def lin(h, w, b):
        return jnp.dot(h.astype(jnp.bfloat16), w.astype(jnp.bfloat16),
                       preferred_element_type=jnp.float32) + b

    r = jax.nn.relu
    h = x.astype(jnp.float32)
    h = lin(h, ew0, eb0)
    h = r(h * bn0_s + bn0_b)
    h = r(lin(h, ew1, eb1))
    h = r(lin(h, ew2, eb2))
    h = r(lin(h, ew3, eb3))
    h = lin(h, ew4, eb4)
    h = r(lin(h, dw0, db0))
    h = r(lin(h, dw1, db1))
    h = r(lin(h, dw2, db2))
    h = r(lin(h, dw3, db3))
    h = h * bn1_s + bn1_b
    h = lin(h, dw4, db4)
    return h


if __name__ == "__main__":
    n_feat = 256          # -> hidden sizes 128, 64, 32, latent 32
    batch = 256

    key = jax.random.PRNGKey(0)
    kx, kp = jax.random.split(key)
    x = jax.random.normal(kx, (batch, n_feat), jnp.float32)
    params = init_params(n_feat, kp)

    out = ae_forward(x, params)
    out = jax.block_until_ready(out)

    ref = ae_reference(x, params)
    assert out.shape == (batch, n_feat)
    # Slightly looser than bf16 rounding alone to cover the BN-fold / latent-fusion
    # re-association (exact in f32, differs only in bf16 weight rounding).
    assert jnp.allclose(out, ref, atol=2e-2, rtol=2e-2), "mismatch vs. JAX reference"

    print("KERNEL_OK")
</pallas_src>

<mosaic_0001>
module attributes {stable_mosaic.version = 11 : i64} {
  func.func @ae_kernel(%arg0: i32, %arg1: memref<256x256xbf16, #tpu.memory_space<vmem>>, %arg2: memref<256x128xbf16, #tpu.memory_space<vmem>>, %arg3: memref<1x128xf32, #tpu.memory_space<vmem>>, %arg4: memref<128x128xbf16, #tpu.memory_space<vmem>>, %arg5: memref<1x128xf32, #tpu.memory_space<vmem>>, %arg6: memref<128x128xbf16, #tpu.memory_space<vmem>>, %arg7: memref<1x128xf32, #tpu.memory_space<vmem>>, %arg8: memref<128x128xbf16, #tpu.memory_space<vmem>>, %arg9: memref<1x128xf32, #tpu.memory_space<vmem>>, %arg10: memref<128x128xbf16, #tpu.memory_space<vmem>>, %arg11: memref<1x128xf32, #tpu.memory_space<vmem>>, %arg12: memref<128x128xbf16, #tpu.memory_space<vmem>>, %arg13: memref<1x128xf32, #tpu.memory_space<vmem>>, %arg14: memref<128x128xbf16, #tpu.memory_space<vmem>>, %arg15: memref<1x128xf32, #tpu.memory_space<vmem>>, %arg16: memref<128x128xbf16, #tpu.memory_space<vmem>>, %arg17: memref<1x128xf32, #tpu.memory_space<vmem>>, %arg18: memref<128x256xbf16, #tpu.memory_space<vmem>>, %arg19: memref<1x256xf32, #tpu.memory_space<vmem>>, %arg20: memref<256x256xf32, #tpu.memory_space<vmem>>) attributes {dimension_semantics = [#tpu.dimension_semantics<parallel>], iteration_bounds = array<i64: 1>, scalar_prefetch = 0 : i64, scratch_operands = 0 : i64, tpu.core_type = #tpu.core_type<tc>, window_params = [{transform_indices = @transform_0, window_bounds = array<i64: 256, 256>}, {pipeline_mode = #tpu.pipeline_mode<synchronous>, transform_indices = @transform_1, window_bounds = array<i64: 256, 128>}, {pipeline_mode = #tpu.pipeline_mode<synchronous>, transform_indices = @transform_2, window_bounds = array<i64: 1, 128>}, {pipeline_mode = #tpu.pipeline_mode<synchronous>, transform_indices = @transform_3, window_bounds = array<i64: 128, 128>}, {pipeline_mode = #tpu.pipeline_mode<synchronous>, transform_indices = @transform_4, window_bounds = array<i64: 1, 128>}, {pipeline_mode = #tpu.pipeline_mode<synchronous>, transform_indices = @transform_5, window_bounds = array<i64: 128, 128>}, {pipeline_mode = #tpu.pipeline_mode<synchronous>, transform_indices = @transform_6, window_bounds = array<i64: 1, 128>}, {pipeline_mode = #tpu.pipeline_mode<synchronous>, transform_indices = @transform_7, window_bounds = array<i64: 128, 128>}, {pipeline_mode = #tpu.pipeline_mode<synchronous>, transform_indices = @transform_8, window_bounds = array<i64: 1, 128>}, {pipeline_mode = #tpu.pipeline_mode<synchronous>, transform_indices = @transform_9, window_bounds = array<i64: 128, 128>}, {pipeline_mode = #tpu.pipeline_mode<synchronous>, transform_indices = @transform_10, window_bounds = array<i64: 1, 128>}, {pipeline_mode = #tpu.pipeline_mode<synchronous>, transform_indices = @transform_11, window_bounds = array<i64: 128, 128>}, {pipeline_mode = #tpu.pipeline_mode<synchronous>, transform_indices = @transform_12, window_bounds = array<i64: 1, 128>}, {pipeline_mode = #tpu.pipeline_mode<synchronous>, transform_indices = @transform_13, window_bounds = array<i64: 128, 128>}, {pipeline_mode = #tpu.pipeline_mode<synchronous>, transform_indices = @transform_14, window_bounds = array<i64: 1, 128>}, {pipeline_mode = #tpu.pipeline_mode<synchronous>, transform_indices = @transform_15, window_bounds = array<i64: 128, 128>}, {pipeline_mode = #tpu.pipeline_mode<synchronous>, transform_indices = @transform_16, window_bounds = array<i64: 1, 128>}, {pipeline_mode = #tpu.pipeline_mode<synchronous>, transform_indices = @transform_17, window_bounds = array<i64: 128, 256>}, {pipeline_mode = #tpu.pipeline_mode<synchronous>, transform_indices = @transform_18, window_bounds = array<i64: 1, 256>}, {transform_indices = @transform_19, window_bounds = array<i64: 256, 256>}]} {
    %c0 = arith.constant 0 : index
    %c0_0 = arith.constant 0 : index
    %0 = vector.load %arg1[%c0, %c0_0] : memref<256x256xbf16, #tpu.memory_space<vmem>>, vector<256x256xbf16>
    %c0_1 = arith.constant 0 : index
    %c0_2 = arith.constant 0 : index
    %1 = vector.load %arg2[%c0_1, %c0_2] : memref<256x128xbf16, #tpu.memory_space<vmem>>, vector<256x128xbf16>
    %cst = arith.constant dense<0.000000e+00> : vector<256x128xf32>
    %2 = tpu.matmul %0, %1, %cst {dimension_numbers = #tpu.dot_dimension_numbers<[1], [0], [0], [1], [0, 0, 1, 1], [], []>} : vector<256x256xbf16>, vector<256x128xbf16>, vector<256x128xf32> -> vector<256x128xf32>
    %c0_3 = arith.constant 0 : index
    %c0_4 = arith.constant 0 : index
    %3 = vector.load %arg3[%c0_3, %c0_4] : memref<1x128xf32, #tpu.memory_space<vmem>>, vector<1x128xf32>
    %4 = vector.broadcast %3 : vector<1x128xf32> to vector<256x128xf32>
    %5 = arith.addf %2, %4 : vector<256x128xf32>
    %cst_5 = arith.constant 0.000000e+00 : f32
    %6 = vector.broadcast %cst_5 : f32 to vector<256x128xf32>
    %7 = arith.maximumf %5, %6 : vector<256x128xf32>
    %8 = arith.truncf %7 : vector<256x128xf32> to vector<256x128xbf16>
    %c0_6 = arith.constant 0 : index
    %c0_7 = arith.constant 0 : index
    %9 = vector.load %arg4[%c0_6, %c0_7] : memref<128x128xbf16, #tpu.memory_space<vmem>>, vector<128x128xbf16>
    %cst_8 = arith.constant dense<0.000000e+00> : vector<256x128xf32>
    %10 = tpu.matmul %8, %9, %cst_8 {dimension_numbers = #tpu.dot_dimension_numbers<[1], [0], [0], [1], [0, 0, 1, 1], [], []>} : vector<256x128xbf16>, vector<128x128xbf16>, vector<256x128xf32> -> vector<256x128xf32>
    %c0_9 = arith.constant 0 : index
    %c0_10 = arith.constant 0 : index
    %11 = vector.load %arg5[%c0_9, %c0_10] : memref<1x128xf32, #tpu.memory_space<vmem>>, vector<1x128xf32>
    %12 = vector.broadcast %11 : vector<1x128xf32> to vector<256x128xf32>
    %13 = arith.addf %10, %12 : vector<256x128xf32>
    %cst_11 = arith.constant 0.000000e+00 : f32
    %14 = vector.broadcast %cst_11 : f32 to vector<256x128xf32>
    %15 = arith.maximumf %13, %14 : vector<256x128xf32>
    %16 = arith.truncf %15 : vector<256x128xf32> to vector<256x128xbf16>
    %c0_12 = arith.constant 0 : index
    %c0_13 = arith.constant 0 : index
    %17 = vector.load %arg6[%c0_12, %c0_13] : memref<128x128xbf16, #tpu.memory_space<vmem>>, vector<128x128xbf16>
    %cst_14 = arith.constant dense<0.000000e+00> : vector<256x128xf32>
    %18 = tpu.matmul %16, %17, %cst_14 {dimension_numbers = #tpu.dot_dimension_numbers<[1], [0], [0], [1], [0, 0, 1, 1], [], []>} : vector<256x128xbf16>, vector<128x128xbf16>, vector<256x128xf32> -> vector<256x128xf32>
    %c0_15 = arith.constant 0 : index
    %c0_16 = arith.constant 0 : index
    %19 = vector.load %arg7[%c0_15, %c0_16] : memref<1x128xf32, #tpu.memory_space<vmem>>, vector<1x128xf32>
    %20 = vector.broadcast %19 : vector<1x128xf32> to vector<256x128xf32>
    %21 = arith.addf %18, %20 : vector<256x128xf32>
    %cst_17 = arith.constant 0.000000e+00 : f32
    %22 = vector.broadcast %cst_17 : f32 to vector<256x128xf32>
    %23 = arith.maximumf %21, %22 : vector<256x128xf32>
    %24 = arith.truncf %23 : vector<256x128xf32> to vector<256x128xbf16>
    %c0_18 = arith.constant 0 : index
    %c0_19 = arith.constant 0 : index
    %25 = vector.load %arg8[%c0_18, %c0_19] : memref<128x128xbf16, #tpu.memory_space<vmem>>, vector<128x128xbf16>
    %cst_20 = arith.constant dense<0.000000e+00> : vector<256x128xf32>
    %26 = tpu.matmul %24, %25, %cst_20 {dimension_numbers = #tpu.dot_dimension_numbers<[1], [0], [0], [1], [0, 0, 1, 1], [], []>} : vector<256x128xbf16>, vector<128x128xbf16>, vector<256x128xf32> -> vector<256x128xf32>
    %c0_21 = arith.constant 0 : index
    %c0_22 = arith.constant 0 : index
    %27 = vector.load %arg9[%c0_21, %c0_22] : memref<1x128xf32, #tpu.memory_space<vmem>>, vector<1x128xf32>
    %28 = vector.broadcast %27 : vector<1x128xf32> to vector<256x128xf32>
    %29 = arith.addf %26, %28 : vector<256x128xf32>
    %cst_23 = arith.constant 0.000000e+00 : f32
    %30 = vector.broadcast %cst_23 : f32 to vector<256x128xf32>
    %31 = arith.maximumf %29, %30 : vector<256x128xf32>
    %32 = arith.truncf %31 : vector<256x128xf32> to vector<256x128xbf16>
    %c0_24 = arith.constant 0 : index
    %c0_25 = arith.constant 0 : index
    %33 = vector.load %arg10[%c0_24, %c0_25] : memref<128x128xbf16, #tpu.memory_space<vmem>>, vector<128x128xbf16>
    %cst_26 = arith.constant dense<0.000000e+00> : vector<256x128xf32>
    %34 = tpu.matmul %32, %33, %cst_26 {dimension_numbers = #tpu.dot_dimension_numbers<[1], [0], [0], [1], [0, 0, 1, 1], [], []>} : vector<256x128xbf16>, vector<128x128xbf16>, vector<256x128xf32> -> vector<256x128xf32>
    %c0_27 = arith.constant 0 : index
    %c0_28 = arith.constant 0 : index
    %35 = vector.load %arg11[%c0_27, %c0_28] : memref<1x128xf32, #tpu.memory_space<vmem>>, vector<1x128xf32>
    %36 = vector.broadcast %35 : vector<1x128xf32> to vector<256x128xf32>
    %37 = arith.addf %34, %36 : vector<256x128xf32>
    %cst_29 = arith.constant 0.000000e+00 : f32
    %38 = vector.broadcast %cst_29 : f32 to vector<256x128xf32>
    %39 = arith.maximumf %37, %38 : vector<256x128xf32>
    %40 = arith.truncf %39 : vector<256x128xf32> to vector<256x128xbf16>
    %c0_30 = arith.constant 0 : index
    %c0_31 = arith.constant 0 : index
    %41 = vector.load %arg12[%c0_30, %c0_31] : memref<128x128xbf16, #tpu.memory_space<vmem>>, vector<128x128xbf16>
    %cst_32 = arith.constant dense<0.000000e+00> : vector<256x128xf32>
    %42 = tpu.matmul %40, %41, %cst_32 {dimension_numbers = #tpu.dot_dimension_numbers<[1], [0], [0], [1], [0, 0, 1, 1], [], []>} : vector<256x128xbf16>, vector<128x128xbf16>, vector<256x128xf32> -> vector<256x128xf32>
    %c0_33 = arith.constant 0 : index
    %c0_34 = arith.constant 0 : index
    %43 = vector.load %arg13[%c0_33, %c0_34] : memref<1x128xf32, #tpu.memory_space<vmem>>, vector<1x128xf32>
    %44 = vector.broadcast %43 : vector<1x128xf32> to vector<256x128xf32>
    %45 = arith.addf %42, %44 : vector<256x128xf32>
    %cst_35 = arith.constant 0.000000e+00 : f32
    %46 = vector.broadcast %cst_35 : f32 to vector<256x128xf32>
    %47 = arith.maximumf %45, %46 : vector<256x128xf32>
    %48 = arith.truncf %47 : vector<256x128xf32> to vector<256x128xbf16>
    %c0_36 = arith.constant 0 : index
    %c0_37 = arith.constant 0 : index
    %49 = vector.load %arg14[%c0_36, %c0_37] : memref<128x128xbf16, #tpu.memory_space<vmem>>, vector<128x128xbf16>
    %cst_38 = arith.constant dense<0.000000e+00> : vector<256x128xf32>
    %50 = tpu.matmul %48, %49, %cst_38 {dimension_numbers = #tpu.dot_dimension_numbers<[1], [0], [0], [1], [0, 0, 1, 1], [], []>} : vector<256x128xbf16>, vector<128x128xbf16>, vector<256x128xf32> -> vector<256x128xf32>
    %c0_39 = arith.constant 0 : index
    %c0_40 = arith.constant 0 : index
    %51 = vector.load %arg15[%c0_39, %c0_40] : memref<1x128xf32, #tpu.memory_space<vmem>>, vector<1x128xf32>
    %52 = vector.broadcast %51 : vector<1x128xf32> to vector<256x128xf32>
    %53 = arith.addf %50, %52 : vector<256x128xf32>
    %cst_41 = arith.constant 0.000000e+00 : f32
    %54 = vector.broadcast %cst_41 : f32 to vector<256x128xf32>
    %55 = arith.maximumf %53, %54 : vector<256x128xf32>
    %56 = arith.truncf %55 : vector<256x128xf32> to vector<256x128xbf16>
    %c0_42 = arith.constant 0 : index
    %c0_43 = arith.constant 0 : index
    %57 = vector.load %arg16[%c0_42, %c0_43] : memref<128x128xbf16, #tpu.memory_space<vmem>>, vector<128x128xbf16>
    %cst_44 = arith.constant dense<0.000000e+00> : vector<256x128xf32>
    %58 = tpu.matmul %56, %57, %cst_44 {dimension_numbers = #tpu.dot_dimension_numbers<[1], [0], [0], [1], [0, 0, 1, 1], [], []>} : vector<256x128xbf16>, vector<128x128xbf16>, vector<256x128xf32> -> vector<256x128xf32>
    %c0_45 = arith.constant 0 : index
    %c0_46 = arith.constant 0 : index
    %59 = vector.load %arg17[%c0_45, %c0_46] : memref<1x128xf32, #tpu.memory_space<vmem>>, vector<1x128xf32>
    %60 = vector.broadcast %59 : vector<1x128xf32> to vector<256x128xf32>
    %61 = arith.addf %58, %60 : vector<256x128xf32>
    %cst_47 = arith.constant 0.000000e+00 : f32
    %62 = vector.broadcast %cst_47 : f32 to vector<256x128xf32>
    %63 = arith.maximumf %61, %62 : vector<256x128xf32>
    %64 = arith.truncf %63 : vector<256x128xf32> to vector<256x128xbf16>
    %c0_48 = arith.constant 0 : index
    %c0_49 = arith.constant 0 : index
    %65 = vector.load %arg18[%c0_48, %c0_49] : memref<128x256xbf16, #tpu.memory_space<vmem>>, vector<128x256xbf16>
    %cst_50 = arith.constant dense<0.000000e+00> : vector<256x256xf32>
    %66 = tpu.matmul %64, %65, %cst_50 {dimension_numbers = #tpu.dot_dimension_numbers<[1], [0], [0], [1], [0, 0, 1, 1], [], []>} : vector<256x128xbf16>, vector<128x256xbf16>, vector<256x256xf32> -> vector<256x256xf32>
    %c0_51 = arith.constant 0 : index
    %c0_52 = arith.constant 0 : index
    %67 = vector.load %arg19[%c0_51, %c0_52] : memref<1x256xf32, #tpu.memory_space<vmem>>, vector<1x256xf32>
    %68 = vector.broadcast %67 : vector<1x256xf32> to vector<256x256xf32>
    %69 = arith.addf %66, %68 : vector<256x256xf32>
    %c0_53 = arith.constant 0 : index
    %c0_54 = arith.constant 0 : index
    %70 = vector.load %arg20[%c0_53, %c0_54] : memref<256x256xf32, #tpu.memory_space<vmem>>, vector<256x256xf32>
    tpu.vector_store %arg20[%c0_53, %c0_54], %69 {strides = array<i32>} : memref<256x256xf32, #tpu.memory_space<vmem>>, vector<256x256xf32>,
    return
  }
  func.func @transform_0(%arg0: i32) -> (i32, i32) {
    %c0_i32 = arith.constant 0 : i32
    %c0_i32_0 = arith.constant 0 : i32
    return %arg0, %c0_i32 : i32, i32
  }
  func.func @transform_1(%arg0: i32) -> (i32, i32) {
    %c0_i32 = arith.constant 0 : i32
    %c0_i32_0 = arith.constant 0 : i32
    %c0_i32_1 = arith.constant 0 : i32
    return %c0_i32, %c0_i32_0 : i32, i32
  }
  func.func @transform_2(%arg0: i32) -> (i32, i32) {
    %c0_i32 = arith.constant 0 : i32
    %c0_i32_0 = arith.constant 0 : i32
    %c0_i32_1 = arith.constant 0 : i32
    return %c0_i32, %c0_i32_0 : i32, i32
  }
  func.func @transform_3(%arg0: i32) -> (i32, i32) {
    %c0_i32 = arith.constant 0 : i32
    %c0_i32_0 = arith.constant 0 : i32
    %c0_i32_1 = arith.constant 0 : i32
    return %c0_i32, %c0_i32_0 : i32, i32
  }
  func.func @transform_4(%arg0: i32) -> (i32, i32) {
    %c0_i32 = arith.constant 0 : i32
    %c0_i32_0 = arith.constant 0 : i32
    %c0_i32_1 = arith.constant 0 : i32
    return %c0_i32, %c0_i32_0 : i32, i32
  }
  func.func @transform_5(%arg0: i32) -> (i32, i32) {
    %c0_i32 = arith.constant 0 : i32
    %c0_i32_0 = arith.constant 0 : i32
    %c0_i32_1 = arith.constant 0 : i32
    return %c0_i32, %c0_i32_0 : i32, i32
  }
  func.func @transform_6(%arg0: i32) -> (i32, i32) {
    %c0_i32 = arith.constant 0 : i32
    %c0_i32_0 = arith.constant 0 : i32
    %c0_i32_1 = arith.constant 0 : i32
    return %c0_i32, %c0_i32_0 : i32, i32
  }
  func.func @transform_7(%arg0: i32) -> (i32, i32) {
    %c0_i32 = arith.constant 0 : i32
    %c0_i32_0 = arith.constant 0 : i32
    %c0_i32_1 = arith.constant 0 : i32
    return %c0_i32, %c0_i32_0 : i32, i32
  }
  func.func @transform_8(%arg0: i32) -> (i32, i32) {
    %c0_i32 = arith.constant 0 : i32
    %c0_i32_0 = arith.constant 0 : i32
    %c0_i32_1 = arith.constant 0 : i32
    return %c0_i32, %c0_i32_0 : i32, i32
  }
  func.func @transform_9(%arg0: i32) -> (i32, i32) {
    %c0_i32 = arith.constant 0 : i32
    %c0_i32_0 = arith.constant 0 : i32
    %c0_i32_1 = arith.constant 0 : i32
    return %c0_i32, %c0_i32_0 : i32, i32
  }
  func.func @transform_10(%arg0: i32) -> (i32, i32) {
    %c0_i32 = arith.constant 0 : i32
    %c0_i32_0 = arith.constant 0 : i32
    %c0_i32_1 = arith.constant 0 : i32
    return %c0_i32, %c0_i32_0 : i32, i32
  }
  func.func @transform_11(%arg0: i32) -> (i32, i32) {
    %c0_i32 = arith.constant 0 : i32
    %c0_i32_0 = arith.constant 0 : i32
    %c0_i32_1 = arith.constant 0 : i32
    return %c0_i32, %c0_i32_0 : i32, i32
  }
  func.func @transform_12(%arg0: i32) -> (i32, i32) {
    %c0_i32 = arith.constant 0 : i32
    %c0_i32_0 = arith.constant 0 : i32
    %c0_i32_1 = arith.constant 0 : i32
    return %c0_i32, %c0_i32_0 : i32, i32
  }
  func.func @transform_13(%arg0: i32) -> (i32, i32) {
    %c0_i32 = arith.constant 0 : i32
    %c0_i32_0 = arith.constant 0 : i32
    %c0_i32_1 = arith.constant 0 : i32
    return %c0_i32, %c0_i32_0 : i32, i32
  }
  func.func @transform_14(%arg0: i32) -> (i32, i32) {
    %c0_i32 = arith.constant 0 : i32
    %c0_i32_0 = arith.constant 0 : i32
    %c0_i32_1 = arith.constant 0 : i32
    return %c0_i32, %c0_i32_0 : i32, i32
  }
  func.func @transform_15(%arg0: i32) -> (i32, i32) {
    %c0_i32 = arith.constant 0 : i32
    %c0_i32_0 = arith.constant 0 : i32
    %c0_i32_1 = arith.constant 0 : i32
    return %c0_i32, %c0_i32_0 : i32, i32
  }
  func.func @transform_16(%arg0: i32) -> (i32, i32) {
    %c0_i32 = arith.constant 0 : i32
    %c0_i32_0 = arith.constant 0 : i32
    %c0_i32_1 = arith.constant 0 : i32
    return %c0_i32, %c0_i32_0 : i32, i32
  }
  func.func @transform_17(%arg0: i32) -> (i32, i32) {
    %c0_i32 = arith.constant 0 : i32
    %c0_i32_0 = arith.constant 0 : i32
    %c0_i32_1 = arith.constant 0 : i32
    return %c0_i32, %c0_i32_0 : i32, i32
  }
  func.func @transform_18(%arg0: i32) -> (i32, i32) {
    %c0_i32 = arith.constant 0 : i32
    %c0_i32_0 = arith.constant 0 : i32
    %c0_i32_1 = arith.constant 0 : i32
    return %c0_i32, %c0_i32_0 : i32, i32
  }
  func.func @transform_19(%arg0: i32) -> (i32, i32) {
    %c0_i32 = arith.constant 0 : i32
    %c0_i32_0 = arith.constant 0 : i32
    return %arg0, %c0_i32 : i32, i32
  }
}

</mosaic_0001>

<bundles_post_ra>
// kernel: tpu_custom_call.1
= control target key start
LH: loop header
LB: loop body
LE: loop exit
PB: predicated region body
PF: predicated region fallthrough
CT: control target
= control target key end

     0   :  { %s4133_s0 = inlined_call_operand.hbm [shape: bf16[256,256], index: 0, kind: input, shape index: {}]   ;;  %s4134_s1 = inlined_call_operand.hbm [shape: bf16[256,128], index: 1, kind: input, shape index: {}]   ;;  %s4135_s2 = inlined_call_operand.vmem [shape: f32[1,128], index: 2, kind: input, shape index: {}]   ;;  %s4136_s3 = inlined_call_operand.hbm [shape: bf16[128,128], index: 3, kind: input, shape index: {}]   ;;  %s4137_s4 = inlined_call_operand.hbm [shape: f32[1,128], index: 4, kind: input, shape index: {}]   ;;  %s4138_s5 = inlined_call_operand.hbm [shape: bf16[128,128], index: 5, kind: input, shape index: {}]   ;;  %s4139_s6 = inlined_call_operand.vmem [shape: f32[1,128], index: 6, kind: input, shape index: {}]   ;;  %s4140_s7 = inlined_call_operand.hbm [shape: bf16[128,128], index: 7, kind: input, shape index: {}]   ;;  %s4141_s8 = inlined_call_operand.vmem [shape: f32[1,128], index: 8, kind: input, shape index: {}]   ;;  %s4142_s9 = inlined_call_operand.hbm [shape: bf16[128,128], index: 9, kind: input, shape index: {}]   ;;  %s4143_s10 = inlined_call_operand.vmem [shape: f32[1,128], index: 10, kind: input, shape index: {}]   ;;  %s4144_s11 = inlined_call_operand.hbm [shape: bf16[128,128], index: 11, kind: input, shape index: {}]   ;;  %s4145_s12 = inlined_call_operand.vmem [shape: f32[1,128], index: 12, kind: input, shape index: {}]   ;;  %s4146_s13 = inlined_call_operand.hbm [shape: bf16[128,128], index: 13, kind: input, shape index: {}]   ;;  %s4147_s14 = inlined_call_operand.vmem [shape: f32[1,128], index: 14, kind: input, shape index: {}]   ;;  %s4148_s15 = inlined_call_operand.hbm [shape: bf16[128,128], index: 15, kind: input, shape index: {}]   ;;  %s4149_s16 = inlined_call_operand.vmem [shape: f32[1,128], index: 16, kind: input, shape index: {}]   ;;  %s4150_s17 = inlined_call_operand.hbm [shape: bf16[128,256], index: 17, kind: input, shape index: {}]   ;;  %s4151_s18 = inlined_call_operand.vmem [shape: f32[1,256], index: 18, kind: input, shape index: {}]   ;;  %s4152_s19 = inlined_call_operand.hbm [shape: f32[256,256], index: 19, kind: output, shape index: {}]  }
   0x1   :  { %4153 = sst [smem:[#allocation28_spill]] %s4133_s0 }
   0x2   :  { %4154 = sst [smem:[#allocation29_spill]] %s4134_s1 }
   0x3   :  { %4155 = sst [smem:[#allocation30_spill]] %s4135_s2 }
   0x4   :  { %4156 = sst [smem:[#allocation31_spill]] %s4136_s3 }
   0x5   :  { %24 = vsyncpa [#allocation3], 0 }
   0x6   :  { %25 = vsyncpa [#allocation6], 0 }
   0x7   :  { %26 = vsyncpa [#allocation9], 0 }
   0x8   :  { %27 = vsyncpa [#allocation12], 0 }
   0x9   :  { %28 = vsyncpa [#allocation15], 0 }
   0xa   :  { %29 = vsyncpa [#allocation18], 0  ;;  %s4157_s20 = sld [smem:[#allocation29_spill]] }
  0x10   :  { %s48_s21 = sshll.u32 %s4157_s20, 4  ;;  %s49_s21 = int_to_ptr.hbm [resolvable:$true] %s48_s21 }
  0x11   :  { %30 = vsyncpa [#allocation4], 0  ;;  %s3537_s1 = smov [#allocation5]   ;;  %s77_s24 = sshll.u32 %s4137_s4, 4  ;;  %s78_s24 = int_to_ptr.hbm [resolvable:$true] %s77_s24 }
  0x12   :  { %s50_s22 = sshll.u32 %s3537_s1, 4  ;;  %s3538_s25 = smov 64   ;;  %s51_s22 = int_to_ptr.vmem [resolvable:$true] %s50_s22 }
  0x13   :  { %s3539_s3 = smov 4   ;;  %s3540_s26 = smov [#allocation8]  }
  0x14   :  { %56 = dma.hbm_to_vmem [thread:$0]  %s49_s21, 2048, %s51_s22, [#allocation6], %s3538_s25, %s3538_s25, %s3539_s3  }
  0x15   :  { %s79_s27 = sshll.u32 %s3540_s26, 4  ;;  %s102_s0 = sshll.u32 %s4140_s7, 4  ;;  %s80_s27 = int_to_ptr.vmem [resolvable:$true] %s79_s27  ;;  %s103_s0 = int_to_ptr.hbm [resolvable:$true] %s102_s0 }
  0x16   :  { %82 = dma.hbm_to_vmem [thread:$0]  %s78_s24, 16, %s80_s27, [#allocation9]  }
  0x17   :  { %s132_s4 = sshll.u32 %s4144_s11, 4  ;;  %s3541_s1 = smov [#allocation11]   ;;  %s133_s4 = int_to_ptr.hbm [resolvable:$true] %s132_s4 }
  0x18   :  { %s104_s2 = sshll.u32 %s3541_s1, 4  ;;  %s3542_s21 = smov [#allocation14]   ;;  %s105_s2 = int_to_ptr.vmem [resolvable:$true] %s104_s2 }
  0x19   :  { %110 = dma.hbm_to_vmem [thread:$0]  %s103_s0, 1024, %s105_s2, [#allocation12], %s3538_s25, %s3538_s25, %s3539_s3  }
  0x1a   :  { %s134_s22 = sshll.u32 %s3542_s21, 4  ;;  %s162_s7 = sshll.u32 %s4148_s15, 4  ;;  %s135_s22 = int_to_ptr.vmem [resolvable:$true] %s134_s22  ;;  %s163_s7 = int_to_ptr.hbm [resolvable:$true] %s162_s7 }
  0x1b   :  { %140 = dma.hbm_to_vmem [thread:$0]  %s133_s4, 1024, %s135_s22, [#allocation15], %s3538_s25, %s3538_s25, %s3539_s3  }
  0x1c   :  { %s4158_s27 = sld [smem:[#allocation28_spill]]  ;;  %s3543_s29 = smov [#allocation17]  }
  0x1d   :  { %s164_s30 = sshll.u32 %s3543_s29, 4  ;;  %s3544_s0 = smov [#allocation2]   ;;  %s165_s30 = int_to_ptr.vmem [resolvable:$true] %s164_s30 }
  0x1e   :  { %170 = dma.hbm_to_vmem [thread:$0]  %s163_s7, 1024, %s165_s30, [#allocation18], %s3538_s25, %s3538_s25, %s3539_s3  }
  0x1f   :  { %s37_s15 = sshll.u32 %s3544_s0, 4  ;;  %s3545_s20 = smov 128   ;;  %s38_s15 = int_to_ptr.vmem [resolvable:$true] %s37_s15 }
  0x20   :  { %s3546_s1 = smov 8   ;;  %s4159_s21 = sld [smem:[#allocation31_spill]] }
  0x21   :  { %s3547_s23 = smov [#allocation7]   ;;  %s87_s7 = sshll.u32 %s4138_s5, 4  ;;  %s88_s7 = int_to_ptr.hbm [resolvable:$true] %s87_s7 }
  0x22   :  { %s35_s28 = sshll.u32 %s4158_s27, 4  ;;  %s65_s26 = sshll.u32 %s3547_s23, 4  ;;  %s36_s28 = int_to_ptr.hbm [resolvable:$true] %s35_s28  ;;  %s66_s26 = int_to_ptr.vmem [resolvable:$true] %s65_s26 }
  0x23   :  { %43 = dma.hbm_to_vmem [thread:$0]  %s36_s28, 4096, %s38_s15, [#allocation3], %s3545_s20, %s3545_s20, %s3546_s1  }
  0x24   :  { %s3548_s27 = smov [#allocation10]   ;;  %s117_s0 = sshll.u32 %s4142_s9, 4  ;;  %s118_s0 = int_to_ptr.hbm [resolvable:$true] %s117_s0 }
  0x25   :  { %s89_s29 = sshll.u32 %s3548_s27, 4  ;;  %s147_s5 = sshll.u32 %s4146_s13, 4  ;;  %s90_s29 = int_to_ptr.vmem [resolvable:$true] %s89_s29  ;;  %s148_s5 = int_to_ptr.hbm [resolvable:$true] %s147_s5 }
  0x26   :  { %s63_s22 = sshll.u32 %s4159_s21, 4  ;;  %s3549_s2 = smov [#allocation13]   ;;  %s64_s22 = int_to_ptr.hbm [resolvable:$true] %s63_s22 }
  0x27   :  { %71 = dma.hbm_to_vmem [thread:$0]  %s64_s22, 1024, %s66_s26, [#allocation6], %s3538_s25, %s3538_s25, %s3539_s3  }
  0x28   :  { %95 = dma.hbm_to_vmem [thread:$0]  %s88_s7, 1024, %s90_s29, [#allocation9], %s3538_s25, %s3538_s25, %s3539_s3  }
  0x29   :  { %s119_s21 = sshll.u32 %s3549_s2, 4  ;;  %s3550_s22 = smov [#allocation16]   ;;  %s120_s21 = int_to_ptr.vmem [resolvable:$true] %s119_s21 }
  0x2a   :  { %125 = dma.hbm_to_vmem [thread:$0]  %s118_s0, 1024, %s120_s21, [#allocation12], %s3538_s25, %s3538_s25, %s3539_s3  }
  0x2b   :  { %s149_s9 = sshll.u32 %s3550_s22, 4  ;;  %s177_s11 = sshll.u32 %s4150_s17, 4  ;;  %s150_s9 = int_to_ptr.vmem [resolvable:$true] %s149_s9  ;;  %s178_s11 = int_to_ptr.hbm [resolvable:$true] %s177_s11 }
  0x2c   :  { %155 = dma.hbm_to_vmem [thread:$0]  %s148_s5, 1024, %s150_s9, [#allocation15], %s3538_s25, %s3538_s25, %s3539_s3  }
  0x2d   :  { %s3551_s13 = smov [#allocation19]  }
  0x2e   :  { %s179_s24 = sshll.u32 %s3551_s13, 4  ;;  %s180_s24 = int_to_ptr.vmem [resolvable:$true] %s179_s24 }
  0x2f   :  { %185 = dma.hbm_to_vmem [thread:$0]  %s178_s11, 2048, %s180_s24, [#allocation18], %s3545_s20, %s3545_s20, %s3546_s1  }
  0x30   :  { %3523 = dma.done.wait [#allocation3], 4096  }
  0x31   :  { %3524 = vsyncadd [#allocation3], 4294963200 }
  0x32   :  { %3525 = dma.done.wait [#allocation6], 3072  }
  0x33   :  { %3526 = vsyncadd [#allocation6], 4294964224 }
  0x34   :  { %3527 = dma.done.wait [#allocation9], 1040  }
  0x35   :  { %3528 = vsyncadd [#allocation9], 4294966256 }
  0x36   :  { %3529 = dma.done.wait [#allocation12], 2048  }
  0x37   :  { %3530 = vsyncadd [#allocation12], 4294965248 }
  0x38   :  { %3531 = dma.done.wait [#allocation15], 2048  }
  0x39   :  { %3532 = vsyncadd [#allocation15], 4294965248 }
  0x3a   :  { %3533 = dma.done.wait [#allocation18], 3072  }
  0x3b   :  { %3534 = vsyncadd [#allocation18], 4294964224  ;;  %v3104_v0 = vld [vmem:[#allocation5 + $0x38] sm:$0xff]  ;;  %v3103_v2 = vld [vmem:[#allocation5 + $0x30] sm:$0xff]  ;;  %s4160_s3 = sld [smem:[#allocation30_spill]]  ;;  %s2567_s2 = sshll.u32 %s4152_s19, 4  ;;  %s2568_s2 = int_to_ptr.hbm [resolvable:$true] %s2567_s2 }
  0x3c   :  { %v3112_v1 = vld [vmem:[#allocation5 + $0x78] sm:$0xff]  ;;  %556 = vmatpush.bf16.msra.mxu0 %v3104_v0  ;;  %3185 = vmatpush.bf16.msra.mxu3 %v3104_v0  ;;  %v3111_v3 = vld [vmem:[#allocation5 + $0x70] sm:$0xff]  ;;  %v3102_v4 = vld [vmem:[#allocation5 + $0x28] sm:$0xff]  ;;  %s3553_s21 = smov 256   ;;  %s3554_s22 = smov 16  }
  0x3d   :  { %645 = vmatpush.bf16.msra.mxu1 %v3112_v1  ;;  %v3110_v5 = vld [vmem:[#allocation5 + $0x68] sm:$0xff]  ;;  %v3101_v6 = vld [vmem:[#allocation5 + $0x20] sm:$0xff]  ;;  %v3100_v8 = vld [vmem:[#allocation5 + $0x18] sm:$0xff] }
  0x3e   :  { %v3109_v7 = vld [vmem:[#allocation5 + $0x60] sm:$0xff]  ;;  %v3108_v9 = vld [vmem:[#allocation5 + $0x58] sm:$0xff]  ;;  %v3099_v10 = vld [vmem:[#allocation5 + $0x10] sm:$0xff] }
  0x3f   :  { %v3107_v11 = vld [vmem:[#allocation5 + $0x50] sm:$0xff]  ;;  %v3098_v12 = vld [vmem:[#allocation5 + $0x8] sm:$0xff]  ;;  %v3097_v14 = vld [vmem:[#allocation5] sm:$0xff] }
  0x40   :  { %557 = vmatpush.bf16.msra.mxu0 %v3103_v2  ;;  %3186 = vmatpush.bf16.msra.mxu3 %v3103_v2  ;;  %v3106_v13 = vld [vmem:[#allocation5 + $0x48] sm:$0xff]  ;;  %v2587_v15 = vld [vmem:[#allocation2] sm:$0xf]  ;;  %v3065_v20 = vld [vmem:[#allocation2 + $0x4] sm:$0xf] }
  0x41   :  { %646 = vmatpush.bf16.msra.mxu1 %v3111_v3  ;;  %v3066_v16 = vld [vmem:[#allocation2 + $0x4] sm:$0xf0]  ;;  %v2683_v17 = vld [vmem:[#allocation2 + $0xc0] sm:$0xf]  ;;  %v2589_v21 = vld [vmem:[#allocation2 + $0x8] sm:$0xf0] }
  0x42   :  { %v3090_v18 = vld [vmem:[#allocation2 + $0xc4] sm:$0xf0]  ;;  %v3105_v19 = vld [vmem:[#allocation5 + $0x40] sm:$0xff]  ;;  %v2588_v22 = vor.u32 %v3066_v16, %v2587_v15  ;;  %v2592_v24 = vor.u32 %v3065_v20, %v2589_v21  ;;  %v2595_v25 = vld [vmem:[#allocation2 + $0x10] sm:$0xf] }
  0x43   :  { %v2684_v23 = vor.u32 %v3090_v18, %v2683_v17  ;;  %v3068_v26 = vld [vmem:[#allocation2 + $0x14] sm:$0xf0]  ;;  %v2691_v27 = vld [vmem:[#allocation2 + $0xd0] sm:$0xf]  ;;  %v3067_v29 = vld [vmem:[#allocation2 + $0x14] sm:$0xf] }
  0x44   :  { %558 = vmatpush.bf16.msra.mxu0 %v3102_v4  ;;  %3187 = vmatpush.bf16.msra.mxu3 %v3102_v4  ;;  %v3092_v28 = vld [vmem:[#allocation2 + $0xd4] sm:$0xf0]  ;;  %v2597_v30 = vld [vmem:[#allocation2 + $0x18] sm:$0xf0]  ;;  %v2596_v31 = vor.u32 %v3068_v26, %v2595_v25  ;;  %v2603_v34 = vld [vmem:[#allocation2 + $0x20] sm:$0xf] }
  0x45   :  { %647 = vmatpush.bf16.msra.mxu1 %v3110_v5  ;;  %v2692_v32 = vor.u32 %v3092_v28, %v2691_v27  ;;  %v2600_v33 = vor.u32 %v3067_v29, %v2597_v30  ;;  %v3070_v35 = vld [vmem:[#allocation2 + $0x24] sm:$0xf0]  ;;  %v2699_v36 = vld [vmem:[#allocation2 + $0xe0] sm:$0xf]  ;;  %v3069_v38 = vld [vmem:[#allocation2 + $0x24] sm:$0xf] }
  0x46   :  { %v3094_v37 = vld [vmem:[#allocation2 + $0xe4] sm:$0xf0]  ;;  %v2605_v39 = vld [vmem:[#allocation2 + $0x28] sm:$0xf0]  ;;  %v2604_v40 = vor.u32 %v3070_v35, %v2603_v34  ;;  %v2611_v43 = vld [vmem:[#allocation2 + $0x30] sm:$0xf] }
  0x47   :  { %v2700_v41 = vor.u32 %v3094_v37, %v2699_v36  ;;  %v2608_v42 = vor.u32 %v3069_v38, %v2605_v39  ;;  %v3072_v44 = vld [vmem:[#allocation2 + $0x34] sm:$0xf0]  ;;  %v2707_v45 = vld [vmem:[#allocation2 + $0xf0] sm:$0xf]  ;;  %v3071_v47 = vld [vmem:[#allocation2 + $0x34] sm:$0xf] }
  0x48   :  { %559 = vmatpush.bf16.msra.mxu0 %v3101_v6  ;;  %3188 = vmatpush.bf16.msra.mxu3 %v3101_v6  ;;  %v3096_v46 = vld [vmem:[#allocation2 + $0xf4] sm:$0xf0]  ;;  %v2613_v48 = vld [vmem:[#allocation2 + $0x38] sm:$0xf0]  ;;  %v2612_v49 = vor.u32 %v3072_v44, %v2611_v43  ;;  %v2619_v52 = vld [vmem:[#allocation2 + $0x40] sm:$0xf] }
  0x49   :  { %648 = vmatpush.bf16.msra.mxu1 %v3109_v7  ;;  %v2708_v50 = vor.u32 %v3096_v46, %v2707_v45  ;;  %v2616_v51 = vor.u32 %v3071_v47, %v2613_v48  ;;  %v3074_v53 = vld [vmem:[#allocation2 + $0x44] sm:$0xf0]  ;;  %v3089_v54 = vld [vmem:[#allocation2 + $0xc4] sm:$0xf]  ;;  %v2685_v55 = vld [vmem:[#allocation2 + $0xc8] sm:$0xf0] }
  0x4a   :  { %v3073_v56 = vld [vmem:[#allocation2 + $0x44] sm:$0xf]  ;;  %v2621_v57 = vld [vmem:[#allocation2 + $0x48] sm:$0xf0]  ;;  %v2620_v58 = vor.u32 %v3074_v53, %v2619_v52  ;;  %v2688_v59 = vor.u32 %v3089_v54, %v2685_v55  ;;  %v3120_v61 = vld [vmem:[#allocation7 + $0x38] sm:$0xff] }
  0x4b   :  { %v2624_v60 = vor.u32 %v3073_v56, %v2621_v57  ;;  %850 = vmatpush.bf16.msra.mxu2 %v3120_v61  ;;  %v2627_v62 = vld [vmem:[#allocation2 + $0x50] sm:$0xf]  ;;  %v3076_v63 = vld [vmem:[#allocation2 + $0x54] sm:$0xf0]  ;;  %v3091_v0 = vld [vmem:[#allocation2 + $0xd4] sm:$0xf] }
  0x4c   :  { %560 = vmatpush.bf16.msra.mxu0 %v3100_v8  ;;  %3189 = vmatpush.bf16.msra.mxu3 %v3100_v8  ;;  %v3075_v2 = vld [vmem:[#allocation2 + $0x54] sm:$0xf]  ;;  %v2628_v4 = vor.u32 %v3076_v63, %v2627_v62  ;;  %v3118_v8 = vld [vmem:[#allocation7 + $0x28] sm:$0xff]  ;;  %v2709_v25 = vld [vmem:[#allocation2 + $0xf8] sm:$0xf0] }
  0x4d   :  { %649 = vmatpush.bf16.msra.mxu1 %v3108_v9  ;;  %v2637_v15 = vld [vmem:[#allocation2 + $0x68] sm:$0xf0]  ;;  %v3115_v20 = vld [vmem:[#allocation7 + $0x10] sm:$0xff]  ;;  %v2645_v27 = vld [vmem:[#allocation2 + $0x78] sm:$0xf0] }
  0x4e   :  { %v3114_v21 = vld [vmem:[#allocation7 + $0x8] sm:$0xff]  ;;  %v3079_v26 = vld [vmem:[#allocation2 + $0x74] sm:$0xf]  ;;  %v3113_v28 = vld [vmem:[#allocation7] sm:$0xff] }
  0x4f   :  { %v3081_v34 = vld [vmem:[#allocation2 + $0x84] sm:$0xf]  ;;  %v2653_v35 = vld [vmem:[#allocation2 + $0x88] sm:$0xf0]  ;;  %v3721_v39 = vld [vmem:[%s4160_s3] ss:$0 sm:$0xff] }
  0x50   :  { %561 = vmatpush.bf16.msra.mxu0 %v3099_v10  ;;  %3190 = vmatpush.bf16.msra.mxu3 %v3099_v10  ;;  %v2635_v10 = vld [vmem:[#allocation2 + $0x60] sm:$0xf]  ;;  %v2656_v38 = vor.u32 %v3081_v34, %v2653_v35  ;;  %v2659_v48 = vld [vmem:[#allocation2 + $0x90] sm:$0xf]  ;;  %v3083_v52 = vld [vmem:[#allocation2 + $0x94] sm:$0xf] }
  0x51   :  { %650 = vmatpush.bf16.msra.mxu1 %v3107_v11  ;;  %v2661_v53 = vld [vmem:[#allocation2 + $0x98] sm:$0xf0] }
  0x54   :  { %562 = vmatpush.bf16.msra.mxu0 %v3098_v12  ;;  %3191 = vmatpush.bf16.msra.mxu3 %v3098_v12  ;;  %v3093_v12 = vld [vmem:[#allocation2 + $0xe4] sm:$0xf] }
  0x55   :  { %651 = vmatpush.bf16.msra.mxu1 %v3106_v13 }
  0x58   :  { %563 = vmatpush.bf16.msra.mxu0 %v3097_v14  ;;  %3192 = vmatpush.bf16.msra.mxu3 %v3097_v14  ;;  %v3077_v14 = vld [vmem:[#allocation2 + $0x64] sm:$0xf] }
  0x59   :  { %652 = vmatpush.bf16.msra.mxu1 %v3105_v19  ;;  %v2640_v18 = vor.u32 %v3077_v14, %v2637_v15 }
  0x5b   :  { %564 = vmatmul.bf16.vlgmr.msra.gmra.mxu0 %v2588_v22  ;;  %624 = vmatmul.bf16.vlgmr.msra.gmra.mxu3 %v2684_v23  ;;  %v2643_v22 = vld [vmem:[#allocation2 + $0x70] sm:$0xf]  ;;  %v3080_v23 = vld [vmem:[#allocation2 + $0x74] sm:$0xf0] }
  0x5c   :  { %3193 = vmatpush.bf16.msrb.mxu3 %v3112_v1  ;;  %653 = vmatmul.bf16.vlgmr.msra.gmra.mxu1 %v2592_v24  ;;  %v2693_v1 = vld [vmem:[#allocation2 + $0xd8] sm:$0xf0]  ;;  %v3095_v24 = vld [vmem:[#allocation2 + $0xf4] sm:$0xf]  ;;  %v2644_v29 = vor.u32 %v3080_v23, %v2643_v22  ;;  %v2675_v22 = vld [vmem:[#allocation2 + $0xb0] sm:$0xf] }
  0x5d   :  { %v2712_v30 = vor.u32 %v3095_v24, %v2709_v25  ;;  %v3088_v23 = vld [vmem:[#allocation2 + $0xb4] sm:$0xf0] }
  0x60   :  { %3194 = vmatpush.bf16.msrb.mxu3 %v3111_v3  ;;  %v2629_v3 = vld [vmem:[#allocation2 + $0x58] sm:$0xf0] }
  0x61   :  { %v2632_v6 = vor.u32 %v3075_v2, %v2629_v3  ;;  %v2667_v3 = vld [vmem:[#allocation2 + $0xa0] sm:$0xf] }
  0x64   :  { %3195 = vmatpush.bf16.msrb.mxu3 %v3110_v5  ;;  %v2696_v5 = vor.u32 %v3091_v0, %v2693_v1 }
  0x68   :  { %3196 = vmatpush.bf16.msrb.mxu3 %v3109_v7  ;;  %v3119_v7 = vld [vmem:[#allocation7 + $0x30] sm:$0xff] }
  0x69   :  { %851 = vmatpush.bf16.msra.mxu2 %v3119_v7 }
  0x6b   :  { %569 = vmatmul.bf16.gmra.mxu0 %v2596_v31  ;;  %629 = vmatmul.bf16.gmra.mxu3 %v2692_v32  ;;  %v2648_v31 = vor.u32 %v3079_v26, %v2645_v27  ;;  %v2651_v32 = vld [vmem:[#allocation2 + $0x80] sm:$0xf]  ;;  %v3087_v26 = vld [vmem:[#allocation2 + $0xb4] sm:$0xf]  ;;  %v2677_v27 = vld [vmem:[#allocation2 + $0xb8] sm:$0xf0] }
  0x6c   :  { %3197 = vmatpush.bf16.msrb.mxu3 %v3108_v9  ;;  %658 = vmatmul.bf16.gmra.mxu1 %v2600_v33  ;;  %v3117_v9 = vld [vmem:[#allocation7 + $0x20] sm:$0xff]  ;;  %v3082_v33 = vld [vmem:[#allocation2 + $0x84] sm:$0xf0] }
  0x6d   :  { %852 = vmatpush.bf16.msra.mxu2 %v3118_v8  ;;  %v2652_v36 = vor.u32 %v3082_v33, %v2651_v32  ;;  %v2680_v32 = vor.u32 %v3087_v26, %v2677_v27 }
  0x70   :  { %3198 = vmatpush.bf16.msrb.mxu3 %v3107_v11  ;;  %v3078_v11 = vld [vmem:[#allocation2 + $0x64] sm:$0xf0] }
  0x71   :  { %853 = vmatpush.bf16.msra.mxu2 %v3117_v9  ;;  %v2636_v16 = vor.u32 %v3078_v11, %v2635_v10 }
  0x74   :  { %3199 = vmatpush.bf16.msrb.mxu3 %v3106_v13  ;;  %v2701_v13 = vld [vmem:[#allocation2 + $0xe8] sm:$0xf0] }
  0x75   :  { %v2704_v17 = vor.u32 %v3093_v12, %v2701_v13 }
  0x78   :  { %3200 = vmatpush.bf16.msrb.mxu3 %v3105_v19  ;;  %v3116_v19 = vld [vmem:[#allocation7 + $0x18] sm:$0xff] }
  0x79   :  { %854 = vmatpush.bf16.msra.mxu2 %v3116_v19 }
  0x7b   :  { %574 = vmatmul.bf16.gmra.mxu0 %v2604_v40  ;;  %634 = vmatmul.bf16.gmra.mxu3 %v2700_v41 }
  0x7c   :  { %663 = vmatmul.bf16.gmra.mxu1 %v2608_v42  ;;  %3201 = vmatpush.bf16.msra.mxu3 %v3120_v61 }
  0x7d   :  { %855 = vmatpush.bf16.msra.mxu2 %v3115_v20 }
  0x80   :  { %3202 = vmatpush.bf16.msra.mxu3 %v3119_v7  ;;  %v3085_v7 = vld [vmem:[#allocation2 + $0xa4] sm:$0xf] }
  0x81   :  { %856 = vmatpush.bf16.msra.mxu2 %v3114_v21 }
  0x84   :  { %3203 = vmatpush.bf16.msra.mxu3 %v3118_v8  ;;  %v2669_v8 = vld [vmem:[#allocation2 + $0xa8] sm:$0xf0] }
  0x85   :  { %857 = vmatpush.bf16.msra.mxu2 %v3113_v28  ;;  %v2672_v13 = vor.u32 %v3085_v7, %v2669_v8 }
  0x88   :  { %3204 = vmatpush.bf16.msra.mxu3 %v3117_v9 }
  0x8b   :  { %579 = vmatmul.bf16.gmra.mxu0 %v2612_v49  ;;  %639 = vmatmul.bf16.gmra.mxu3 %v2708_v50  ;;  %v3084_v49 = vld [vmem:[#allocation2 + $0x94] sm:$0xf0] }
  0x8c   :  { %668 = vmatmul.bf16.gmra.mxu1 %v2616_v51  ;;  %3205 = vmatpush.bf16.msra.mxu3 %v3116_v19  ;;  %v2660_v56 = vor.u32 %v3084_v49, %v2659_v48 }
  0x90   :  { %3206 = vmatpush.bf16.msra.mxu3 %v3115_v20 }
  0x94   :  { %3207 = vmatpush.bf16.msra.mxu3 %v3114_v21 }
  0x98   :  { %3208 = vmatpush.bf16.msra.mxu3 %v3113_v28 }
  0x9b   :  { %584 = vmatmul.bf16.gmra.mxu0 %v2620_v58  ;;  %713 = vmatmul.bf16.vlgmr.msrb.gmra.mxu3 %v2688_v59  ;;  %v2664_v58 = vor.u32 %v3083_v52, %v2661_v53 }
  0x9c   :  { %673 = vmatmul.bf16.gmra.mxu1 %v2624_v60 }
  0xab   :  { %589 = vmatmul.bf16.gmra.mxu0 %v2628_v4  ;;  %718 = vmatmul.bf16.gmra.mxu3 %v2696_v5  ;;  %v3086_v4 = vld [vmem:[#allocation2 + $0xa4] sm:$0xf0] }
  0xac   :  { %678 = vmatmul.bf16.gmra.mxu1 %v2632_v6  ;;  %v2668_v11 = vor.u32 %v3086_v4, %v2667_v3 }
  0xbb   :  { %594 = vmatmul.bf16.gmra.mxu0 %v2636_v16  ;;  %723 = vmatmul.bf16.gmra.mxu3 %v2704_v17 }
  0xbc   :  { %683 = vmatmul.bf16.gmra.mxu1 %v2640_v18 }
  0xcb   :  { %599 = vmatmul.bf16.gmra.mxu0 %v2644_v29  ;;  %728 = vmatmul.bf16.gmra.mxu3 %v2712_v30  ;;  %v2676_v30 = vor.u32 %v3088_v23, %v2675_v22  ;;  %v3125_v23 = vld [vmem:[#allocation10 + $0x20] sm:$0xff] }
  0xcc   :  { %688 = vmatmul.bf16.gmra.mxu1 %v2648_v31 }
  0xd8   :  { %v565_v37 = vpop.f32.mrf.mxu0 }
  0xd9   :  { %v654_v40 = vpop.f32.mrf.mxu1  ;;  %v566_v41 = vadd.f32 %v3721_v39, %v565_v37 }
  0xdb   :  { %604 = vmatmul.bf16.gmra.mxu0 %v2652_v36  ;;  %v655_v44 = vadd.f32 %v654_v40, %v566_v41 }
  0xdc   :  { %693 = vmatmul.bf16.gmra.mxu1 %v2656_v38 }
  0xdd   :  { %v734_v50 = vmax.f32 %v655_v44, 0.0 }
  0xde   :  { %v3724_v42 = vpop.f32.mrf.mxu3 }
  0xe0   :  { %v567_v43 = vpop.f32.mrf.mxu0 }
  0xe1   :  { %v568_v45 = vadd.f32 %v3721_v39, %v567_v43  ;;  %v656_v46 = vpop.f32.mrf.mxu1 }
  0xe3   :  { %v657_v47 = vadd.f32 %v656_v46, %v568_v45 }
  0xe5   :  { %v735_v51 = vmax.f32 %v657_v47, 0.0 }
  0xe6   :  { %v3727_v54 = vpop.f32.mrf.mxu3 }
  0xe7   :  { %v766_v55 = vpack.c.bf16 %v735_v51, %v734_v50  ;;  %v3128_v50 = vld [vmem:[#allocation10 + $0x38] sm:$0xff] }
  0xe8   :  { %v570_v57 = vpop.f32.mrf.mxu0  ;;  %1055 = vmatpush.bf16.msrb.mxu3 %v3128_v50 }
  0xe9   :  { %v659_v59 = vpop.f32.mrf.mxu1  ;;  %858 = vmatmul.bf16.vlgmr.msra.gmra.mxu2 %v766_v55  ;;  %v571_v60 = vadd.f32 %v3721_v39, %v570_v57  ;;  %v626_v57 = vadd.f32 %v3721_v39, %v3724_v42 }
  0xeb   :  { %609 = vmatmul.bf16.gmra.mxu0 %v2660_v56  ;;  %v660_v63 = vadd.f32 %v659_v59, %v571_v60  ;;  %v628_v59 = vadd.f32 %v3721_v39, %v3727_v54 }
  0xec   :  { %698 = vmatmul.bf16.gmra.mxu1 %v2664_v58 }
  0xed   :  { %v736_v5 = vmax.f32 %v660_v63, 0.0 }
  0xee   :  { %v3730_v61 = vpop.f32.mrf.mxu3 }
  0xf0   :  { %v572_v62 = vpop.f32.mrf.mxu0 }
  0xf1   :  { %v573_v0 = vadd.f32 %v3721_v39, %v572_v62  ;;  %v661_v1 = vpop.f32.mrf.mxu1 }
  0xf3   :  { %v662_v2 = vadd.f32 %v661_v1, %v573_v0  ;;  %v3127_v0 = vld [vmem:[#allocation10 + $0x30] sm:$0xff] }
  0xf4   :  { %1056 = vmatpush.bf16.msrb.mxu3 %v3127_v0 }
  0xf5   :  { %v737_v6 = vmax.f32 %v662_v2, 0.0 }
  0xf6   :  { %v3733_v9 = vpop.f32.mrf.mxu3 }
  0xf7   :  { %v767_v10 = vpack.c.bf16 %v737_v6, %v736_v5 }
  0xf8   :  { %v575_v12 = vpop.f32.mrf.mxu0 }
  0xf9   :  { %v664_v14 = vpop.f32.mrf.mxu1  ;;  %863 = vmatmul.bf16.gmra.mxu2 %v767_v10  ;;  %v576_v15 = vadd.f32 %v3721_v39, %v575_v12  ;;  %v3126_v10 = vld [vmem:[#allocation10 + $0x28] sm:$0xff] }
  0xfa   :  { %1057 = vmatpush.bf16.msrb.mxu3 %v3126_v10 }
  0xfb   :  { %614 = vmatmul.bf16.gmra.mxu0 %v2668_v11  ;;  %v665_v18 = vadd.f32 %v664_v14, %v576_v15  ;;  %v3136_v11 = vld [vmem:[#allocation11 + $0x38] sm:$0xff] }
  0xfc   :  { %703 = vmatmul.bf16.gmra.mxu1 %v2672_v13  ;;  %1260 = vmatpush.bf16.msrb.mxu0 %v3136_v11 }
  0xfd   :  { %v738_v24 = vmax.f32 %v665_v18, 0.0 }
  0xfe   :  { %v3736_v16 = vpop.f32.mrf.mxu3  ;;  %1058 = vmatpush.bf16.msrb.mxu3 %v3125_v23 }
 0x100   :  { %v577_v17 = vpop.f32.mrf.mxu0 }
 0x101   :  { %v578_v19 = vadd.f32 %v3721_v39, %v577_v17  ;;  %v666_v20 = vpop.f32.mrf.mxu1  ;;  %v631_v17 = vadd.f32 %v3721_v39, %v3730_v61 }
 0x103   :  { %v667_v21 = vadd.f32 %v666_v20, %v578_v19  ;;  %v633_v19 = vadd.f32 %v3721_v39, %v3733_v9 }
 0x105   :  { %v739_v25 = vmax.f32 %v667_v21, 0.0 }
 0x106   :  { %v3739_v28 = vpop.f32.mrf.mxu3 }
 0x107   :  { %v768_v29 = vpack.c.bf16 %v739_v25, %v738_v24 }
 0x108   :  { %v580_v31 = vpop.f32.mrf.mxu0 }
 0x109   :  { %v669_v33 = vpop.f32.mrf.mxu1  ;;  %868 = vmatmul.bf16.gmra.mxu2 %v768_v29  ;;  %v581_v34 = vadd.f32 %v3721_v39, %v580_v31 }
 0x10b   :  { %619 = vmatmul.bf16.gmra.mxu0 %v2676_v30  ;;  %v670_v37 = vadd.f32 %v669_v33, %v581_v34  ;;  %v3124_v33 = vld [vmem:[#allocation10 + $0x18] sm:$0xff] }
 0x10c   :  { %708 = vmatmul.bf16.gmra.mxu1 %v2680_v32  ;;  %1059 = vmatpush.bf16.msrb.mxu3 %v3124_v33 }
 0x10d   :  { %v740_v43 = vmax.f32 %v670_v37, 0.0 }
 0x10e   :  { %v3742_v35 = vpop.f32.mrf.mxu3 }
 0x110   :  { %v582_v36 = vpop.f32.mrf.mxu0 }
 0x111   :  { %v583_v38 = vadd.f32 %v3721_v39, %v582_v36  ;;  %v671_v40 = vpop.f32.mrf.mxu1 }
 0x113   :  { %v672_v41 = vadd.f32 %v671_v40, %v583_v38  ;;  %v636_v40 = vadd.f32 %v3721_v39, %v3736_v16 }
 0x115   :  { %v741_v44 = vmax.f32 %v672_v41, 0.0 }
 0x116   :  { %v3745_v45 = vpop.f32.mrf.mxu3 }
 0x117   :  { %v769_v46 = vpack.c.bf16 %v741_v44, %v740_v43  ;;  %v638_v43 = vadd.f32 %v3721_v39, %v3739_v28  ;;  %v3122_v28 = vld [vmem:[#allocation10 + $0x8] sm:$0xff] }
 0x118   :  { %v585_v47 = vpop.f32.mrf.mxu0 }
 0x119   :  { %v674_v48 = vpop.f32.mrf.mxu1  ;;  %873 = vmatmul.bf16.gmra.mxu2 %v769_v46  ;;  %v586_v49 = vadd.f32 %v3721_v39, %v585_v47 }
 0x11b   :  { %v675_v53 = vadd.f32 %v674_v48, %v586_v49  ;;  %v3123_v48 = vld [vmem:[#allocation10 + $0x10] sm:$0xff] }
 0x11c   :  { %v3135_v49 = vld [vmem:[#allocation11 + $0x30] sm:$0xff]  ;;  %1060 = vmatpush.bf16.msrb.mxu3 %v3123_v48 }
 0x11d   :  { %v742_v60 = vmax.f32 %v675_v53, 0.0  ;;  %1261 = vmatpush.bf16.msrb.mxu0 %v3135_v49 }
 0x11e   :  { %v714_v51 = vpop.f32.mrf.mxu3 }
 0x11f   :  { %v715_v62 = vadd.f32 %v714_v51, %v626_v57 }
 0x120   :  { %v587_v52 = vpop.f32.mrf.mxu0  ;;  %1061 = vmatpush.bf16.msrb.mxu3 %v3122_v28 }
 0x121   :  { %v588_v55 = vadd.f32 %v3721_v39, %v587_v52  ;;  %v676_v56 = vpop.f32.mrf.mxu1  ;;  %v758_v5 = vmax.f32 %v715_v62, 0.0 }
 0x123   :  { %v677_v58 = vadd.f32 %v676_v56, %v588_v55 }
 0x125   :  { %v743_v63 = vmax.f32 %v677_v58, 0.0 }
 0x126   :  { %v716_v1 = vpop.f32.mrf.mxu3 }
 0x127   :  { %v717_v2 = vadd.f32 %v716_v1, %v628_v59  ;;  %v770_v3 = vpack.c.bf16 %v743_v63, %v742_v60  ;;  %v641_v1 = vadd.f32 %v3721_v39, %v3742_v35 }
 0x128   :  { %v590_v4 = vpop.f32.mrf.mxu0 }
 0x129   :  { %v759_v6 = vmax.f32 %v717_v2, 0.0  ;;  %v679_v7 = vpop.f32.mrf.mxu1  ;;  %878 = vmatmul.bf16.gmra.mxu2 %v770_v3  ;;  %v591_v42 = vadd.f32 %v3721_v39, %v590_v4  ;;  %v643_v3 = vadd.f32 %v3721_v39, %v3745_v45 }
 0x12b   :  { %v778_v8 = vpack.c.bf16 %v759_v6, %v758_v5  ;;  %v680_v13 = vadd.f32 %v679_v7, %v591_v42  ;;  %v3121_v7 = vld [vmem:[#allocation10] sm:$0xff] }
 0x12c   :  { %1062 = vmatpush.bf16.msrb.mxu3 %v3121_v7 }
 0x12d   :  { %918 = vmatmul.bf16.vlgmr.msra.gmra.mxu3 %v778_v8  ;;  %v744_v20 = vmax.f32 %v680_v13, 0.0 }
 0x12e   :  { %v719_v54 = vpop.f32.mrf.mxu3 }
 0x12f   :  { %v720_v21 = vadd.f32 %v719_v54, %v631_v17 }
 0x130   :  { %v592_v12 = vpop.f32.mrf.mxu0 }
 0x131   :  { %v593_v14 = vadd.f32 %v3721_v39, %v592_v12  ;;  %v681_v15 = vpop.f32.mrf.mxu1  ;;  %v760_v29 = vmax.f32 %v720_v21, 0.0 }
 0x133   :  { %v682_v18 = vadd.f32 %v681_v15, %v593_v14  ;;  %v3134_v15 = vld [vmem:[#allocation11 + $0x28] sm:$0xff] }
 0x134   :  { %1262 = vmatpush.bf16.msrb.mxu0 %v3134_v15 }
 0x135   :  { %v745_v22 = vmax.f32 %v682_v18, 0.0 }
 0x136   :  { %v721_v24 = vpop.f32.mrf.mxu3 }
 0x137   :  { %v722_v25 = vadd.f32 %v721_v24, %v633_v19  ;;  %v771_v26 = vpack.c.bf16 %v745_v22, %v744_v20 }
 0x138   :  { %v595_v27 = vpop.f32.mrf.mxu0 }
 0x139   :  { %v761_v30 = vmax.f32 %v722_v25, 0.0  ;;  %v684_v31 = vpop.f32.mrf.mxu1  ;;  %883 = vmatmul.bf16.gmra.mxu2 %v771_v26  ;;  %v596_v61 = vadd.f32 %v3721_v39, %v595_v27 }
 0x13b   :  { %v779_v32 = vpack.c.bf16 %v761_v30, %v760_v29  ;;  %v685_v36 = vadd.f32 %v684_v31, %v596_v61  ;;  %v3774_v29 = vld [vmem:[#allocation8] ss:$0 sm:$0xff] }
 0x13d   :  { %923 = vmatmul.bf16.gmra.mxu3 %v779_v32  ;;  %v746_v44 = vmax.f32 %v685_v36, 0.0 }
 0x13e   :  { %v724_v34 = vpop.f32.mrf.mxu3 }
 0x13f   :  { %v725_v46 = vadd.f32 %v724_v34, %v636_v40 }
 0x140   :  { %v597_v9 = vpop.f32.mrf.mxu0 }
 0x141   :  { %v598_v37 = vadd.f32 %v3721_v39, %v597_v9  ;;  %v686_v38 = vpop.f32.mrf.mxu1  ;;  %v762_v55 = vmax.f32 %v725_v46, 0.0 }
 0x143   :  { %v687_v41 = vadd.f32 %v686_v38, %v598_v37 }
 0x145   :  { %v747_v47 = vmax.f32 %v687_v41, 0.0 }
 0x146   :  { %v726_v50 = vpop.f32.mrf.mxu3 }
 0x147   :  { %v727_v51 = vadd.f32 %v726_v50, %v638_v43  ;;  %v772_v52 = vpack.c.bf16 %v747_v47, %v746_v44  ;;  %v3133_v44 = vld [vmem:[#allocation11 + $0x20] sm:$0xff] }
 0x148   :  { %v600_v53 = vpop.f32.mrf.mxu0  ;;  %1263 = vmatpush.bf16.msrb.mxu0 %v3133_v44 }
 0x149   :  { %v763_v56 = vmax.f32 %v727_v51, 0.0  ;;  %v689_v57 = vpop.f32.mrf.mxu1  ;;  %888 = vmatmul.bf16.gmra.mxu2 %v772_v52  ;;  %v601_v58 = vadd.f32 %v3721_v39, %v600_v53 }
 0x14b   :  { %v780_v16 = vpack.c.bf16 %v763_v56, %v762_v55  ;;  %v690_v62 = vadd.f32 %v689_v57, %v601_v58 }
 0x14d   :  { %928 = vmatmul.bf16.gmra.mxu3 %v780_v16  ;;  %v748_v4 = vmax.f32 %v690_v62, 0.0 }
 0x14e   :  { %v729_v59 = vpop.f32.mrf.mxu3 }
 0x14f   :  { %v730_v5 = vadd.f32 %v729_v59, %v641_v1 }
 0x150   :  { %v602_v60 = vpop.f32.mrf.mxu0 }
 0x151   :  { %v603_v63 = vadd.f32 %v3721_v39, %v602_v60  ;;  %v691_v0 = vpop.f32.mrf.mxu1  ;;  %v764_v54 = vmax.f32 %v730_v5, 0.0  ;;  %v3132_v5 = vld [vmem:[#allocation11 + $0x18] sm:$0xff] }
 0x152   :  { %1264 = vmatpush.bf16.msrb.mxu0 %v3132_v5 }
 0x153   :  { %v692_v2 = vadd.f32 %v691_v0, %v603_v63 }
 0x155   :  { %v749_v6 = vmax.f32 %v692_v2, 0.0 }
 0x156   :  { %v731_v8 = vpop.f32.mrf.mxu3 }
 0x157   :  { %v732_v42 = vadd.f32 %v731_v8, %v643_v3  ;;  %v773_v10 = vpack.c.bf16 %v749_v6, %v748_v4 }
 0x158   :  { %v605_v11 = vpop.f32.mrf.mxu0 }
 0x159   :  { %v765_v12 = vmax.f32 %v732_v42, 0.0  ;;  %v694_v13 = vpop.f32.mrf.mxu1  ;;  %893 = vmatmul.bf16.gmra.mxu2 %v773_v10  ;;  %v606_v35 = vadd.f32 %v3721_v39, %v605_v11 }
 0x15b   :  { %v781_v14 = vpack.c.bf16 %v765_v12, %v764_v54  ;;  %v695_v45 = vadd.f32 %v694_v13, %v606_v35 }
 0x15d   :  { %933 = vmatmul.bf16.gmra.mxu3 %v781_v14  ;;  %v750_v21 = vmax.f32 %v695_v45, 0.0 }
 0x160   :  { %v607_v17 = vpop.f32.mrf.mxu0 }
 0x161   :  { %v608_v18 = vadd.f32 %v3721_v39, %v607_v17  ;;  %v696_v19 = vpop.f32.mrf.mxu1 }
 0x163   :  { %v697_v20 = vadd.f32 %v696_v19, %v608_v18 }
 0x165   :  { %v751_v22 = vmax.f32 %v697_v20, 0.0 }
 0x167   :  { %v774_v23 = vpack.c.bf16 %v751_v22, %v750_v21 }
 0x168   :  { %v610_v24 = vpop.f32.mrf.mxu0 }
 0x169   :  { %v699_v25 = vpop.f32.mrf.mxu1  ;;  %898 = vmatmul.bf16.gmra.mxu2 %v774_v23  ;;  %v611_v27 = vadd.f32 %v3721_v39, %v610_v24  ;;  %v3131_v23 = vld [vmem:[#allocation11 + $0x10] sm:$0xff] }
 0x16a   :  { %1265 = vmatpush.bf16.msrb.mxu0 %v3131_v23 }
 0x16b   :  { %v700_v31 = vadd.f32 %v699_v25, %v611_v27 }
 0x16c   :  { %v859_v26 = vpop.f32.mrf.mxu2 }
 0x16d   :  { %v860_v33 = vadd.f32 %v3774_v29, %v859_v26  ;;  %v752_v36 = vmax.f32 %v700_v31, 0.0 }
 0x16f   :  { %v939_v40 = vmax.f32 %v860_v33, 0.0 }
 0x170   :  { %v612_v30 = vpop.f32.mrf.mxu0 }
 0x171   :  { %v613_v32 = vadd.f32 %v3721_v39, %v612_v30  ;;  %v701_v61 = vpop.f32.mrf.mxu1 }
 0x173   :  { %v702_v34 = vadd.f32 %v701_v61, %v613_v32 }
 0x174   :  { %v861_v9 = vpop.f32.mrf.mxu2 }
 0x175   :  { %v753_v37 = vmax.f32 %v702_v34, 0.0  ;;  %v862_v38 = vadd.f32 %v3774_v29, %v861_v9  ;;  %v3144_v9 = vld [vmem:[#allocation13 + $0x38] sm:$0xff] }
 0x176   :  { %1465 = vmatpush.bf16.msrb.mxu1 %v3144_v9 }
 0x177   :  { %v940_v41 = vmax.f32 %v862_v38, 0.0  ;;  %v775_v43 = vpack.c.bf16 %v753_v37, %v752_v36  ;;  %v3130_v37 = vld [vmem:[#allocation11 + $0x8] sm:$0xff] }
 0x178   :  { %v615_v46 = vpop.f32.mrf.mxu0  ;;  %1266 = vmatpush.bf16.msrb.mxu0 %v3130_v37 }
 0x179   :  { %v971_v47 = vpack.c.bf16 %v940_v41, %v939_v40  ;;  %v704_v48 = vpop.f32.mrf.mxu1  ;;  %903 = vmatmul.bf16.gmra.mxu2 %v775_v43  ;;  %v616_v50 = vadd.f32 %v3721_v39, %v615_v46 }
 0x17b   :  { %1063 = vmatmul.bf16.vlgmr.msrb.gmra.mxu3 %v971_v47  ;;  %v705_v52 = vadd.f32 %v704_v48, %v616_v50  ;;  %v3143_v50 = vld [vmem:[#allocation13 + $0x30] sm:$0xff] }
 0x17c   :  { %v864_v49 = vpop.f32.mrf.mxu2  ;;  %1466 = vmatpush.bf16.msrb.mxu1 %v3143_v50 }
 0x17d   :  { %v865_v56 = vadd.f32 %v3774_v29, %v864_v49  ;;  %v754_v58 = vmax.f32 %v705_v52, 0.0 }
 0x17f   :  { %v941_v60 = vmax.f32 %v865_v56, 0.0 }
 0x180   :  { %v617_v51 = vpop.f32.mrf.mxu0 }
 0x181   :  { %v618_v53 = vadd.f32 %v3721_v39, %v617_v51  ;;  %v706_v55 = vpop.f32.mrf.mxu1 }
 0x183   :  { %v707_v57 = vadd.f32 %v706_v55, %v618_v53 }
 0x184   :  { %v866_v16 = vpop.f32.mrf.mxu2 }
 0x185   :  { %v755_v28 = vmax.f32 %v707_v57, 0.0  ;;  %v867_v59 = vadd.f32 %v3774_v29, %v866_v16  ;;  %v3129_v57 = vld [vmem:[#allocation11] sm:$0xff] }
 0x186   :  { %1267 = vmatpush.bf16.msrb.mxu0 %v3129_v57 }
 0x187   :  { %v942_v62 = vmax.f32 %v867_v59, 0.0  ;;  %v776_v63 = vpack.c.bf16 %v755_v28, %v754_v58 }
 0x188   :  { %v620_v0 = vpop.f32.mrf.mxu0 }
 0x189   :  { %v709_v1 = vpop.f32.mrf.mxu1  ;;  %908 = vmatmul.bf16.gmra.mxu2 %v776_v63  ;;  %v972_v2 = vpack.c.bf16 %v942_v62, %v941_v60  ;;  %v621_v4 = vadd.f32 %v3721_v39, %v620_v0 }
 0x18b   :  { %1068 = vmatmul.bf16.gmra.mxu3 %v972_v2  ;;  %v710_v7 = vadd.f32 %v709_v1, %v621_v4 }
 0x18c   :  { %v869_v3 = vpop.f32.mrf.mxu2 }
 0x18d   :  { %v870_v10 = vadd.f32 %v3774_v29, %v869_v3  ;;  %v756_v12 = vmax.f32 %v710_v7, 0.0  ;;  %v3142_v3 = vld [vmem:[#allocation13 + $0x28] sm:$0xff] }
 0x18e   :  { %1467 = vmatpush.bf16.msrb.mxu1 %v3142_v3  ;;  %v3139_v3 = vld [vmem:[#allocation13 + $0x10] sm:$0xff] }
 0x18f   :  { %v943_v35 = vmax.f32 %v870_v10, 0.0 }
 0x190   :  { %v622_v6 = vpop.f32.mrf.mxu0 }
 0x191   :  { %v623_v8 = vadd.f32 %v3721_v39, %v622_v6  ;;  %v711_v42 = vpop.f32.mrf.mxu1 }
 0x193   :  { %v712_v11 = vadd.f32 %v711_v42, %v623_v8 }
 0x194   :  { %v871_v54 = vpop.f32.mrf.mxu2 }
 0x195   :  { %v757_v13 = vmax.f32 %v712_v11, 0.0  ;;  %v872_v14 = vadd.f32 %v3774_v29, %v871_v54 }
 0x197   :  { %v944_v15 = vmax.f32 %v872_v14, 0.0  ;;  %v777_v17 = vpack.c.bf16 %v757_v13, %v756_v12  ;;  %v3818_v14 = vld [vmem:[%s4139_s6] ss:$0 sm:$0xff] }
 0x199   :  { %913 = vmatmul.bf16.gmra.mxu2 %v777_v17  ;;  %v973_v45 = vpack.c.bf16 %v944_v15, %v943_v35  ;;  %v3141_v35 = vld [vmem:[#allocation13 + $0x20] sm:$0xff] }
 0x19a   :  { %1468 = vmatpush.bf16.msrb.mxu1 %v3141_v35 }
 0x19b   :  { %1073 = vmatmul.bf16.gmra.mxu3 %v973_v45 }
 0x19c   :  { %v874_v18 = vpop.f32.mrf.mxu2 }
 0x19d   :  { %v875_v19 = vadd.f32 %v3774_v29, %v874_v18 }
 0x19f   :  { %v945_v21 = vmax.f32 %v875_v19, 0.0 }
 0x1a4   :  { %v876_v39 = vpop.f32.mrf.mxu2 }
 0x1a5   :  { %v877_v20 = vadd.f32 %v3774_v29, %v876_v39 }
 0x1a7   :  { %v946_v22 = vmax.f32 %v877_v20, 0.0 }
 0x1a9   :  { %v974_v24 = vpack.c.bf16 %v946_v22, %v945_v21 }
 0x1ab   :  { %1078 = vmatmul.bf16.gmra.mxu3 %v974_v24 }
 0x1ac   :  { %v879_v25 = vpop.f32.mrf.mxu2 }
 0x1ad   :  { %v880_v27 = vadd.f32 %v3774_v29, %v879_v25 }
 0x1af   :  { %v947_v32 = vmax.f32 %v880_v27, 0.0 }
 0x1b0   :  { %v3789_v26 = vpop.f32.mrf.mxu3 }
 0x1b4   :  { %v881_v30 = vpop.f32.mrf.mxu2 }
 0x1b5   :  { %v882_v31 = vadd.f32 %v3774_v29, %v881_v30 }
 0x1b7   :  { %v948_v61 = vmax.f32 %v882_v31, 0.0 }
 0x1b8   :  { %v3793_v34 = vpop.f32.mrf.mxu3 }
 0x1b9   :  { %v975_v33 = vpack.c.bf16 %v948_v61, %v947_v32 }
 0x1bb   :  { %1083 = vmatmul.bf16.gmra.mxu3 %v975_v33 }
 0x1bc   :  { %v884_v36 = vpop.f32.mrf.mxu2 }
 0x1bd   :  { %v885_v38 = vadd.f32 %v3774_v29, %v884_v36 }
 0x1bf   :  { %v949_v44 = vmax.f32 %v885_v38, 0.0 }
 0x1c0   :  { %v3796_v40 = vpop.f32.mrf.mxu3 }
 0x1c4   :  { %v886_v41 = vpop.f32.mrf.mxu2 }
 0x1c5   :  { %v887_v43 = vadd.f32 %v3774_v29, %v886_v41 }
 0x1c7   :  { %v950_v46 = vmax.f32 %v887_v43, 0.0 }
 0x1c8   :  { %v3799_v49 = vpop.f32.mrf.mxu3 }
 0x1c9   :  { %v976_v47 = vpack.c.bf16 %v950_v46, %v949_v44  ;;  %v3140_v46 = vld [vmem:[#allocation13 + $0x18] sm:$0xff] }
 0x1ca   :  { %1469 = vmatpush.bf16.msrb.mxu1 %v3140_v46 }
 0x1cb   :  { %1088 = vmatmul.bf16.gmra.mxu3 %v976_v47 }
 0x1cc   :  { %v889_v48 = vpop.f32.mrf.mxu2 }
 0x1cd   :  { %v890_v51 = vadd.f32 %v3774_v29, %v889_v48 }
 0x1ce   :  { %1470 = vmatpush.bf16.msrb.mxu1 %v3139_v3 }
 0x1cf   :  { %v951_v55 = vmax.f32 %v890_v51, 0.0 }
 0x1d0   :  { %v3803_v16 = vpop.f32.mrf.mxu3 }
 0x1d4   :  { %v891_v52 = vpop.f32.mrf.mxu2 }
 0x1d5   :  { %v892_v53 = vadd.f32 %v3774_v29, %v891_v52 }
 0x1d7   :  { %v952_v56 = vmax.f32 %v892_v53, 0.0 }
 0x1d8   :  { %v3805_v59 = vpop.f32.mrf.mxu3 }
 0x1d9   :  { %v977_v58 = vpack.c.bf16 %v952_v56, %v951_v55 }
 0x1db   :  { %1093 = vmatmul.bf16.gmra.mxu3 %v977_v58 }
 0x1dc   :  { %v894_v28 = vpop.f32.mrf.mxu2 }
 0x1dd   :  { %v895_v60 = vadd.f32 %v3774_v29, %v894_v28 }
 0x1df   :  { %v953_v0 = vmax.f32 %v895_v60, 0.0 }
 0x1e0   :  { %v3809_v4 = vpop.f32.mrf.mxu3 }
 0x1e4   :  { %v896_v62 = vpop.f32.mrf.mxu2 }
 0x1e5   :  { %v897_v63 = vadd.f32 %v3774_v29, %v896_v62 }
 0x1e7   :  { %v954_v1 = vmax.f32 %v897_v63, 0.0 }
 0x1e8   :  { %v3813_v42 = vpop.f32.mrf.mxu3 }
 0x1e9   :  { %v978_v2 = vpack.c.bf16 %v954_v1, %v953_v0 }
 0x1eb   :  { %1098 = vmatmul.bf16.gmra.mxu3 %v978_v2  ;;  %v922_v2 = vadd.f32 %v3774_v29, %v3793_v34  ;;  %v927_v34 = vadd.f32 %v3774_v29, %v3799_v49 }
 0x1ec   :  { %v899_v5 = vpop.f32.mrf.mxu2 }
 0x1ed   :  { %v900_v6 = vadd.f32 %v3774_v29, %v899_v5  ;;  %v920_v5 = vadd.f32 %v3774_v29, %v3789_v26  ;;  %v925_v26 = vadd.f32 %v3774_v29, %v3796_v40  ;;  %v932_v40 = vadd.f32 %v3774_v29, %v3805_v59 }
 0x1ee   :  { %v937_v59 = vadd.f32 %v3774_v29, %v3813_v42 }
 0x1ef   :  { %v955_v10 = vmax.f32 %v900_v6, 0.0  ;;  %v964_v6 = vmax.f32 %v922_v2, 0.0 }
 0x1f0   :  { %v970_v46 = vmax.f32 %v937_v59, 0.0 }
 0x1f4   :  { %v901_v7 = vpop.f32.mrf.mxu2 }
 0x1f5   :  { %v902_v8 = vadd.f32 %v3774_v29, %v901_v7 }
 0x1f7   :  { %v956_v11 = vmax.f32 %v902_v8, 0.0 }
 0x1f9   :  { %v979_v54 = vpack.c.bf16 %v956_v11, %v955_v10  ;;  %v963_v10 = vmax.f32 %v920_v5, 0.0 }
 0x1fb   :  { %1103 = vmatmul.bf16.gmra.mxu3 %v979_v54 }
 0x1fc   :  { %v904_v12 = vpop.f32.mrf.mxu2 }
 0x1fd   :  { %v905_v15 = vadd.f32 %v3774_v29, %v904_v12 }
 0x1fe   :  { %v1064_v13 = vpop.f32.mrf.mxu3 }
 0x1ff   :  { %v1065_v45 = vadd.f32 %v3818_v14, %v1064_v13  ;;  %v957_v39 = vmax.f32 %v905_v15, 0.0  ;;  %v983_v13 = vpack.c.bf16 %v964_v6, %v963_v10  ;;  %v3149_v10 = vld [vmem:[#allocation14 + $0x20] sm:$0xff] }
 0x201   :  { %v1144_v22 = vmax.f32 %v1065_v45, 0.0  ;;  %v966_v45 = vmax.f32 %v927_v34, 0.0 }
 0x204   :  { %v906_v17 = vpop.f32.mrf.mxu2 }
 0x205   :  { %v907_v18 = vadd.f32 %v3774_v29, %v906_v17  ;;  %v3152_v17 = vld [vmem:[#allocation14 + $0x38] sm:$0xff] }
 0x206   :  { %v1066_v19 = vpop.f32.mrf.mxu3  ;;  %1670 = vmatpush.bf16.msrb.mxu2 %v3152_v17 }
 0x207   :  { %v958_v20 = vmax.f32 %v907_v18, 0.0  ;;  %v1067_v21 = vadd.f32 %v3818_v14, %v1066_v19 }
 0x209   :  { %v1145_v23 = vmax.f32 %v1067_v21, 0.0  ;;  %v980_v24 = vpack.c.bf16 %v958_v20, %v957_v39  ;;  %v965_v39 = vmax.f32 %v925_v26, 0.0 }
 0x20b   :  { %v1176_v25 = vpack.c.bf16 %v1145_v23, %v1144_v22  ;;  %1108 = vmatmul.bf16.gmra.mxu3 %v980_v24  ;;  %v984_v23 = vpack.c.bf16 %v966_v45, %v965_v39  ;;  %v3138_v24 = vld [vmem:[#allocation13 + $0x8] sm:$0xff]  ;;  %v3160_v39 = vld [vmem:[#allocation16 + $0x38] sm:$0xff] }
 0x20c   :  { %v909_v27 = vpop.f32.mrf.mxu2  ;;  %1471 = vmatpush.bf16.msrb.mxu1 %v3138_v24  ;;  %1875 = vmatpush.bf16.msra.mxu3 %v3160_v39 }
 0x20d   :  { %1268 = vmatmul.bf16.vlgmr.msrb.gmra.mxu0 %v1176_v25  ;;  %v910_v31 = vadd.f32 %v3774_v29, %v909_v27  ;;  %v930_v27 = vadd.f32 %v3774_v29, %v3803_v16  ;;  %v3137_v16 = vld [vmem:[#allocation13] sm:$0xff] }
 0x20e   :  { %v1069_v30 = vpop.f32.mrf.mxu3 }
 0x20f   :  { %v1070_v61 = vadd.f32 %v3818_v14, %v1069_v30  ;;  %v959_v36 = vmax.f32 %v910_v31, 0.0  ;;  %v968_v30 = vmax.f32 %v932_v40, 0.0 }
 0x210   :  { %1472 = vmatpush.bf16.msrb.mxu1 %v3137_v16 }
 0x211   :  { %v1146_v41 = vmax.f32 %v1070_v61, 0.0  ;;  %v967_v61 = vmax.f32 %v930_v27, 0.0 }
 0x214   :  { %v911_v32 = vpop.f32.mrf.mxu2 }
 0x215   :  { %v912_v33 = vadd.f32 %v3774_v29, %v911_v32 }
 0x216   :  { %v1071_v9 = vpop.f32.mrf.mxu3 }
 0x217   :  { %v960_v37 = vmax.f32 %v912_v33, 0.0  ;;  %v1072_v38 = vadd.f32 %v3818_v14, %v1071_v9 }
 0x219   :  { %v1147_v43 = vmax.f32 %v1072_v38, 0.0  ;;  %v981_v44 = vpack.c.bf16 %v960_v37, %v959_v36  ;;  %v985_v37 = vpack.c.bf16 %v968_v30, %v967_v61  ;;  %v3148_v30 = vld [vmem:[#allocation14 + $0x18] sm:$0xff] }
 0x21b   :  { %1113 = vmatmul.bf16.gmra.mxu3 %v981_v44  ;;  %v1177_v47 = vpack.c.bf16 %v1147_v43, %v1146_v41  ;;  %v3151_v41 = vld [vmem:[#allocation14 + $0x30] sm:$0xff]  ;;  %v935_v44 = vadd.f32 %v3774_v29, %v3809_v4  ;;  %v3150_v4 = vld [vmem:[#allocation14 + $0x28] sm:$0xff] }
 0x21c   :  { %v914_v48 = vpop.f32.mrf.mxu2  ;;  %1671 = vmatpush.bf16.msrb.mxu2 %v3151_v41 }
 0x21d   :  { %1273 = vmatmul.bf16.gmra.mxu0 %v1177_v47  ;;  %v915_v51 = vadd.f32 %v3774_v29, %v914_v48 }
 0x21e   :  { %v1074_v50 = vpop.f32.mrf.mxu3 }
 0x21f   :  { %v1075_v53 = vadd.f32 %v3818_v14, %v1074_v50  ;;  %v961_v57 = vmax.f32 %v915_v51, 0.0  ;;  %v969_v50 = vmax.f32 %v935_v44, 0.0 }
 0x220   :  { %1672 = vmatpush.bf16.msrb.mxu2 %v3150_v4 }
 0x221   :  { %v1148_v60 = vmax.f32 %v1075_v53, 0.0 }
 0x224   :  { %v916_v52 = vpop.f32.mrf.mxu2  ;;  %1673 = vmatpush.bf16.msrb.mxu2 %v3149_v10 }
 0x225   :  { %v917_v55 = vadd.f32 %v3774_v29, %v916_v52 }
 0x226   :  { %v1076_v56 = vpop.f32.mrf.mxu3 }
 0x227   :  { %v962_v58 = vmax.f32 %v917_v55, 0.0  ;;  %v1077_v28 = vadd.f32 %v3818_v14, %v1076_v56  ;;  %v986_v55 = vpack.c.bf16 %v970_v46, %v969_v50 }
 0x228   :  { %1674 = vmatpush.bf16.msrb.mxu2 %v3148_v30 }
 0x229   :  { %v1149_v62 = vmax.f32 %v1077_v28, 0.0  ;;  %v982_v63 = vpack.c.bf16 %v962_v58, %v961_v57 }
 0x22b   :  { %1118 = vmatmul.bf16.gmra.mxu3 %v982_v63  ;;  %v1178_v0 = vpack.c.bf16 %v1149_v62, %v1148_v60 }
 0x22d   :  { %1278 = vmatmul.bf16.gmra.mxu0 %v1178_v0 }
 0x22e   :  { %v1079_v1 = vpop.f32.mrf.mxu3 }
 0x22f   :  { %v1080_v7 = vadd.f32 %v3818_v14, %v1079_v1 }
 0x231   :  { %v1150_v54 = vmax.f32 %v1080_v7, 0.0 }
 0x236   :  { %v1081_v8 = vpop.f32.mrf.mxu3 }
 0x237   :  { %v1082_v11 = vadd.f32 %v3818_v14, %v1081_v8  ;;  %v3863_v8 = vld [vmem:[%s4141_s8] ss:$0 sm:$0xff] }
 0x239   :  { %v1151_v12 = vmax.f32 %v1082_v11, 0.0 }
 0x23b   :  { %1123 = vmatmul.bf16.gmra.mxu3 %v983_v13  ;;  %v1179_v35 = vpack.c.bf16 %v1151_v12, %v1150_v54 }
 0x23d   :  { %1283 = vmatmul.bf16.gmra.mxu0 %v1179_v35 }
 0x23e   :  { %v1084_v15 = vpop.f32.mrf.mxu3 }
 0x23f   :  { %v1085_v18 = vadd.f32 %v3818_v14, %v1084_v15 }
 0x241   :  { %v1152_v21 = vmax.f32 %v1085_v18, 0.0 }
 0x246   :  { %v1086_v19 = vpop.f32.mrf.mxu3 }
 0x247   :  { %v1087_v20 = vadd.f32 %v3818_v14, %v1086_v19 }
 0x249   :  { %v1153_v22 = vmax.f32 %v1087_v20, 0.0 }
 0x24b   :  { %1128 = vmatmul.bf16.gmra.mxu3 %v984_v23  ;;  %v1180_v25 = vpack.c.bf16 %v1153_v22, %v1152_v21 }
 0x24d   :  { %1288 = vmatmul.bf16.gmra.mxu0 %v1180_v25 }
 0x24e   :  { %v1089_v49 = vpop.f32.mrf.mxu3 }
 0x24f   :  { %v1090_v31 = vadd.f32 %v3818_v14, %v1089_v49 }
 0x251   :  { %v1154_v9 = vmax.f32 %v1090_v31, 0.0 }
 0x256   :  { %v1091_v32 = vpop.f32.mrf.mxu3 }
 0x257   :  { %v1092_v33 = vadd.f32 %v3818_v14, %v1091_v32 }
 0x259   :  { %v1155_v36 = vmax.f32 %v1092_v33, 0.0 }
 0x25b   :  { %1133 = vmatmul.bf16.gmra.mxu3 %v985_v37  ;;  %v1181_v38 = vpack.c.bf16 %v1155_v36, %v1154_v9 }
 0x25d   :  { %1293 = vmatmul.bf16.gmra.mxu0 %v1181_v38 }
 0x25e   :  { %v1094_v43 = vpop.f32.mrf.mxu3 }
 0x25f   :  { %v1095_v47 = vadd.f32 %v3818_v14, %v1094_v43 }
 0x261   :  { %v1156_v52 = vmax.f32 %v1095_v47, 0.0 }
 0x266   :  { %v1096_v48 = vpop.f32.mrf.mxu3 }
 0x267   :  { %v1097_v51 = vadd.f32 %v3818_v14, %v1096_v48 }
 0x269   :  { %v1157_v53 = vmax.f32 %v1097_v51, 0.0 }
 0x26b   :  { %1138 = vmatmul.bf16.gmra.mxu3 %v986_v55  ;;  %v1182_v56 = vpack.c.bf16 %v1157_v53, %v1156_v52  ;;  %v3159_v53 = vld [vmem:[#allocation16 + $0x30] sm:$0xff] }
 0x26c   :  { %1876 = vmatpush.bf16.msra.mxu3 %v3159_v53 }
 0x26d   :  { %1298 = vmatmul.bf16.gmra.mxu0 %v1182_v56 }
 0x26e   :  { %v1099_v57 = vpop.f32.mrf.mxu3 }
 0x26f   :  { %v1100_v42 = vadd.f32 %v3818_v14, %v1099_v57  ;;  %v3147_v57 = vld [vmem:[#allocation14 + $0x10] sm:$0xff] }
 0x270   :  { %1675 = vmatpush.bf16.msrb.mxu2 %v3147_v57 }
 0x271   :  { %v1158_v28 = vmax.f32 %v1100_v42, 0.0 }
 0x276   :  { %v1101_v58 = vpop.f32.mrf.mxu3 }
 0x277   :  { %v1102_v29 = vadd.f32 %v3818_v14, %v1101_v58 }
 0x279   :  { %v1159_v60 = vmax.f32 %v1102_v29, 0.0 }
 0x27b   :  { %v1183_v62 = vpack.c.bf16 %v1159_v60, %v1158_v28 }
 0x27d   :  { %1303 = vmatmul.bf16.gmra.mxu0 %v1183_v62 }
 0x27e   :  { %v1104_v63 = vpop.f32.mrf.mxu3 }
 0x27f   :  { %v1105_v0 = vadd.f32 %v3818_v14, %v1104_v63 }
 0x281   :  { %v1160_v3 = vmax.f32 %v1105_v0, 0.0 }
 0x286   :  { %v1106_v1 = vpop.f32.mrf.mxu3 }
 0x287   :  { %v1107_v2 = vadd.f32 %v3818_v14, %v1106_v1 }
 0x289   :  { %v1161_v5 = vmax.f32 %v1107_v2, 0.0 }
 0x28a   :  { %v1269_v6 = vpop.f32.mrf.mxu0 }
 0x28b   :  { %v1184_v7 = vpack.c.bf16 %v1161_v5, %v1160_v3  ;;  %v1270_v54 = vadd.f32 %v3863_v8, %v1269_v6 }
 0x28d   :  { %1308 = vmatmul.bf16.gmra.mxu0 %v1184_v7  ;;  %v1349_v35 = vmax.f32 %v1270_v54, 0.0 }
 0x28e   :  { %v1109_v11 = vpop.f32.mrf.mxu3 }
 0x28f   :  { %v1110_v15 = vadd.f32 %v3818_v14, %v1109_v11 }
 0x291   :  { %v1162_v18 = vmax.f32 %v1110_v15, 0.0  ;;  %v3146_v15 = vld [vmem:[#allocation14 + $0x8] sm:$0xff] }
 0x292   :  { %v1271_v12 = vpop.f32.mrf.mxu0  ;;  %1676 = vmatpush.bf16.msrb.mxu2 %v3146_v15 }
 0x293   :  { %v1272_v13 = vadd.f32 %v3863_v8, %v1271_v12 }
 0x295   :  { %v1350_v34 = vmax.f32 %v1272_v13, 0.0 }
 0x296   :  { %v1111_v17 = vpop.f32.mrf.mxu3 }
 0x297   :  { %v1381_v26 = vpack.c.bf16 %v1350_v34, %v1349_v35  ;;  %v1112_v45 = vadd.f32 %v3818_v14, %v1111_v17 }
 0x299   :  { %v1163_v19 = vmax.f32 %v1112_v45, 0.0  ;;  %1473 = vmatmul.bf16.vlgmr.msrb.gmra.mxu1 %v1381_v26 }
 0x29a   :  { %v1274_v20 = vpop.f32.mrf.mxu0 }
 0x29b   :  { %v1185_v21 = vpack.c.bf16 %v1163_v19, %v1162_v18  ;;  %v1275_v23 = vadd.f32 %v3863_v8, %v1274_v20  ;;  %v3158_v19 = vld [vmem:[#allocation16 + $0x28] sm:$0xff] }
 0x29c   :  { %1877 = vmatpush.bf16.msra.mxu3 %v3158_v19  ;;  %v3168_v19 = vld [vmem:[#allocation17 + $0x38] sm:$0xff] }
 0x29d   :  { %1313 = vmatmul.bf16.gmra.mxu0 %v1185_v21  ;;  %v1351_v49 = vmax.f32 %v1275_v23, 0.0 }
 0x29e   :  { %v1114_v22 = vpop.f32.mrf.mxu3  ;;  %2080 = vmatpush.bf16.msra.mxu0 %v3168_v19 }
 0x29f   :  { %v1115_v40 = vadd.f32 %v3818_v14, %v1114_v22 }
 0x2a1   :  { %v1164_v33 = vmax.f32 %v1115_v40, 0.0 }
 0x2a2   :  { %v1276_v24 = vpop.f32.mrf.mxu0 }
 0x2a3   :  { %v1277_v25 = vadd.f32 %v3863_v8, %v1276_v24 }
 0x2a5   :  { %v1352_v27 = vmax.f32 %v1277_v25, 0.0 }
 0x2a6   :  { %v1116_v31 = vpop.f32.mrf.mxu3 }
 0x2a7   :  { %v1117_v32 = vadd.f32 %v3818_v14, %v1116_v31  ;;  %v1382_v61 = vpack.c.bf16 %v1352_v27, %v1351_v49 }
 0x2a9   :  { %v1165_v9 = vmax.f32 %v1117_v32, 0.0  ;;  %1478 = vmatmul.bf16.gmra.mxu1 %v1382_v61 }
 0x2aa   :  { %v1279_v36 = vpop.f32.mrf.mxu0 }
 0x2ab   :  { %v1186_v37 = vpack.c.bf16 %v1165_v9, %v1164_v33  ;;  %v1280_v41 = vadd.f32 %v3863_v8, %v1279_v36  ;;  %v3145_v36 = vld [vmem:[#allocation14] sm:$0xff] }
 0x2ac   :  { %1677 = vmatpush.bf16.msrb.mxu2 %v3145_v36 }
 0x2ad   :  { %1318 = vmatmul.bf16.gmra.mxu0 %v1186_v37  ;;  %v1353_v16 = vmax.f32 %v1280_v41, 0.0 }
 0x2ae   :  { %v1119_v38 = vpop.f32.mrf.mxu3 }
 0x2af   :  { %v1120_v44 = vadd.f32 %v3818_v14, %v1119_v38 }
 0x2b1   :  { %v1166_v51 = vmax.f32 %v1120_v44, 0.0 }
 0x2b2   :  { %v1281_v43 = vpop.f32.mrf.mxu0 }
 0x2b3   :  { %v1282_v59 = vadd.f32 %v3863_v8, %v1281_v43 }
 0x2b5   :  { %v1354_v46 = vmax.f32 %v1282_v59, 0.0 }
 0x2b6   :  { %v1121_v47 = vpop.f32.mrf.mxu3 }
 0x2b7   :  { %v1122_v48 = vadd.f32 %v3818_v14, %v1121_v47  ;;  %v1383_v50 = vpack.c.bf16 %v1354_v46, %v1353_v16 }
 0x2b9   :  { %v1167_v52 = vmax.f32 %v1122_v48, 0.0  ;;  %1483 = vmatmul.bf16.gmra.mxu1 %v1383_v50 }
 0x2ba   :  { %v1284_v55 = vpop.f32.mrf.mxu0 }
 0x2bb   :  { %v1187_v56 = vpack.c.bf16 %v1167_v52, %v1166_v51  ;;  %v1285_v58 = vadd.f32 %v3863_v8, %v1284_v55  ;;  %v3157_v52 = vld [vmem:[#allocation16 + $0x20] sm:$0xff] }
 0x2bc   :  { %1878 = vmatpush.bf16.msra.mxu3 %v3157_v52  ;;  %v3167_v52 = vld [vmem:[#allocation17 + $0x30] sm:$0xff] }
 0x2bd   :  { %1323 = vmatmul.bf16.gmra.mxu0 %v1187_v56  ;;  %v1355_v28 = vmax.f32 %v1285_v58, 0.0 }
 0x2be   :  { %v1124_v42 = vpop.f32.mrf.mxu3  ;;  %2081 = vmatpush.bf16.msra.mxu0 %v3167_v52 }
 0x2bf   :  { %v1125_v60 = vadd.f32 %v3818_v14, %v1124_v42 }
 0x2c1   :  { %v1168_v2 = vmax.f32 %v1125_v60, 0.0 }
 0x2c2   :  { %v1286_v29 = vpop.f32.mrf.mxu0 }
 0x2c3   :  { %v1287_v4 = vadd.f32 %v3863_v8, %v1286_v29 }
 0x2c5   :  { %v1356_v62 = vmax.f32 %v1287_v4, 0.0 }
 0x2c6   :  { %v1126_v63 = vpop.f32.mrf.mxu3 }
 0x2c7   :  { %v1127_v0 = vadd.f32 %v3818_v14, %v1126_v63  ;;  %v1384_v1 = vpack.c.bf16 %v1356_v62, %v1355_v28 }
 0x2c9   :  { %v1169_v3 = vmax.f32 %v1127_v0, 0.0  ;;  %1488 = vmatmul.bf16.gmra.mxu1 %v1384_v1 }
 0x2ca   :  { %v1289_v5 = vpop.f32.mrf.mxu0 }
 0x2cb   :  { %v1188_v6 = vpack.c.bf16 %v1169_v3, %v1168_v2  ;;  %v1290_v10 = vadd.f32 %v3863_v8, %v1289_v5  ;;  %v3900_v3 = vld [vmem:[%s4143_s10] ss:$0 sm:$0xff] }
 0x2cc   :  { %v3156_v5 = vld [vmem:[#allocation16 + $0x18] sm:$0xff] }
 0x2cd   :  { %1328 = vmatmul.bf16.gmra.mxu0 %v1188_v6  ;;  %v1357_v12 = vmax.f32 %v1290_v10, 0.0  ;;  %1879 = vmatpush.bf16.msra.mxu3 %v3156_v5 }
 0x2ce   :  { %v1129_v7 = vpop.f32.mrf.mxu3 }
 0x2cf   :  { %v1130_v13 = vadd.f32 %v3818_v14, %v1129_v7 }
 0x2d1   :  { %v1170_v45 = vmax.f32 %v1130_v13, 0.0 }
 0x2d2   :  { %v1291_v11 = vpop.f32.mrf.mxu0 }
 0x2d3   :  { %v1292_v54 = vadd.f32 %v3863_v8, %v1291_v11 }
 0x2d5   :  { %v1358_v35 = vmax.f32 %v1292_v54, 0.0 }
 0x2d6   :  { %v1131_v34 = vpop.f32.mrf.mxu3 }
 0x2d7   :  { %v1132_v17 = vadd.f32 %v3818_v14, %v1131_v34  ;;  %v1385_v26 = vpack.c.bf16 %v1358_v35, %v1357_v12 }
 0x2d9   :  { %v1171_v18 = vmax.f32 %v1132_v17, 0.0  ;;  %1493 = vmatmul.bf16.gmra.mxu1 %v1385_v26 }
 0x2da   :  { %v1294_v39 = vpop.f32.mrf.mxu0 }
 0x2db   :  { %v1189_v20 = vpack.c.bf16 %v1171_v18, %v1170_v45  ;;  %v1295_v22 = vadd.f32 %v3863_v8, %v1294_v39 }
 0x2dd   :  { %1333 = vmatmul.bf16.gmra.mxu0 %v1189_v20  ;;  %v1359_v25 = vmax.f32 %v1295_v22, 0.0 }
 0x2de   :  { %v1134_v21 = vpop.f32.mrf.mxu3 }
 0x2df   :  { %v1135_v49 = vadd.f32 %v3818_v14, %v1134_v21 }
 0x2e1   :  { %v1172_v32 = vmax.f32 %v1135_v49, 0.0 }
 0x2e2   :  { %v1296_v23 = vpop.f32.mrf.mxu0 }
 0x2e3   :  { %v1297_v24 = vadd.f32 %v3863_v8, %v1296_v23 }
 0x2e5   :  { %v1360_v40 = vmax.f32 %v1297_v24, 0.0 }
 0x2e6   :  { %v1136_v27 = vpop.f32.mrf.mxu3 }
 0x2e7   :  { %v1137_v30 = vadd.f32 %v3818_v14, %v1136_v27  ;;  %v1386_v31 = vpack.c.bf16 %v1360_v40, %v1359_v25 }
 0x2e9   :  { %v1173_v61 = vmax.f32 %v1137_v30, 0.0  ;;  %1498 = vmatmul.bf16.gmra.mxu1 %v1386_v31 }
 0x2ea   :  { %v1299_v33 = vpop.f32.mrf.mxu0 }
 0x2eb   :  { %v1190_v9 = vpack.c.bf16 %v1173_v61, %v1172_v32  ;;  %v1300_v38 = vadd.f32 %v3863_v8, %v1299_v33  ;;  %v3155_v33 = vld [vmem:[#allocation16 + $0x10] sm:$0xff] }
 0x2ec   :  { %1880 = vmatpush.bf16.msra.mxu3 %v3155_v33 }
 0x2ed   :  { %1338 = vmatmul.bf16.gmra.mxu0 %v1190_v9  ;;  %v1361_v59 = vmax.f32 %v1300_v38, 0.0 }
 0x2ee   :  { %v1139_v37 = vpop.f32.mrf.mxu3 }
 0x2ef   :  { %v1140_v16 = vadd.f32 %v3818_v14, %v1139_v37 }
 0x2f1   :  { %v1174_v50 = vmax.f32 %v1140_v16, 0.0 }
 0x2f2   :  { %v1301_v41 = vpop.f32.mrf.mxu0 }
 0x2f3   :  { %v1302_v43 = vadd.f32 %v3863_v8, %v1301_v41 }
 0x2f5   :  { %v1362_v44 = vmax.f32 %v1302_v43, 0.0 }
 0x2f6   :  { %v1141_v46 = vpop.f32.mrf.mxu3 }
 0x2f7   :  { %v1142_v47 = vadd.f32 %v3818_v14, %v1141_v46  ;;  %v1387_v48 = vpack.c.bf16 %v1362_v44, %v1361_v59 }
 0x2f9   :  { %v1175_v51 = vmax.f32 %v1142_v47, 0.0  ;;  %1503 = vmatmul.bf16.gmra.mxu1 %v1387_v48 }
 0x2fa   :  { %v1304_v53 = vpop.f32.mrf.mxu0 }
 0x2fb   :  { %v1191_v55 = vpack.c.bf16 %v1175_v51, %v1174_v50  ;;  %v1305_v56 = vadd.f32 %v3863_v8, %v1304_v53 }
 0x2fd   :  { %1343 = vmatmul.bf16.gmra.mxu0 %v1191_v55  ;;  %v1363_v58 = vmax.f32 %v1305_v56, 0.0 }
 0x302   :  { %v1306_v57 = vpop.f32.mrf.mxu0 }
 0x303   :  { %v1307_v42 = vadd.f32 %v3863_v8, %v1306_v57 }
 0x305   :  { %v1364_v29 = vmax.f32 %v1307_v42, 0.0 }
 0x307   :  { %v1388_v4 = vpack.c.bf16 %v1364_v29, %v1363_v58 }
 0x309   :  { %1508 = vmatmul.bf16.gmra.mxu1 %v1388_v4 }
 0x30a   :  { %v1309_v28 = vpop.f32.mrf.mxu0 }
 0x30b   :  { %v1310_v14 = vadd.f32 %v3863_v8, %v1309_v28 }
 0x30d   :  { %v1365_v63 = vmax.f32 %v1310_v14, 0.0 }
 0x312   :  { %v1311_v60 = vpop.f32.mrf.mxu0 }
 0x313   :  { %v1312_v62 = vadd.f32 %v3863_v8, %v1311_v60 }
 0x315   :  { %v1366_v0 = vmax.f32 %v1312_v62, 0.0 }
 0x316   :  { %v1474_v1 = vpop.f32.mrf.mxu1 }
 0x317   :  { %v1389_v2 = vpack.c.bf16 %v1366_v0, %v1365_v63  ;;  %v1475_v7 = vadd.f32 %v3900_v3, %v1474_v1  ;;  %v3154_v1 = vld [vmem:[#allocation16 + $0x8] sm:$0xff] }
 0x318   :  { %1881 = vmatpush.bf16.msra.mxu3 %v3154_v1 }
 0x319   :  { %1513 = vmatmul.bf16.gmra.mxu1 %v1389_v2  ;;  %v1554_v54 = vmax.f32 %v1475_v7, 0.0 }
 0x31a   :  { %v1314_v6 = vpop.f32.mrf.mxu0 }
 0x31b   :  { %v1315_v12 = vadd.f32 %v3863_v8, %v1314_v6 }
 0x31d   :  { %v1367_v17 = vmax.f32 %v1315_v12, 0.0 }
 0x31e   :  { %v1476_v10 = vpop.f32.mrf.mxu1 }
 0x31f   :  { %v1477_v11 = vadd.f32 %v3900_v3, %v1476_v10 }
 0x321   :  { %v1555_v13 = vmax.f32 %v1477_v11, 0.0 }
 0x322   :  { %v1316_v35 = vpop.f32.mrf.mxu0 }
 0x323   :  { %v1586_v15 = vpack.c.bf16 %v1555_v13, %v1554_v54  ;;  %v1317_v34 = vadd.f32 %v3863_v8, %v1316_v35 }
 0x325   :  { %v1368_v26 = vmax.f32 %v1317_v34, 0.0  ;;  %1678 = vmatmul.bf16.vlgmr.msrb.gmra.mxu2 %v1586_v15 }
 0x326   :  { %v1479_v45 = vpop.f32.mrf.mxu1 }
 0x327   :  { %v1390_v18 = vpack.c.bf16 %v1368_v26, %v1367_v17  ;;  %v1480_v20 = vadd.f32 %v3900_v3, %v1479_v45  ;;  %v3166_v45 = vld [vmem:[#allocation17 + $0x28] sm:$0xff] }
 0x328   :  { %2082 = vmatpush.bf16.msra.mxu0 %v3166_v45 }
 0x329   :  { %1518 = vmatmul.bf16.gmra.mxu1 %v1390_v18  ;;  %v1556_v23 = vmax.f32 %v1480_v20, 0.0 }
 0x32a   :  { %v1319_v39 = vpop.f32.mrf.mxu0 }
 0x32b   :  { %v1320_v24 = vadd.f32 %v3863_v8, %v1319_v39 }
 0x32d   :  { %v1369_v30 = vmax.f32 %v1320_v24, 0.0 }
 0x32e   :  { %v1481_v21 = vpop.f32.mrf.mxu1 }
 0x32f   :  { %v1482_v22 = vadd.f32 %v3900_v3, %v1481_v21 }
 0x331   :  { %v1557_v25 = vmax.f32 %v1482_v22, 0.0 }
 0x332   :  { %v1321_v49 = vpop.f32.mrf.mxu0 }
 0x333   :  { %v1322_v40 = vadd.f32 %v3863_v8, %v1321_v49  ;;  %v1587_v27 = vpack.c.bf16 %v1557_v25, %v1556_v23 }
 0x335   :  { %v1370_v31 = vmax.f32 %v1322_v40, 0.0  ;;  %1683 = vmatmul.bf16.gmra.mxu2 %v1587_v27 }
 0x336   :  { %v1484_v32 = vpop.f32.mrf.mxu1 }
 0x337   :  { %v1391_v61 = vpack.c.bf16 %v1370_v31, %v1369_v30  ;;  %v1485_v36 = vadd.f32 %v3900_v3, %v1484_v32  ;;  %v3153_v32 = vld [vmem:[#allocation16] sm:$0xff] }
 0x338   :  { %1882 = vmatpush.bf16.msra.mxu3 %v3153_v32 }
 0x339   :  { %1523 = vmatmul.bf16.gmra.mxu1 %v1391_v61  ;;  %v1558_v41 = vmax.f32 %v1485_v36, 0.0 }
 0x33a   :  { %v1324_v9 = vpop.f32.mrf.mxu0 }
 0x33b   :  { %v1325_v43 = vadd.f32 %v3863_v8, %v1324_v9 }
 0x33d   :  { %v1371_v47 = vmax.f32 %v1325_v43, 0.0 }
 0x33e   :  { %v1486_v37 = vpop.f32.mrf.mxu1 }
 0x33f   :  { %v1487_v38 = vadd.f32 %v3900_v3, %v1486_v37 }
 0x341   :  { %v1559_v59 = vmax.f32 %v1487_v38, 0.0 }
 0x342   :  { %v1326_v16 = vpop.f32.mrf.mxu0 }
 0x343   :  { %v1327_v44 = vadd.f32 %v3863_v8, %v1326_v16  ;;  %v1588_v46 = vpack.c.bf16 %v1559_v59, %v1558_v41 }
 0x345   :  { %v1372_v48 = vmax.f32 %v1327_v44, 0.0  ;;  %1688 = vmatmul.bf16.gmra.mxu2 %v1588_v46 }
 0x346   :  { %v1489_v50 = vpop.f32.mrf.mxu1 }
 0x347   :  { %v1392_v51 = vpack.c.bf16 %v1372_v48, %v1371_v47  ;;  %v1490_v55 = vadd.f32 %v3900_v3, %v1489_v50  ;;  %v3165_v50 = vld [vmem:[#allocation17 + $0x20] sm:$0xff] }
 0x348   :  { %2083 = vmatpush.bf16.msra.mxu0 %v3165_v50 }
 0x349   :  { %1528 = vmatmul.bf16.gmra.mxu1 %v1392_v51  ;;  %v1560_v42 = vmax.f32 %v1490_v55, 0.0 }
 0x34a   :  { %v1329_v53 = vpop.f32.mrf.mxu0 }
 0x34b   :  { %v1330_v58 = vadd.f32 %v3863_v8, %v1329_v53 }
 0x34d   :  { %v1373_v60 = vmax.f32 %v1330_v58, 0.0 }
 0x34e   :  { %v1491_v56 = vpop.f32.mrf.mxu1 }
 0x34f   :  { %v1492_v57 = vadd.f32 %v3900_v3, %v1491_v56 }
 0x351   :  { %v1561_v29 = vmax.f32 %v1492_v57, 0.0 }
 0x352   :  { %v1331_v4 = vpop.f32.mrf.mxu0 }
 0x353   :  { %v1332_v28 = vadd.f32 %v3863_v8, %v1331_v4  ;;  %v1589_v14 = vpack.c.bf16 %v1561_v29, %v1560_v42 }
 0x355   :  { %v1374_v62 = vmax.f32 %v1332_v28, 0.0  ;;  %1693 = vmatmul.bf16.gmra.mxu2 %v1589_v14 }
 0x356   :  { %v1494_v63 = vpop.f32.mrf.mxu1 }
 0x357   :  { %v1393_v0 = vpack.c.bf16 %v1374_v62, %v1373_v60  ;;  %v1495_v5 = vadd.f32 %v3900_v3, %v1494_v63  ;;  %v3937_v63 = vld [vmem:[%s4145_s12] ss:$0 sm:$0xff] }
 0x359   :  { %1533 = vmatmul.bf16.gmra.mxu1 %v1393_v0  ;;  %v1562_v10 = vmax.f32 %v1495_v5, 0.0  ;;  %v3164_v0 = vld [vmem:[#allocation17 + $0x18] sm:$0xff] }
 0x35a   :  { %v1334_v2 = vpop.f32.mrf.mxu0  ;;  %2084 = vmatpush.bf16.msra.mxu0 %v3164_v0 }
 0x35b   :  { %v1335_v11 = vadd.f32 %v3863_v8, %v1334_v2 }
 0x35d   :  { %v1375_v15 = vmax.f32 %v1335_v11, 0.0 }
 0x35e   :  { %v1496_v6 = vpop.f32.mrf.mxu1 }
 0x35f   :  { %v1497_v7 = vadd.f32 %v3900_v3, %v1496_v6 }
 0x361   :  { %v1563_v54 = vmax.f32 %v1497_v7, 0.0 }
 0x362   :  { %v1336_v12 = vpop.f32.mrf.mxu0 }
 0x363   :  { %v1337_v13 = vadd.f32 %v3863_v8, %v1336_v12  ;;  %v1590_v35 = vpack.c.bf16 %v1563_v54, %v1562_v10 }
 0x365   :  { %v1376_v34 = vmax.f32 %v1337_v13, 0.0  ;;  %1698 = vmatmul.bf16.gmra.mxu2 %v1590_v35 }
 0x366   :  { %v1499_v17 = vpop.f32.mrf.mxu1 }
 0x367   :  { %v1394_v26 = vpack.c.bf16 %v1376_v34, %v1375_v15  ;;  %v1500_v19 = vadd.f32 %v3900_v3, %v1499_v17  ;;  %v3183_v34 = vld [vmem:[#allocation19 + $0x74] sm:$0xf]  ;;  %v3061_v17 = vld [vmem:[#allocation19 + $0x78] sm:$0xf0] }
 0x368   :  { %v3064_v45 = vor.u32 %v3183_v34, %v3061_v17 }
 0x369   :  { %1538 = vmatmul.bf16.gmra.mxu1 %v1394_v26  ;;  %v1564_v21 = vmax.f32 %v1500_v19, 0.0  ;;  %v3059_v19 = vld [vmem:[#allocation19 + $0x70] sm:$0xf] }
 0x36a   :  { %v1339_v18 = vpop.f32.mrf.mxu0  ;;  %2408 = vmatpush.bf16.msra.mxu2 %v3064_v45 }
 0x36b   :  { %v1340_v22 = vadd.f32 %v3863_v8, %v1339_v18 }
 0x36d   :  { %v1377_v40 = vmax.f32 %v1340_v22, 0.0 }
 0x36e   :  { %v1501_v39 = vpop.f32.mrf.mxu1 }
 0x36f   :  { %v1502_v20 = vadd.f32 %v3900_v3, %v1501_v39  ;;  %v3184_v39 = vld [vmem:[#allocation19 + $0x74] sm:$0xf0] }
 0x371   :  { %v1565_v23 = vmax.f32 %v1502_v20, 0.0  ;;  %v3060_v20 = vor.u32 %v3184_v39, %v3059_v19 }
 0x372   :  { %v1341_v24 = vpop.f32.mrf.mxu0 }
 0x373   :  { %v1342_v25 = vadd.f32 %v3863_v8, %v1341_v24  ;;  %v1591_v49 = vpack.c.bf16 %v1565_v23, %v1564_v21  ;;  %2319 = vmatpush.bf16.msra.mxu1 %v3060_v20 }
 0x375   :  { %v1378_v27 = vmax.f32 %v1342_v25, 0.0  ;;  %1703 = vmatmul.bf16.gmra.mxu2 %v1591_v49 }
 0x376   :  { %v1504_v30 = vpop.f32.mrf.mxu1 }
 0x377   :  { %v1395_v31 = vpack.c.bf16 %v1378_v27, %v1377_v40  ;;  %v1505_v33 = vadd.f32 %v3900_v3, %v1504_v30 }
 0x379   :  { %1543 = vmatmul.bf16.gmra.mxu1 %v1395_v31  ;;  %v1566_v37 = vmax.f32 %v1505_v33, 0.0 }
 0x37a   :  { %v1344_v61 = vpop.f32.mrf.mxu0 }
 0x37b   :  { %v1345_v38 = vadd.f32 %v3863_v8, %v1344_v61 }
 0x37d   :  { %v1379_v44 = vmax.f32 %v1345_v38, 0.0 }
 0x37e   :  { %v1506_v9 = vpop.f32.mrf.mxu1 }
 0x37f   :  { %v1507_v36 = vadd.f32 %v3900_v3, %v1506_v9 }
 0x381   :  { %v1567_v41 = vmax.f32 %v1507_v36, 0.0  ;;  %v3163_v36 = vld [vmem:[#allocation17 + $0x10] sm:$0xff] }
 0x382   :  { %v1346_v43 = vpop.f32.mrf.mxu0  ;;  %2085 = vmatpush.bf16.msra.mxu0 %v3163_v36 }
 0x383   :  { %v1347_v59 = vadd.f32 %v3863_v8, %v1346_v43  ;;  %v1592_v16 = vpack.c.bf16 %v1567_v41, %v1566_v37 }
 0x385   :  { %v1380_v46 = vmax.f32 %v1347_v59, 0.0  ;;  %1708 = vmatmul.bf16.gmra.mxu2 %v1592_v16 }
 0x386   :  { %v1509_v47 = vpop.f32.mrf.mxu1 }
 0x387   :  { %v1396_v48 = vpack.c.bf16 %v1380_v46, %v1379_v44  ;;  %v1510_v51 = vadd.f32 %v3900_v3, %v1509_v47 }
 0x389   :  { %1548 = vmatmul.bf16.gmra.mxu1 %v1396_v48  ;;  %v1568_v55 = vmax.f32 %v1510_v51, 0.0 }
 0x38e   :  { %v1511_v52 = vpop.f32.mrf.mxu1 }
 0x38f   :  { %v1512_v53 = vadd.f32 %v3900_v3, %v1511_v52  ;;  %v3181_v52 = vld [vmem:[#allocation19 + $0x64] sm:$0xf] }
 0x391   :  { %v1569_v56 = vmax.f32 %v1512_v53, 0.0  ;;  %v3053_v53 = vld [vmem:[#allocation19 + $0x68] sm:$0xf0] }
 0x393   :  { %v1593_v57 = vpack.c.bf16 %v1569_v56, %v1568_v55  ;;  %v3056_v56 = vor.u32 %v3181_v52, %v3053_v53 }
 0x395   :  { %1713 = vmatmul.bf16.gmra.mxu2 %v1593_v57 }
 0x396   :  { %v1514_v42 = vpop.f32.mrf.mxu1  ;;  %2409 = vmatpush.bf16.msra.mxu2 %v3056_v56 }
 0x397   :  { %v1515_v8 = vadd.f32 %v3900_v3, %v1514_v42  ;;  %v3051_v42 = vld [vmem:[#allocation19 + $0x60] sm:$0xf] }
 0x399   :  { %v1570_v4 = vmax.f32 %v1515_v8, 0.0  ;;  %v3182_v8 = vld [vmem:[#allocation19 + $0x64] sm:$0xf0] }
 0x39e   :  { %v1516_v58 = vpop.f32.mrf.mxu1 }
 0x39f   :  { %v1517_v29 = vadd.f32 %v3900_v3, %v1516_v58  ;;  %v3052_v58 = vor.u32 %v3182_v8, %v3051_v42 }
 0x3a1   :  { %v1571_v28 = vmax.f32 %v1517_v29, 0.0  ;;  %2320 = vmatpush.bf16.msra.mxu1 %v3052_v58  ;;  %v3177_v58 = vld [vmem:[#allocation19 + $0x44] sm:$0xf] }
 0x3a3   :  { %v1594_v14 = vpack.c.bf16 %v1571_v28, %v1570_v4 }
 0x3a5   :  { %1718 = vmatmul.bf16.gmra.mxu2 %v1594_v14 }
 0x3a6   :  { %v1519_v60 = vpop.f32.mrf.mxu1 }
 0x3a7   :  { %v1520_v1 = vadd.f32 %v3900_v3, %v1519_v60 }
 0x3a8   :  { %v1679_v62 = vpop.f32.mrf.mxu2 }
 0x3a9   :  { %v1680_v5 = vadd.f32 %v3937_v63, %v1679_v62  ;;  %v1572_v10 = vmax.f32 %v1520_v1, 0.0 }
 0x3ab   :  { %v1759_v12 = vmax.f32 %v1680_v5, 0.0 }
 0x3ae   :  { %v1521_v2 = vpop.f32.mrf.mxu1 }
 0x3af   :  { %v1522_v6 = vadd.f32 %v3900_v3, %v1521_v2 }
 0x3b0   :  { %v1681_v7 = vpop.f32.mrf.mxu2 }
 0x3b1   :  { %v1573_v11 = vmax.f32 %v1522_v6, 0.0  ;;  %v1682_v54 = vadd.f32 %v3937_v63, %v1681_v7 }
 0x3b3   :  { %v1760_v13 = vmax.f32 %v1682_v54, 0.0  ;;  %v1595_v35 = vpack.c.bf16 %v1573_v11, %v1572_v10  ;;  %v3162_v54 = vld [vmem:[#allocation17 + $0x8] sm:$0xff] }
 0x3b4   :  { %2086 = vmatpush.bf16.msra.mxu0 %v3162_v54 }
 0x3b5   :  { %v1791_v15 = vpack.c.bf16 %v1760_v13, %v1759_v12  ;;  %1723 = vmatmul.bf16.gmra.mxu2 %v1595_v35 }
 0x3b6   :  { %v1524_v26 = vpop.f32.mrf.mxu1 }
 0x3b7   :  { %1883 = vmatmul.bf16.vlgmr.msra.gmra.mxu3 %v1791_v15  ;;  %v1525_v21 = vadd.f32 %v3900_v3, %v1524_v26 }
 0x3b8   :  { %v1684_v18 = vpop.f32.mrf.mxu2 }
 0x3b9   :  { %v1685_v23 = vadd.f32 %v3937_v63, %v1684_v18  ;;  %v1574_v49 = vmax.f32 %v1525_v21, 0.0  ;;  %v3179_v21 = vld [vmem:[#allocation19 + $0x54] sm:$0xf] }
 0x3bb   :  { %v1761_v30 = vmax.f32 %v1685_v23, 0.0 }
 0x3be   :  { %v1526_v22 = vpop.f32.mrf.mxu1 }
 0x3bf   :  { %v1527_v24 = vadd.f32 %v3900_v3, %v1526_v22  ;;  %v3045_v22 = vld [vmem:[#allocation19 + $0x58] sm:$0xf0] }
 0x3c0   :  { %v1686_v25 = vpop.f32.mrf.mxu2 }
 0x3c1   :  { %v1575_v40 = vmax.f32 %v1527_v24, 0.0  ;;  %v1687_v27 = vadd.f32 %v3937_v63, %v1686_v25  ;;  %v3048_v24 = vor.u32 %v3179_v21, %v3045_v22 }
 0x3c3   :  { %v1762_v31 = vmax.f32 %v1687_v27, 0.0  ;;  %v1596_v32 = vpack.c.bf16 %v1575_v40, %v1574_v49  ;;  %2410 = vmatpush.bf16.msra.mxu2 %v3048_v24  ;;  %v3043_v49 = vld [vmem:[#allocation19 + $0x50] sm:$0xf]  ;;  %v3180_v40 = vld [vmem:[#allocation19 + $0x54] sm:$0xf0] }
 0x3c4   :  { %v3044_v27 = vor.u32 %v3180_v40, %v3043_v49 }
 0x3c5   :  { %1728 = vmatmul.bf16.gmra.mxu2 %v1596_v32  ;;  %v1792_v61 = vpack.c.bf16 %v1762_v31, %v1761_v30 }
 0x3c6   :  { %v1529_v33 = vpop.f32.mrf.mxu1  ;;  %2321 = vmatpush.bf16.msra.mxu1 %v3044_v27 }
 0x3c7   :  { %1888 = vmatmul.bf16.gmra.mxu3 %v1792_v61  ;;  %v1530_v37 = vadd.f32 %v3900_v3, %v1529_v33 }
 0x3c8   :  { %v1689_v9 = vpop.f32.mrf.mxu2 }
 0x3c9   :  { %v1690_v41 = vadd.f32 %v3937_v63, %v1689_v9  ;;  %v1576_v16 = vmax.f32 %v1530_v37, 0.0 }
 0x3cb   :  { %v1763_v47 = vmax.f32 %v1690_v41, 0.0 }
 0x3ce   :  { %v1531_v38 = vpop.f32.mrf.mxu1 }
 0x3cf   :  { %v1532_v43 = vadd.f32 %v3900_v3, %v1531_v38 }
 0x3d0   :  { %v1691_v59 = vpop.f32.mrf.mxu2 }
 0x3d1   :  { %v1577_v44 = vmax.f32 %v1532_v43, 0.0  ;;  %v1692_v46 = vadd.f32 %v3937_v63, %v1691_v59 }
 0x3d3   :  { %v1764_v48 = vmax.f32 %v1692_v46, 0.0  ;;  %v1597_v50 = vpack.c.bf16 %v1577_v44, %v1576_v16  ;;  %v3161_v46 = vld [vmem:[#allocation17] sm:$0xff] }
 0x3d4   :  { %2087 = vmatpush.bf16.msra.mxu0 %v3161_v46 }
 0x3d5   :  { %1733 = vmatmul.bf16.gmra.mxu2 %v1597_v50  ;;  %v1793_v51 = vpack.c.bf16 %v1764_v48, %v1763_v47 }
 0x3d6   :  { %v1534_v55 = vpop.f32.mrf.mxu1 }
 0x3d7   :  { %1893 = vmatmul.bf16.gmra.mxu3 %v1793_v51  ;;  %v1535_v29 = vadd.f32 %v3900_v3, %v1534_v55 }
 0x3d8   :  { %v1694_v57 = vpop.f32.mrf.mxu2 }
 0x3d9   :  { %v1695_v28 = vadd.f32 %v3937_v63, %v1694_v57  ;;  %v1578_v62 = vmax.f32 %v1535_v29, 0.0  ;;  %v3037_v29 = vld [vmem:[#allocation19 + $0x48] sm:$0xf0] }
 0x3db   :  { %v1765_v2 = vmax.f32 %v1695_v28, 0.0 }
 0x3de   :  { %v1536_v4 = vpop.f32.mrf.mxu1 }
 0x3df   :  { %v1537_v14 = vadd.f32 %v3900_v3, %v1536_v4  ;;  %v3040_v4 = vor.u32 %v3177_v58, %v3037_v29 }
 0x3e0   :  { %v1696_v60 = vpop.f32.mrf.mxu2 }
 0x3e1   :  { %v1579_v0 = vmax.f32 %v1537_v14, 0.0  ;;  %v1697_v1 = vadd.f32 %v3937_v63, %v1696_v60  ;;  %2411 = vmatpush.bf16.msra.mxu2 %v3040_v4  ;;  %v3035_v60 = vld [vmem:[#allocation19 + $0x40] sm:$0xf] }
 0x3e3   :  { %v1766_v5 = vmax.f32 %v1697_v1, 0.0  ;;  %v1598_v6 = vpack.c.bf16 %v1579_v0, %v1578_v62  ;;  %v3178_v62 = vld [vmem:[#allocation19 + $0x44] sm:$0xf0] }
 0x3e4   :  { %v3036_v0 = vor.u32 %v3178_v62, %v3035_v60 }
 0x3e5   :  { %1738 = vmatmul.bf16.gmra.mxu2 %v1598_v6  ;;  %v1794_v7 = vpack.c.bf16 %v1766_v5, %v1765_v2 }
 0x3e6   :  { %v1539_v10 = vpop.f32.mrf.mxu1  ;;  %2322 = vmatpush.bf16.msra.mxu1 %v3036_v0 }
 0x3e7   :  { %1898 = vmatmul.bf16.gmra.mxu3 %v1794_v7  ;;  %v1540_v12 = vadd.f32 %v3900_v3, %v1539_v10 }
 0x3e8   :  { %v1699_v11 = vpop.f32.mrf.mxu2 }
 0x3e9   :  { %v1700_v35 = vadd.f32 %v3937_v63, %v1699_v11  ;;  %v1580_v17 = vmax.f32 %v1540_v12, 0.0 }
 0x3eb   :  { %v1767_v18 = vmax.f32 %v1700_v35, 0.0 }
 0x3ee   :  { %v1541_v13 = vpop.f32.mrf.mxu1 }
 0x3ef   :  { %v1542_v15 = vadd.f32 %v3900_v3, %v1541_v13 }
 0x3f0   :  { %v1701_v34 = vpop.f32.mrf.mxu2 }
 0x3f1   :  { %v1581_v26 = vmax.f32 %v1542_v15, 0.0  ;;  %v1702_v45 = vadd.f32 %v3937_v63, %v1701_v34  ;;  %v3175_v34 = vld [vmem:[#allocation19 + $0x34] sm:$0xf] }
 0x3f3   :  { %v1768_v19 = vmax.f32 %v1702_v45, 0.0  ;;  %v1599_v39 = vpack.c.bf16 %v1581_v26, %v1580_v17  ;;  %v3029_v17 = vld [vmem:[#allocation19 + $0x38] sm:$0xf0] }
 0x3f4   :  { %v3032_v26 = vor.u32 %v3175_v34, %v3029_v17 }
 0x3f5   :  { %1743 = vmatmul.bf16.gmra.mxu2 %v1599_v39  ;;  %v1795_v20 = vpack.c.bf16 %v1768_v19, %v1767_v18  ;;  %v3974_v19 = vld [vmem:[%s4147_s14] ss:$0 sm:$0xff]  ;;  %v3027_v39 = vld [vmem:[#allocation19 + $0x30] sm:$0xf] }
 0x3f6   :  { %v1544_v23 = vpop.f32.mrf.mxu1  ;;  %2412 = vmatpush.bf16.msra.mxu2 %v3032_v26 }
 0x3f7   :  { %1903 = vmatmul.bf16.gmra.mxu3 %v1795_v20  ;;  %v1545_v30 = vadd.f32 %v3900_v3, %v1544_v23  ;;  %v3176_v20 = vld [vmem:[#allocation19 + $0x34] sm:$0xf0] }
 0x3f8   :  { %v1704_v25 = vpop.f32.mrf.mxu2  ;;  %v3028_v21 = vor.u32 %v3176_v20, %v3027_v39  ;;  %v3171_v20 = vld [vmem:[#allocation19 + $0x14] sm:$0xf] }
 0x3f9   :  { %v1705_v32 = vadd.f32 %v3937_v63, %v1704_v25  ;;  %v1582_v9 = vmax.f32 %v1545_v30, 0.0 }
 0x3fa   :  { %2323 = vmatpush.bf16.msra.mxu1 %v3028_v21  ;;  %v3013_v21 = vld [vmem:[#allocation19 + $0x18] sm:$0xf0] }
 0x3fb   :  { %v1769_v38 = vmax.f32 %v1705_v32, 0.0 }
 0x3fe   :  { %v1546_v31 = vpop.f32.mrf.mxu1 }
 0x3ff   :  { %v1547_v61 = vadd.f32 %v3900_v3, %v1546_v31 }
 0x400   :  { %v1706_v33 = vpop.f32.mrf.mxu2 }
 0x401   :  { %v1583_v36 = vmax.f32 %v1547_v61, 0.0  ;;  %v1707_v37 = vadd.f32 %v3937_v63, %v1706_v33 }
 0x403   :  { %v1770_v41 = vmax.f32 %v1707_v37, 0.0  ;;  %v1600_v43 = vpack.c.bf16 %v1583_v36, %v1582_v9 }
 0x405   :  { %1748 = vmatmul.bf16.gmra.mxu2 %v1600_v43  ;;  %v1796_v59 = vpack.c.bf16 %v1770_v41, %v1769_v38 }
 0x406   :  { %v1549_v16 = vpop.f32.mrf.mxu1 }
 0x407   :  { %1908 = vmatmul.bf16.gmra.mxu3 %v1796_v59  ;;  %v1550_v47 = vadd.f32 %v3900_v3, %v1549_v16 }
 0x408   :  { %v1709_v44 = vpop.f32.mrf.mxu2 }
 0x409   :  { %v1710_v50 = vadd.f32 %v3937_v63, %v1709_v44  ;;  %v1584_v53 = vmax.f32 %v1550_v47, 0.0 }
 0x40b   :  { %v1771_v57 = vmax.f32 %v1710_v50, 0.0 }
 0x40e   :  { %v1551_v48 = vpop.f32.mrf.mxu1 }
 0x40f   :  { %v1552_v51 = vadd.f32 %v3900_v3, %v1551_v48 }
 0x410   :  { %v1711_v52 = vpop.f32.mrf.mxu2 }
 0x411   :  { %v1585_v55 = vmax.f32 %v1552_v51, 0.0  ;;  %v1712_v56 = vadd.f32 %v3937_v63, %v1711_v52  ;;  %v3173_v51 = vld [vmem:[#allocation19 + $0x24] sm:$0xf]  ;;  %v3021_v52 = vld [vmem:[#allocation19 + $0x28] sm:$0xf0] }
 0x413   :  { %v1772_v42 = vmax.f32 %v1712_v56, 0.0  ;;  %v1601_v8 = vpack.c.bf16 %v1585_v55, %v1584_v53  ;;  %v3024_v53 = vor.u32 %v3173_v51, %v3021_v52 }
 0x415   :  { %1753 = vmatmul.bf16.gmra.mxu2 %v1601_v8  ;;  %v1797_v28 = vpack.c.bf16 %v1772_v42, %v1771_v57  ;;  %v3019_v42 = vld [vmem:[#allocation19 + $0x20] sm:$0xf]  ;;  %v3174_v8 = vld [vmem:[#allocation19 + $0x24] sm:$0xf0] }
 0x416   :  { %2413 = vmatpush.bf16.msra.mxu2 %v3024_v53  ;;  %v3020_v58 = vor.u32 %v3174_v8, %v3019_v42  ;;  %v3169_v8 = vld [vmem:[#allocation19 + $0x4] sm:$0xf] }
 0x417   :  { %1913 = vmatmul.bf16.gmra.mxu3 %v1797_v28 }
 0x418   :  { %v1714_v14 = vpop.f32.mrf.mxu2  ;;  %2324 = vmatpush.bf16.msra.mxu1 %v3020_v58  ;;  %v3005_v58 = vld [vmem:[#allocation19 + $0x8] sm:$0xf0] }
 0x419   :  { %v1715_v3 = vadd.f32 %v3937_v63, %v1714_v14 }
 0x41b   :  { %v1773_v5 = vmax.f32 %v1715_v3, 0.0 }
 0x420   :  { %v1716_v1 = vpop.f32.mrf.mxu2 }
 0x421   :  { %v1717_v2 = vadd.f32 %v3937_v63, %v1716_v1 }
 0x423   :  { %v1774_v6 = vmax.f32 %v1717_v2, 0.0 }
 0x425   :  { %v1798_v7 = vpack.c.bf16 %v1774_v6, %v1773_v5 }
 0x427   :  { %1918 = vmatmul.bf16.gmra.mxu3 %v1798_v7 }
 0x428   :  { %v1719_v10 = vpop.f32.mrf.mxu2 }
 0x429   :  { %v1720_v11 = vadd.f32 %v3937_v63, %v1719_v10 }
 0x42b   :  { %v1775_v13 = vmax.f32 %v1720_v11, 0.0 }
 0x430   :  { %v1721_v54 = vpop.f32.mrf.mxu2 }
 0x431   :  { %v1722_v12 = vadd.f32 %v3937_v63, %v1721_v54 }
 0x433   :  { %v1776_v35 = vmax.f32 %v1722_v12, 0.0 }
 0x435   :  { %v1799_v15 = vpack.c.bf16 %v1776_v35, %v1775_v13 }
 0x437   :  { %1923 = vmatmul.bf16.gmra.mxu3 %v1799_v15 }
 0x438   :  { %v1724_v45 = vpop.f32.mrf.mxu2 }
 0x439   :  { %v1725_v22 = vadd.f32 %v3937_v63, %v1724_v45 }
 0x43a   :  { %v1884_v18 = vpop.f32.mrf.mxu3 }
 0x43b   :  { %v1885_v24 = vadd.f32 %v3974_v19, %v1884_v18  ;;  %v1777_v40 = vmax.f32 %v1725_v22, 0.0 }
 0x43d   :  { %v1964_v31 = vmax.f32 %v1885_v24, 0.0 }
 0x440   :  { %v1726_v23 = vpop.f32.mrf.mxu2 }
 0x441   :  { %v1727_v25 = vadd.f32 %v3937_v63, %v1726_v23  ;;  %v3016_v23 = vor.u32 %v3171_v20, %v3013_v21 }
 0x442   :  { %v1886_v49 = vpop.f32.mrf.mxu3 }
 0x443   :  { %v1778_v27 = vmax.f32 %v1727_v25, 0.0  ;;  %v1887_v30 = vadd.f32 %v3974_v19, %v1886_v49  ;;  %2414 = vmatpush.bf16.msra.mxu2 %v3016_v23  ;;  %v3011_v25 = vld [vmem:[#allocation19 + $0x10] sm:$0xf]  ;;  %v3172_v49 = vld [vmem:[#allocation19 + $0x14] sm:$0xf0] }
 0x445   :  { %v1965_v32 = vmax.f32 %v1887_v30, 0.0  ;;  %v1800_v61 = vpack.c.bf16 %v1778_v27, %v1777_v40  ;;  %v3012_v40 = vor.u32 %v3172_v49, %v3011_v25  ;;  %v4011_v49 = vld [vmem:[%s4149_s16] ss:$0 sm:$0xff] }
 0x447   :  { %v1996_v33 = vpack.c.bf16 %v1965_v32, %v1964_v31  ;;  %1928 = vmatmul.bf16.gmra.mxu3 %v1800_v61  ;;  %2325 = vmatpush.bf16.msra.mxu1 %v3012_v40 }
 0x448   :  { %v1729_v9 = vpop.f32.mrf.mxu2 }
 0x449   :  { %2088 = vmatmul.bf16.vlgmr.msra.gmra.mxu0 %v1996_v33  ;;  %v1730_v37 = vadd.f32 %v3937_v63, %v1729_v9 }
 0x44a   :  { %v1889_v36 = vpop.f32.mrf.mxu3 }
 0x44b   :  { %v1890_v41 = vadd.f32 %v3974_v19, %v1889_v36  ;;  %v1779_v16 = vmax.f32 %v1730_v37, 0.0 }
 0x44d   :  { %v1966_v47 = vmax.f32 %v1890_v41, 0.0 }
 0x450   :  { %v1731_v38 = vpop.f32.mrf.mxu2 }
 0x451   :  { %v1732_v43 = vadd.f32 %v3937_v63, %v1731_v38 }
 0x452   :  { %v1891_v59 = vpop.f32.mrf.mxu3 }
 0x453   :  { %v1780_v44 = vmax.f32 %v1732_v43, 0.0  ;;  %v1892_v46 = vadd.f32 %v3974_v19, %v1891_v59 }
 0x455   :  { %v1967_v48 = vmax.f32 %v1892_v46, 0.0  ;;  %v1801_v50 = vpack.c.bf16 %v1780_v44, %v1779_v16 }
 0x457   :  { %1933 = vmatmul.bf16.gmra.mxu3 %v1801_v50  ;;  %v1997_v55 = vpack.c.bf16 %v1967_v48, %v1966_v47 }
 0x458   :  { %v1734_v56 = vpop.f32.mrf.mxu2 }
 0x459   :  { %2093 = vmatmul.bf16.gmra.mxu0 %v1997_v55  ;;  %v1735_v29 = vadd.f32 %v3937_v63, %v1734_v56 }
 0x45a   :  { %v1894_v57 = vpop.f32.mrf.mxu3 }
 0x45b   :  { %v1895_v28 = vadd.f32 %v3974_v19, %v1894_v57  ;;  %v1781_v62 = vmax.f32 %v1735_v29, 0.0 }
 0x45d   :  { %v1968_v1 = vmax.f32 %v1895_v28, 0.0 }
 0x460   :  { %v1736_v4 = vpop.f32.mrf.mxu2 }
 0x461   :  { %v1737_v14 = vadd.f32 %v3937_v63, %v1736_v4  ;;  %v3008_v4 = vor.u32 %v3169_v8, %v3005_v58 }
 0x462   :  { %v1896_v60 = vpop.f32.mrf.mxu3 }
 0x463   :  { %v1782_v0 = vmax.f32 %v1737_v14, 0.0  ;;  %v1897_v3 = vadd.f32 %v3974_v19, %v1896_v60  ;;  %2415 = vmatpush.bf16.msra.mxu2 %v3008_v4  ;;  %v3003_v14 = vld [vmem:[#allocation19] sm:$0xf]  ;;  %v3170_v60 = vld [vmem:[#allocation19 + $0x4] sm:$0xf0] }
 0x465   :  { %v1969_v2 = vmax.f32 %v1897_v3, 0.0  ;;  %v1802_v5 = vpack.c.bf16 %v1782_v0, %v1781_v62  ;;  %v3004_v62 = vor.u32 %v3170_v60, %v3003_v14 }
 0x467   :  { %1938 = vmatmul.bf16.gmra.mxu3 %v1802_v5  ;;  %v1998_v6 = vpack.c.bf16 %v1969_v2, %v1968_v1  ;;  %2326 = vmatpush.bf16.msra.mxu1 %v3004_v62 }
 0x468   :  { %v1739_v7 = vpop.f32.mrf.mxu2 }
 0x469   :  { %2098 = vmatmul.bf16.gmra.mxu0 %v1998_v6  ;;  %v1740_v11 = vadd.f32 %v3937_v63, %v1739_v7 }
 0x46a   :  { %v1899_v10 = vpop.f32.mrf.mxu3 }
 0x46b   :  { %v1900_v12 = vadd.f32 %v3974_v19, %v1899_v10  ;;  %v1783_v15 = vmax.f32 %v1740_v11, 0.0 }
 0x46d   :  { %v1970_v26 = vmax.f32 %v1900_v12, 0.0 }
 0x470   :  { %v1741_v54 = vpop.f32.mrf.mxu2 }
 0x471   :  { %v1742_v13 = vadd.f32 %v3937_v63, %v1741_v54 }
 0x472   :  { %v1901_v35 = vpop.f32.mrf.mxu3 }
 0x473   :  { %v1784_v34 = vmax.f32 %v1742_v13, 0.0  ;;  %v1902_v17 = vadd.f32 %v3974_v19, %v1901_v35 }
 0x475   :  { %v1971_v45 = vmax.f32 %v1902_v17, 0.0  ;;  %v1803_v18 = vpack.c.bf16 %v1784_v34, %v1783_v15 }
 0x477   :  { %1943 = vmatmul.bf16.gmra.mxu3 %v1803_v18  ;;  %v1999_v39 = vpack.c.bf16 %v1971_v45, %v1970_v26 }
 0x478   :  { %v1744_v22 = vpop.f32.mrf.mxu2 }
 0x479   :  { %2103 = vmatmul.bf16.gmra.mxu0 %v1999_v39  ;;  %v1745_v27 = vadd.f32 %v3937_v63, %v1744_v22 }
 0x47a   :  { %v1904_v24 = vpop.f32.mrf.mxu3 }
 0x47b   :  { %v1905_v31 = vadd.f32 %v3974_v19, %v1904_v24  ;;  %v1785_v33 = vmax.f32 %v1745_v27, 0.0 }
 0x47d   :  { %v1972_v37 = vmax.f32 %v1905_v31, 0.0 }
 0x480   :  { %v1746_v30 = vpop.f32.mrf.mxu2 }
 0x481   :  { %v1747_v32 = vadd.f32 %v3937_v63, %v1746_v30 }
 0x482   :  { %v1906_v61 = vpop.f32.mrf.mxu3 }
 0x483   :  { %v1786_v9 = vmax.f32 %v1747_v32, 0.0  ;;  %v1907_v36 = vadd.f32 %v3974_v19, %v1906_v61 }
 0x485   :  { %v1973_v38 = vmax.f32 %v1907_v36, 0.0  ;;  %v1804_v41 = vpack.c.bf16 %v1786_v9, %v1785_v33 }
 0x487   :  { %v2000_v43 = vpack.c.bf16 %v1973_v38, %v1972_v37  ;;  %1948 = vmatmul.bf16.gmra.mxu3 %v1804_v41 }
 0x488   :  { %v1749_v59 = vpop.f32.mrf.mxu2 }
 0x489   :  { %2108 = vmatmul.bf16.gmra.mxu0 %v2000_v43  ;;  %v1750_v44 = vadd.f32 %v3937_v63, %v1749_v59 }
 0x48a   :  { %v1909_v16 = vpop.f32.mrf.mxu3 }
 0x48b   :  { %v1910_v47 = vadd.f32 %v3974_v19, %v1909_v16  ;;  %v1787_v51 = vmax.f32 %v1750_v44, 0.0 }
 0x48d   :  { %v1974_v55 = vmax.f32 %v1910_v47, 0.0 }
 0x490   :  { %v1751_v46 = vpop.f32.mrf.mxu2 }
 0x491   :  { %v1752_v48 = vadd.f32 %v3937_v63, %v1751_v46 }
 0x492   :  { %v1911_v50 = vpop.f32.mrf.mxu3 }
 0x493   :  { %v1788_v52 = vmax.f32 %v1752_v48, 0.0  ;;  %v1912_v53 = vadd.f32 %v3974_v19, %v1911_v50 }
 0x495   :  { %v1975_v56 = vmax.f32 %v1912_v53, 0.0  ;;  %v1805_v57 = vpack.c.bf16 %v1788_v52, %v1787_v51 }
 0x497   :  { %v2001_v42 = vpack.c.bf16 %v1975_v56, %v1974_v55  ;;  %1953 = vmatmul.bf16.gmra.mxu3 %v1805_v57 }
 0x498   :  { %v1754_v29 = vpop.f32.mrf.mxu2 }
 0x499   :  { %2113 = vmatmul.bf16.gmra.mxu0 %v2001_v42  ;;  %v1755_v0 = vadd.f32 %v3937_v63, %v1754_v29 }
 0x49a   :  { %v1914_v28 = vpop.f32.mrf.mxu3 }
 0x49b   :  { %v1915_v1 = vadd.f32 %v3974_v19, %v1914_v28  ;;  %v1789_v6 = vmax.f32 %v1755_v0, 0.0 }
 0x49d   :  { %v1976_v11 = vmax.f32 %v1915_v1, 0.0 }
 0x4a0   :  { %v1756_v3 = vpop.f32.mrf.mxu2 }
 0x4a1   :  { %v1757_v2 = vadd.f32 %v3937_v63, %v1756_v3 }
 0x4a2   :  { %v1916_v5 = vpop.f32.mrf.mxu3 }
 0x4a3   :  { %v1790_v7 = vmax.f32 %v1757_v2, 0.0  ;;  %v1917_v10 = vadd.f32 %v3974_v19, %v1916_v5 }
 0x4a5   :  { %v1977_v54 = vmax.f32 %v1917_v10, 0.0  ;;  %v1806_v12 = vpack.c.bf16 %v1790_v7, %v1789_v6 }
 0x4a7   :  { %v2002_v13 = vpack.c.bf16 %v1977_v54, %v1976_v11  ;;  %1958 = vmatmul.bf16.gmra.mxu3 %v1806_v12 }
 0x4a9   :  { %2118 = vmatmul.bf16.gmra.mxu0 %v2002_v13 }
 0x4aa   :  { %v1919_v35 = vpop.f32.mrf.mxu3 }
 0x4ab   :  { %v1920_v15 = vadd.f32 %v3974_v19, %v1919_v35 }
 0x4ad   :  { %v1978_v26 = vmax.f32 %v1920_v15, 0.0 }
 0x4b2   :  { %v1921_v34 = vpop.f32.mrf.mxu3 }
 0x4b3   :  { %v1922_v17 = vadd.f32 %v3974_v19, %v1921_v34 }
 0x4b5   :  { %v1979_v45 = vmax.f32 %v1922_v17, 0.0 }
 0x4b7   :  { %v2003_v63 = vpack.c.bf16 %v1979_v45, %v1978_v26 }
 0x4b9   :  { %2123 = vmatmul.bf16.gmra.mxu0 %v2003_v63 }
 0x4ba   :  { %v1924_v18 = vpop.f32.mrf.mxu3 }
 0x4bb   :  { %v1925_v39 = vadd.f32 %v3974_v19, %v1924_v18 }
 0x4bd   :  { %v1980_v22 = vmax.f32 %v1925_v39, 0.0 }
 0x4c2   :  { %v1926_v20 = vpop.f32.mrf.mxu3 }
 0x4c3   :  { %v1927_v21 = vadd.f32 %v3974_v19, %v1926_v20 }
 0x4c5   :  { %v1981_v23 = vmax.f32 %v1927_v21, 0.0 }
 0x4c6   :  { %v2089_v24 = vpop.f32.mrf.mxu0 }
 0x4c7   :  { %v2004_v25 = vpack.c.bf16 %v1981_v23, %v1980_v22  ;;  %v2090_v27 = vadd.f32 %v4011_v49, %v2089_v24 }
 0x4c9   :  { %2128 = vmatmul.bf16.gmra.mxu0 %v2004_v25  ;;  %v2169_v32 = vmax.f32 %v2090_v27, 0.0 }
 0x4ca   :  { %v1929_v40 = vpop.f32.mrf.mxu3 }
 0x4cb   :  { %v1930_v61 = vadd.f32 %v3974_v19, %v1929_v40 }
 0x4cd   :  { %v1982_v38 = vmax.f32 %v1930_v61, 0.0 }
 0x4ce   :  { %v2091_v30 = vpop.f32.mrf.mxu0 }
 0x4cf   :  { %v2092_v31 = vadd.f32 %v4011_v49, %v2091_v30 }
 0x4d1   :  { %v2170_v33 = vmax.f32 %v2092_v31, 0.0 }
 0x4d2   :  { %v1931_v9 = vpop.f32.mrf.mxu3 }
 0x4d3   :  { %v2201_v36 = vpack.c.bf16 %v2170_v33, %v2169_v32  ;;  %v1932_v37 = vadd.f32 %v3974_v19, %v1931_v9 }
 0x4d5   :  { %v1983_v41 = vmax.f32 %v1932_v37, 0.0  ;;  %2327 = vmatmul.bf16.vlgmr.msra.gmra.mxu1 %v2201_v36  ;;  %2416 = vmatmul.bf16.vlgmr.msra.gmra.mxu2 %v2201_v36 }
 0x4d6   :  { %v2094_v43 = vpop.f32.mrf.mxu0 }
 0x4d7   :  { %v2005_v59 = vpack.c.bf16 %v1983_v41, %v1982_v38  ;;  %v2095_v44 = vadd.f32 %v4011_v49, %v2094_v43 }
 0x4d9   :  { %2133 = vmatmul.bf16.gmra.mxu0 %v2005_v59  ;;  %v2171_v48 = vmax.f32 %v2095_v44, 0.0 }
 0x4da   :  { %v1934_v16 = vpop.f32.mrf.mxu3 }
 0x4db   :  { %v1935_v50 = vadd.f32 %v3974_v19, %v1934_v16 }
 0x4dd   :  { %v1984_v56 = vmax.f32 %v1935_v50, 0.0 }
 0x4de   :  { %v2096_v46 = vpop.f32.mrf.mxu0 }
 0x4df   :  { %v2097_v47 = vadd.f32 %v4011_v49, %v2096_v46 }
 0x4e1   :  { %v2172_v51 = vmax.f32 %v2097_v47, 0.0 }
 0x4e2   :  { %v1936_v52 = vpop.f32.mrf.mxu3 }
 0x4e3   :  { %v1937_v53 = vadd.f32 %v3974_v19, %v1936_v52  ;;  %v2202_v55 = vpack.c.bf16 %v2172_v51, %v2171_v48 }
 0x4e5   :  { %v1985_v57 = vmax.f32 %v1937_v53, 0.0  ;;  %2332 = vmatmul.bf16.gmra.mxu1 %v2202_v55  ;;  %2421 = vmatmul.bf16.gmra.mxu2 %v2202_v55 }
 0x4e6   :  { %v2099_v42 = vpop.f32.mrf.mxu0 }
 0x4e7   :  { %v2006_v8 = vpack.c.bf16 %v1985_v57, %v1984_v56  ;;  %v2100_v29 = vadd.f32 %v4011_v49, %v2099_v42 }
 0x4e9   :  { %2138 = vmatmul.bf16.gmra.mxu0 %v2006_v8  ;;  %v2173_v14 = vmax.f32 %v2100_v29, 0.0 }
 0x4ea   :  { %v1939_v58 = vpop.f32.mrf.mxu3 }
 0x4eb   :  { %v1940_v60 = vadd.f32 %v3974_v19, %v1939_v58 }
 0x4ed   :  { %v1986_v2 = vmax.f32 %v1940_v60, 0.0 }
 0x4ee   :  { %v2101_v4 = vpop.f32.mrf.mxu0 }
 0x4ef   :  { %v2102_v28 = vadd.f32 %v4011_v49, %v2101_v4 }
 0x4f1   :  { %v2174_v62 = vmax.f32 %v2102_v28, 0.0 }
 0x4f2   :  { %v1941_v0 = vpop.f32.mrf.mxu3 }
 0x4f3   :  { %v1942_v3 = vadd.f32 %v3974_v19, %v1941_v0  ;;  %v2203_v1 = vpack.c.bf16 %v2174_v62, %v2173_v14 }
 0x4f5   :  { %v1987_v5 = vmax.f32 %v1942_v3, 0.0  ;;  %2337 = vmatmul.bf16.gmra.mxu1 %v2203_v1  ;;  %2426 = vmatmul.bf16.gmra.mxu2 %v2203_v1 }
 0x4f6   :  { %v2104_v6 = vpop.f32.mrf.mxu0 }
 0x4f7   :  { %v2007_v7 = vpack.c.bf16 %v1987_v5, %v1986_v2  ;;  %v2105_v11 = vadd.f32 %v4011_v49, %v2104_v6 }
 0x4f9   :  { %2143 = vmatmul.bf16.gmra.mxu0 %v2007_v7  ;;  %v2175_v13 = vmax.f32 %v2105_v11, 0.0 }
 0x4fa   :  { %v1944_v10 = vpop.f32.mrf.mxu3 }
 0x4fb   :  { %v1945_v35 = vadd.f32 %v3974_v19, %v1944_v10 }
 0x4fd   :  { %v1988_v45 = vmax.f32 %v1945_v35, 0.0 }
 0x4fe   :  { %v2106_v54 = vpop.f32.mrf.mxu0 }
 0x4ff   :  { %v2107_v12 = vadd.f32 %v4011_v49, %v2106_v54 }
 0x501   :  { %v2176_v15 = vmax.f32 %v2107_v12, 0.0 }
 0x502   :  { %v1946_v34 = vpop.f32.mrf.mxu3 }
 0x503   :  { %v1947_v17 = vadd.f32 %v3974_v19, %v1946_v34  ;;  %v2204_v26 = vpack.c.bf16 %v2176_v15, %v2175_v13 }
 0x505   :  { %v1989_v63 = vmax.f32 %v1947_v17, 0.0  ;;  %2342 = vmatmul.bf16.gmra.mxu1 %v2204_v26  ;;  %2431 = vmatmul.bf16.gmra.mxu2 %v2204_v26 }
 0x506   :  { %v2109_v18 = vpop.f32.mrf.mxu0 }
 0x507   :  { %v2008_v39 = vpack.c.bf16 %v1989_v63, %v1988_v45  ;;  %v2110_v21 = vadd.f32 %v4011_v49, %v2109_v18 }
 0x509   :  { %2148 = vmatmul.bf16.gmra.mxu0 %v2008_v39  ;;  %v2177_v24 = vmax.f32 %v2110_v21, 0.0 }
 0x50a   :  { %v1949_v20 = vpop.f32.mrf.mxu3 }
 0x50b   :  { %v1950_v25 = vadd.f32 %v3974_v19, %v1949_v20 }
 0x50d   :  { %v1990_v32 = vmax.f32 %v1950_v25, 0.0 }
 0x50e   :  { %v2111_v22 = vpop.f32.mrf.mxu0 }
 0x50f   :  { %v2112_v23 = vadd.f32 %v4011_v49, %v2111_v22 }
 0x511   :  { %v2178_v40 = vmax.f32 %v2112_v23, 0.0 }
 0x512   :  { %v1951_v27 = vpop.f32.mrf.mxu3 }
 0x513   :  { %v2205_v30 = vpack.c.bf16 %v2178_v40, %v2177_v24  ;;  %v1952_v31 = vadd.f32 %v3974_v19, %v1951_v27 }
 0x515   :  { %v1991_v61 = vmax.f32 %v1952_v31, 0.0  ;;  %2347 = vmatmul.bf16.gmra.mxu1 %v2205_v30  ;;  %2436 = vmatmul.bf16.gmra.mxu2 %v2205_v30 }
 0x516   :  { %v2114_v33 = vpop.f32.mrf.mxu0 }
 0x517   :  { %v2009_v9 = vpack.c.bf16 %v1991_v61, %v1990_v32  ;;  %v2115_v37 = vadd.f32 %v4011_v49, %v2114_v33 }
 0x519   :  { %2153 = vmatmul.bf16.gmra.mxu0 %v2009_v9  ;;  %v2179_v43 = vmax.f32 %v2115_v37, 0.0 }
 0x51a   :  { %v1954_v36 = vpop.f32.mrf.mxu3 }
 0x51b   :  { %v1955_v59 = vadd.f32 %v3974_v19, %v1954_v36 }
 0x51d   :  { %v1992_v48 = vmax.f32 %v1955_v59, 0.0 }
 0x51e   :  { %v2116_v38 = vpop.f32.mrf.mxu0 }
 0x51f   :  { %v2117_v41 = vadd.f32 %v4011_v49, %v2116_v38 }
 0x521   :  { %v2180_v16 = vmax.f32 %v2117_v41, 0.0 }
 0x522   :  { %v1956_v44 = vpop.f32.mrf.mxu3 }
 0x523   :  { %v2206_v46 = vpack.c.bf16 %v2180_v16, %v2179_v43  ;;  %v1957_v47 = vadd.f32 %v3974_v19, %v1956_v44 }
 0x525   :  { %v1993_v50 = vmax.f32 %v1957_v47, 0.0  ;;  %2352 = vmatmul.bf16.gmra.mxu1 %v2206_v46  ;;  %2441 = vmatmul.bf16.gmra.mxu2 %v2206_v46 }
 0x526   :  { %v2119_v51 = vpop.f32.mrf.mxu0 }
 0x527   :  { %v2010_v52 = vpack.c.bf16 %v1993_v50, %v1992_v48  ;;  %v2120_v55 = vadd.f32 %v4011_v49, %v2119_v51 }
 0x529   :  { %2158 = vmatmul.bf16.gmra.mxu0 %v2010_v52  ;;  %v2181_v42 = vmax.f32 %v2120_v55, 0.0 }
 0x52a   :  { %v1959_v53 = vpop.f32.mrf.mxu3 }
 0x52b   :  { %v1960_v8 = vadd.f32 %v3974_v19, %v1959_v53 }
 0x52d   :  { %v1994_v14 = vmax.f32 %v1960_v8, 0.0 }
 0x52e   :  { %v2121_v56 = vpop.f32.mrf.mxu0 }
 0x52f   :  { %v2122_v57 = vadd.f32 %v4011_v49, %v2121_v56 }
 0x531   :  { %v2182_v58 = vmax.f32 %v2122_v57, 0.0 }
 0x532   :  { %v1961_v29 = vpop.f32.mrf.mxu3 }
 0x533   :  { %v2207_v4 = vpack.c.bf16 %v2182_v58, %v2181_v42  ;;  %v1962_v28 = vadd.f32 %v3974_v19, %v1961_v29  ;;  %v2233_v19 = vld [vmem:[%s4151_s18] sm:$0x3]  ;;  %s3552_s18 = smov [#allocation20]  }
 0x534   :  { %v4048_v13 = vperm.slane %v2233_v19, 0  ;;  %v4051_v45 = vperm.slane %v2233_v19, 1  ;;  %s2565_s15 = sshll.u32 %s3552_s18, 4  ;;  %s2566_s15 = int_to_ptr.vmem [resolvable:$true] %s2565_s15 }
 0x535   :  { %v1995_v60 = vmax.f32 %v1962_v28, 0.0  ;;  %2357 = vmatmul.bf16.gmra.mxu1 %v2207_v4  ;;  %2446 = vmatmul.bf16.gmra.mxu2 %v2207_v4 }
 0x536   :  { %v2124_v62 = vpop.f32.mrf.mxu0 }
 0x537   :  { %v2011_v0 = vpack.c.bf16 %v1995_v60, %v1994_v14  ;;  %v2125_v3 = vadd.f32 %v4011_v49, %v2124_v62 }
 0x539   :  { %2163 = vmatmul.bf16.gmra.mxu0 %v2011_v0  ;;  %v2183_v5 = vmax.f32 %v2125_v3, 0.0 }
 0x53e   :  { %v2126_v1 = vpop.f32.mrf.mxu0 }
 0x53f   :  { %v2127_v2 = vadd.f32 %v4011_v49, %v2126_v1 }
 0x541   :  { %v2184_v6 = vmax.f32 %v2127_v2, 0.0 }
 0x543   :  { %v2208_v7 = vpack.c.bf16 %v2184_v6, %v2183_v5 }
 0x545   :  { %2362 = vmatmul.bf16.gmra.mxu1 %v2208_v7  ;;  %2451 = vmatmul.bf16.gmra.mxu2 %v2208_v7 }
 0x546   :  { %v2129_v10 = vpop.f32.mrf.mxu0 }
 0x547   :  { %v2130_v11 = vadd.f32 %v4011_v49, %v2129_v10 }
 0x549   :  { %v2185_v35 = vmax.f32 %v2130_v11, 0.0 }
 0x54e   :  { %v2131_v54 = vpop.f32.mrf.mxu0 }
 0x54f   :  { %v2132_v12 = vadd.f32 %v4011_v49, %v2131_v54 }
 0x551   :  { %v2186_v15 = vmax.f32 %v2132_v12, 0.0 }
 0x552   :  { %v2328_v34 = vpop.f32.mrf.mxu1 }
 0x553   :  { %v2209_v17 = vpack.c.bf16 %v2186_v15, %v2185_v35  ;;  %v2329_v26 = vadd.f32 %v2328_v34, %v4048_v13 }
 0x555   :  { %2497 = vst [vmem:[#allocation20] sm:$0xff] %v2329_v26  ;;  %2367 = vmatmul.bf16.gmra.mxu1 %v2209_v17  ;;  %2456 = vmatmul.bf16.gmra.mxu2 %v2209_v17 }
 0x556   :  { %v2134_v63 = vpop.f32.mrf.mxu0 }
 0x557   :  { %v2135_v22 = vadd.f32 %v4011_v49, %v2134_v63 }
 0x558   :  { %v2417_v18 = vpop.f32.mrf.mxu2 }
 0x559   :  { %v2418_v39 = vadd.f32 %v2417_v18, %v4051_v45  ;;  %v2187_v40 = vmax.f32 %v2135_v22, 0.0 }
 0x55a   :  { %v2330_v20 = vpop.f32.mrf.mxu1 }
 0x55b   :  { %2498 = vst [vmem:[#allocation20 + $0x8] sm:$0xff] %v2418_v39  ;;  %v2331_v21 = vadd.f32 %v2330_v20, %v4048_v13 }
 0x55d   :  { %2499 = vst [vmem:[#allocation20 + $0x10] sm:$0xff] %v2331_v21 }
 0x55e   :  { %v2136_v23 = vpop.f32.mrf.mxu0 }
 0x55f   :  { %v2137_v24 = vadd.f32 %v4011_v49, %v2136_v23 }
 0x560   :  { %v2419_v25 = vpop.f32.mrf.mxu2 }
 0x561   :  { %v2188_v27 = vmax.f32 %v2137_v24, 0.0  ;;  %v2420_v30 = vadd.f32 %v2419_v25, %v4051_v45 }
 0x562   :  { %v2333_v31 = vpop.f32.mrf.mxu1 }
 0x563   :  { %v2210_v32 = vpack.c.bf16 %v2188_v27, %v2187_v40  ;;  %2500 = vst [vmem:[#allocation20 + $0x18] sm:$0xff] %v2420_v30  ;;  %v2334_v61 = vadd.f32 %v2333_v31, %v4048_v13 }
 0x565   :  { %2501 = vst [vmem:[#allocation20 + $0x20] sm:$0xff] %v2334_v61  ;;  %2372 = vmatmul.bf16.gmra.mxu1 %v2210_v32  ;;  %2461 = vmatmul.bf16.gmra.mxu2 %v2210_v32 }
 0x566   :  { %v2139_v33 = vpop.f32.mrf.mxu0 }
 0x567   :  { %v2140_v41 = vadd.f32 %v4011_v49, %v2139_v33 }
 0x568   :  { %v2422_v9 = vpop.f32.mrf.mxu2 }
 0x569   :  { %v2423_v36 = vadd.f32 %v2422_v9, %v4051_v45  ;;  %v2189_v44 = vmax.f32 %v2140_v41, 0.0 }
 0x56a   :  { %v2335_v37 = vpop.f32.mrf.mxu1 }
 0x56b   :  { %2502 = vst [vmem:[#allocation20 + $0x28] sm:$0xff] %v2423_v36  ;;  %v2336_v38 = vadd.f32 %v2335_v37, %v4048_v13 }
 0x56d   :  { %2503 = vst [vmem:[#allocation20 + $0x30] sm:$0xff] %v2336_v38 }
 0x56e   :  { %v2141_v43 = vpop.f32.mrf.mxu0 }
 0x56f   :  { %v2142_v59 = vadd.f32 %v4011_v49, %v2141_v43 }
 0x570   :  { %v2424_v16 = vpop.f32.mrf.mxu2 }
 0x571   :  { %v2190_v46 = vmax.f32 %v2142_v59, 0.0  ;;  %v2425_v47 = vadd.f32 %v2424_v16, %v4051_v45 }
 0x572   :  { %v2338_v48 = vpop.f32.mrf.mxu1 }
 0x573   :  { %v2211_v50 = vpack.c.bf16 %v2190_v46, %v2189_v44  ;;  %2504 = vst [vmem:[#allocation20 + $0x38] sm:$0xff] %v2425_v47  ;;  %v2339_v51 = vadd.f32 %v2338_v48, %v4048_v13 }
 0x575   :  { %2505 = vst [vmem:[#allocation20 + $0x40] sm:$0xff] %v2339_v51  ;;  %2377 = vmatmul.bf16.gmra.mxu1 %v2211_v50  ;;  %2466 = vmatmul.bf16.gmra.mxu2 %v2211_v50 }
 0x576   :  { %v2144_v52 = vpop.f32.mrf.mxu0 }
 0x577   :  { %v2145_v42 = vadd.f32 %v4011_v49, %v2144_v52 }
 0x578   :  { %v2427_v53 = vpop.f32.mrf.mxu2 }
 0x579   :  { %v2428_v55 = vadd.f32 %v2427_v53, %v4051_v45  ;;  %v2191_v4 = vmax.f32 %v2145_v42, 0.0 }
 0x57a   :  { %v2340_v56 = vpop.f32.mrf.mxu1 }
 0x57b   :  { %2506 = vst [vmem:[#allocation20 + $0x48] sm:$0xff] %v2428_v55  ;;  %v2341_v57 = vadd.f32 %v2340_v56, %v4048_v13 }
 0x57d   :  { %2507 = vst [vmem:[#allocation20 + $0x50] sm:$0xff] %v2341_v57 }
 0x57e   :  { %v2146_v8 = vpop.f32.mrf.mxu0 }
 0x57f   :  { %v2147_v58 = vadd.f32 %v4011_v49, %v2146_v8 }
 0x580   :  { %v2429_v29 = vpop.f32.mrf.mxu2 }
 0x581   :  { %v2192_v28 = vmax.f32 %v2147_v58, 0.0  ;;  %v2430_v14 = vadd.f32 %v2429_v29, %v4051_v45 }
 0x582   :  { %v2343_v60 = vpop.f32.mrf.mxu1 }
 0x583   :  { %v2212_v62 = vpack.c.bf16 %v2192_v28, %v2191_v4  ;;  %2508 = vst [vmem:[#allocation20 + $0x58] sm:$0xff] %v2430_v14  ;;  %v2344_v0 = vadd.f32 %v2343_v60, %v4048_v13 }
 0x585   :  { %2509 = vst [vmem:[#allocation20 + $0x60] sm:$0xff] %v2344_v0  ;;  %2382 = vmatmul.bf16.gmra.mxu1 %v2212_v62  ;;  %2471 = vmatmul.bf16.gmra.mxu2 %v2212_v62 }
 0x586   :  { %v2149_v3 = vpop.f32.mrf.mxu0 }
 0x587   :  { %v2150_v7 = vadd.f32 %v4011_v49, %v2149_v3 }
 0x588   :  { %v2432_v1 = vpop.f32.mrf.mxu2 }
 0x589   :  { %v2433_v2 = vadd.f32 %v2432_v1, %v4051_v45  ;;  %v2193_v54 = vmax.f32 %v2150_v7, 0.0 }
 0x58a   :  { %v2345_v5 = vpop.f32.mrf.mxu1 }
 0x58b   :  { %2510 = vst [vmem:[#allocation20 + $0x68] sm:$0xff] %v2433_v2  ;;  %v2346_v6 = vadd.f32 %v2345_v5, %v4048_v13 }
 0x58d   :  { %2511 = vst [vmem:[#allocation20 + $0x70] sm:$0xff] %v2346_v6 }
 0x58e   :  { %v2151_v10 = vpop.f32.mrf.mxu0 }
 0x58f   :  { %v2152_v19 = vadd.f32 %v4011_v49, %v2151_v10 }
 0x590   :  { %v2434_v11 = vpop.f32.mrf.mxu2 }
 0x591   :  { %v2194_v12 = vmax.f32 %v2152_v19, 0.0  ;;  %v2435_v35 = vadd.f32 %v2434_v11, %v4051_v45 }
 0x592   :  { %v2348_v15 = vpop.f32.mrf.mxu1 }
 0x593   :  { %v2213_v34 = vpack.c.bf16 %v2194_v12, %v2193_v54  ;;  %2512 = vst [vmem:[#allocation20 + $0x78] sm:$0xff] %v2435_v35  ;;  %v2349_v17 = vadd.f32 %v2348_v15, %v4048_v13 }
 0x595   :  { %2513 = vst [vmem:[#allocation20 + $0x80] sm:$0xff] %v2349_v17  ;;  %2387 = vmatmul.bf16.gmra.mxu1 %v2213_v34  ;;  %2476 = vmatmul.bf16.gmra.mxu2 %v2213_v34 }
 0x596   :  { %v2154_v26 = vpop.f32.mrf.mxu0 }
 0x597   :  { %v2155_v21 = vadd.f32 %v4011_v49, %v2154_v26 }
 0x598   :  { %v2437_v63 = vpop.f32.mrf.mxu2 }
 0x599   :  { %v2438_v18 = vadd.f32 %v2437_v63, %v4051_v45  ;;  %v2195_v25 = vmax.f32 %v2155_v21, 0.0 }
 0x59a   :  { %v2350_v39 = vpop.f32.mrf.mxu1 }
 0x59b   :  { %2514 = vst [vmem:[#allocation20 + $0x88] sm:$0xff] %v2438_v18  ;;  %v2351_v20 = vadd.f32 %v2350_v39, %v4048_v13 }
 0x59d   :  { %2515 = vst [vmem:[#allocation20 + $0x90] sm:$0xff] %v2351_v20 }
 0x59e   :  { %v2156_v22 = vpop.f32.mrf.mxu0 }
 0x59f   :  { %v2157_v23 = vadd.f32 %v4011_v49, %v2156_v22 }
 0x5a0   :  { %v2439_v24 = vpop.f32.mrf.mxu2 }
 0x5a1   :  { %v2196_v40 = vmax.f32 %v2157_v23, 0.0  ;;  %v2440_v27 = vadd.f32 %v2439_v24, %v4051_v45 }
 0x5a2   :  { %v2353_v30 = vpop.f32.mrf.mxu1 }
 0x5a3   :  { %v2214_v31 = vpack.c.bf16 %v2196_v40, %v2195_v25  ;;  %2516 = vst [vmem:[#allocation20 + $0x98] sm:$0xff] %v2440_v27  ;;  %v2354_v32 = vadd.f32 %v2353_v30, %v4048_v13 }
 0x5a5   :  { %2517 = vst [vmem:[#allocation20 + $0xa0] sm:$0xff] %v2354_v32  ;;  %2392 = vmatmul.bf16.gmra.mxu1 %v2214_v31  ;;  %2481 = vmatmul.bf16.gmra.mxu2 %v2214_v31 }
 0x5a6   :  { %v2159_v61 = vpop.f32.mrf.mxu0 }
 0x5a7   :  { %v2160_v38 = vadd.f32 %v4011_v49, %v2159_v61 }
 0x5a8   :  { %v2442_v33 = vpop.f32.mrf.mxu2 }
 0x5a9   :  { %v2443_v9 = vadd.f32 %v2442_v33, %v4051_v45  ;;  %v2197_v16 = vmax.f32 %v2160_v38, 0.0 }
 0x5aa   :  { %v2355_v36 = vpop.f32.mrf.mxu1 }
 0x5ab   :  { %2518 = vst [vmem:[#allocation20 + $0xa8] sm:$0xff] %v2443_v9  ;;  %v2356_v37 = vadd.f32 %v2355_v36, %v4048_v13 }
 0x5ad   :  { %2519 = vst [vmem:[#allocation20 + $0xb0] sm:$0xff] %v2356_v37 }
 0x5ae   :  { %v2161_v41 = vpop.f32.mrf.mxu0 }
 0x5af   :  { %v2162_v43 = vadd.f32 %v4011_v49, %v2161_v41 }
 0x5b0   :  { %v2444_v59 = vpop.f32.mrf.mxu2 }
 0x5b1   :  { %v2198_v44 = vmax.f32 %v2162_v43, 0.0  ;;  %v2445_v46 = vadd.f32 %v2444_v59, %v4051_v45 }
 0x5b2   :  { %v2358_v47 = vpop.f32.mrf.mxu1 }
 0x5b3   :  { %v2215_v48 = vpack.c.bf16 %v2198_v44, %v2197_v16  ;;  %2520 = vst [vmem:[#allocation20 + $0xb8] sm:$0xff] %v2445_v46  ;;  %v2359_v50 = vadd.f32 %v2358_v47, %v4048_v13 }
 0x5b5   :  { %2521 = vst [vmem:[#allocation20 + $0xc0] sm:$0xff] %v2359_v50  ;;  %2397 = vmatmul.bf16.gmra.mxu1 %v2215_v48  ;;  %2486 = vmatmul.bf16.gmra.mxu2 %v2215_v48 }
 0x5b6   :  { %v2164_v51 = vpop.f32.mrf.mxu0 }
 0x5b7   :  { %v2165_v57 = vadd.f32 %v4011_v49, %v2164_v51 }
 0x5b8   :  { %v2447_v52 = vpop.f32.mrf.mxu2 }
 0x5b9   :  { %v2448_v53 = vadd.f32 %v2447_v52, %v4051_v45  ;;  %v2199_v29 = vmax.f32 %v2165_v57, 0.0 }
 0x5ba   :  { %v2360_v55 = vpop.f32.mrf.mxu1 }
 0x5bb   :  { %2522 = vst [vmem:[#allocation20 + $0xc8] sm:$0xff] %v2448_v53  ;;  %v2361_v56 = vadd.f32 %v2360_v55, %v4048_v13 }
 0x5bd   :  { %2523 = vst [vmem:[#allocation20 + $0xd0] sm:$0xff] %v2361_v56 }
 0x5be   :  { %v2166_v42 = vpop.f32.mrf.mxu0 }
 0x5bf   :  { %v2167_v8 = vadd.f32 %v4011_v49, %v2166_v42 }
 0x5c0   :  { %v2449_v58 = vpop.f32.mrf.mxu2 }
 0x5c1   :  { %v2200_v4 = vmax.f32 %v2167_v8, 0.0  ;;  %v2450_v28 = vadd.f32 %v2449_v58, %v4051_v45 }
 0x5c2   :  { %v2363_v14 = vpop.f32.mrf.mxu1 }
 0x5c3   :  { %v2216_v60 = vpack.c.bf16 %v2200_v4, %v2199_v29  ;;  %2524 = vst [vmem:[#allocation20 + $0xd8] sm:$0xff] %v2450_v28  ;;  %v2364_v62 = vadd.f32 %v2363_v14, %v4048_v13 }
 0x5c5   :  { %2525 = vst [vmem:[#allocation20 + $0xe0] sm:$0xff] %v2364_v62  ;;  %2402 = vmatmul.bf16.gmra.mxu1 %v2216_v60  ;;  %2491 = vmatmul.bf16.gmra.mxu2 %v2216_v60 }
 0x5c8   :  { %v2452_v0 = vpop.f32.mrf.mxu2 }
 0x5c9   :  { %v2453_v3 = vadd.f32 %v2452_v0, %v4051_v45 }
 0x5ca   :  { %v2365_v1 = vpop.f32.mrf.mxu1 }
 0x5cb   :  { %2526 = vst [vmem:[#allocation20 + $0xe8] sm:$0xff] %v2453_v3  ;;  %v2366_v49 = vadd.f32 %v2365_v1, %v4048_v13 }
 0x5cd   :  { %2527 = vst [vmem:[#allocation20 + $0xf0] sm:$0xff] %v2366_v49 }
 0x5d0   :  { %v2454_v2 = vpop.f32.mrf.mxu2 }
 0x5d1   :  { %v2455_v5 = vadd.f32 %v2454_v2, %v4051_v45 }
 0x5d2   :  { %v2368_v6 = vpop.f32.mrf.mxu1 }
 0x5d3   :  { %2528 = vst [vmem:[#allocation20 + $0xf8] sm:$0xff] %v2455_v5  ;;  %v2369_v7 = vadd.f32 %v2368_v6, %v4048_v13 }
 0x5d5   :  { %2529 = vst [vmem:[#allocation20 + $0x100] sm:$0xff] %v2369_v7 }
 0x5d8   :  { %v2457_v10 = vpop.f32.mrf.mxu2 }
 0x5d9   :  { %v2458_v19 = vadd.f32 %v2457_v10, %v4051_v45 }
 0x5da   :  { %v2370_v11 = vpop.f32.mrf.mxu1 }
 0x5db   :  { %2530 = vst [vmem:[#allocation20 + $0x108] sm:$0xff] %v2458_v19  ;;  %v2371_v54 = vadd.f32 %v2370_v11, %v4048_v13 }
 0x5dd   :  { %2531 = vst [vmem:[#allocation20 + $0x110] sm:$0xff] %v2371_v54 }
 0x5e0   :  { %v2459_v12 = vpop.f32.mrf.mxu2 }
 0x5e1   :  { %v2460_v35 = vadd.f32 %v2459_v12, %v4051_v45 }
 0x5e2   :  { %v2373_v15 = vpop.f32.mrf.mxu1 }
 0x5e3   :  { %2532 = vst [vmem:[#allocation20 + $0x118] sm:$0xff] %v2460_v35  ;;  %v2374_v34 = vadd.f32 %v2373_v15, %v4048_v13 }
 0x5e5   :  { %2533 = vst [vmem:[#allocation20 + $0x120] sm:$0xff] %v2374_v34 }
 0x5e8   :  { %v2462_v17 = vpop.f32.mrf.mxu2 }
 0x5e9   :  { %v2463_v26 = vadd.f32 %v2462_v17, %v4051_v45 }
 0x5ea   :  { %v2375_v63 = vpop.f32.mrf.mxu1 }
 0x5eb   :  { %2534 = vst [vmem:[#allocation20 + $0x128] sm:$0xff] %v2463_v26  ;;  %v2376_v18 = vadd.f32 %v2375_v63, %v4048_v13 }
 0x5ed   :  { %2535 = vst [vmem:[#allocation20 + $0x130] sm:$0xff] %v2376_v18 }
 0x5f0   :  { %v2464_v39 = vpop.f32.mrf.mxu2 }
 0x5f1   :  { %v2465_v20 = vadd.f32 %v2464_v39, %v4051_v45 }
 0x5f2   :  { %v2378_v21 = vpop.f32.mrf.mxu1 }
 0x5f3   :  { %2536 = vst [vmem:[#allocation20 + $0x138] sm:$0xff] %v2465_v20  ;;  %v2379_v22 = vadd.f32 %v2378_v21, %v4048_v13 }
 0x5f5   :  { %2537 = vst [vmem:[#allocation20 + $0x140] sm:$0xff] %v2379_v22 }
 0x5f8   :  { %v2467_v23 = vpop.f32.mrf.mxu2 }
 0x5f9   :  { %v2468_v24 = vadd.f32 %v2467_v23, %v4051_v45 }
 0x5fa   :  { %v2380_v25 = vpop.f32.mrf.mxu1 }
 0x5fb   :  { %2538 = vst [vmem:[#allocation20 + $0x148] sm:$0xff] %v2468_v24  ;;  %v2381_v40 = vadd.f32 %v2380_v25, %v4048_v13 }
 0x5fd   :  { %2539 = vst [vmem:[#allocation20 + $0x150] sm:$0xff] %v2381_v40 }
 0x600   :  { %v2469_v27 = vpop.f32.mrf.mxu2 }
 0x601   :  { %v2470_v30 = vadd.f32 %v2469_v27, %v4051_v45 }
 0x602   :  { %v2383_v31 = vpop.f32.mrf.mxu1 }
 0x603   :  { %2540 = vst [vmem:[#allocation20 + $0x158] sm:$0xff] %v2470_v30  ;;  %v2384_v32 = vadd.f32 %v2383_v31, %v4048_v13 }
 0x605   :  { %2541 = vst [vmem:[#allocation20 + $0x160] sm:$0xff] %v2384_v32 }
 0x608   :  { %v2472_v61 = vpop.f32.mrf.mxu2 }
 0x609   :  { %v2473_v33 = vadd.f32 %v2472_v61, %v4051_v45 }
 0x60a   :  { %v2385_v9 = vpop.f32.mrf.mxu1 }
 0x60b   :  { %2542 = vst [vmem:[#allocation20 + $0x168] sm:$0xff] %v2473_v33  ;;  %v2386_v36 = vadd.f32 %v2385_v9, %v4048_v13 }
 0x60d   :  { %2543 = vst [vmem:[#allocation20 + $0x170] sm:$0xff] %v2386_v36 }
 0x610   :  { %v2474_v37 = vpop.f32.mrf.mxu2 }
 0x611   :  { %v2475_v38 = vadd.f32 %v2474_v37, %v4051_v45 }
 0x612   :  { %v2388_v41 = vpop.f32.mrf.mxu1 }
 0x613   :  { %2544 = vst [vmem:[#allocation20 + $0x178] sm:$0xff] %v2475_v38  ;;  %v2389_v43 = vadd.f32 %v2388_v41, %v4048_v13 }
 0x615   :  { %2545 = vst [vmem:[#allocation20 + $0x180] sm:$0xff] %v2389_v43 }
 0x618   :  { %v2477_v59 = vpop.f32.mrf.mxu2 }
 0x619   :  { %v2478_v16 = vadd.f32 %v2477_v59, %v4051_v45 }
 0x61a   :  { %v2390_v44 = vpop.f32.mrf.mxu1 }
 0x61b   :  { %2546 = vst [vmem:[#allocation20 + $0x188] sm:$0xff] %v2478_v16  ;;  %v2391_v46 = vadd.f32 %v2390_v44, %v4048_v13 }
 0x61d   :  { %2547 = vst [vmem:[#allocation20 + $0x190] sm:$0xff] %v2391_v46 }
 0x620   :  { %v2479_v47 = vpop.f32.mrf.mxu2 }
 0x621   :  { %v2480_v48 = vadd.f32 %v2479_v47, %v4051_v45 }
 0x622   :  { %v2393_v50 = vpop.f32.mrf.mxu1 }
 0x623   :  { %2548 = vst [vmem:[#allocation20 + $0x198] sm:$0xff] %v2480_v48  ;;  %v2394_v51 = vadd.f32 %v2393_v50, %v4048_v13 }
 0x625   :  { %2549 = vst [vmem:[#allocation20 + $0x1a0] sm:$0xff] %v2394_v51 }
 0x628   :  { %v2482_v52 = vpop.f32.mrf.mxu2 }
 0x629   :  { %v2483_v53 = vadd.f32 %v2482_v52, %v4051_v45 }
 0x62a   :  { %v2395_v55 = vpop.f32.mrf.mxu1 }
 0x62b   :  { %2550 = vst [vmem:[#allocation20 + $0x1a8] sm:$0xff] %v2483_v53  ;;  %v2396_v56 = vadd.f32 %v2395_v55, %v4048_v13 }
 0x62d   :  { %2551 = vst [vmem:[#allocation20 + $0x1b0] sm:$0xff] %v2396_v56 }
 0x630   :  { %v2484_v57 = vpop.f32.mrf.mxu2 }
 0x631   :  { %v2485_v42 = vadd.f32 %v2484_v57, %v4051_v45 }
 0x632   :  { %v2398_v8 = vpop.f32.mrf.mxu1 }
 0x633   :  { %2552 = vst [vmem:[#allocation20 + $0x1b8] sm:$0xff] %v2485_v42  ;;  %v2399_v58 = vadd.f32 %v2398_v8, %v4048_v13 }
 0x635   :  { %2553 = vst [vmem:[#allocation20 + $0x1c0] sm:$0xff] %v2399_v58 }
 0x638   :  { %v2487_v29 = vpop.f32.mrf.mxu2 }
 0x639   :  { %v2488_v4 = vadd.f32 %v2487_v29, %v4051_v45 }
 0x63a   :  { %v2400_v28 = vpop.f32.mrf.mxu1 }
 0x63b   :  { %2554 = vst [vmem:[#allocation20 + $0x1c8] sm:$0xff] %v2488_v4  ;;  %v2401_v14 = vadd.f32 %v2400_v28, %v4048_v13 }
 0x63d   :  { %2555 = vst [vmem:[#allocation20 + $0x1d0] sm:$0xff] %v2401_v14 }
 0x640   :  { %v2489_v60 = vpop.f32.mrf.mxu2 }
 0x641   :  { %v2490_v62 = vadd.f32 %v2489_v60, %v4051_v45 }
 0x642   :  { %v2403_v0 = vpop.f32.mrf.mxu1 }
 0x643   :  { %2556 = vst [vmem:[#allocation20 + $0x1d8] sm:$0xff] %v2490_v62  ;;  %v2404_v3 = vadd.f32 %v2403_v0, %v4048_v13 }
 0x645   :  { %2557 = vst [vmem:[#allocation20 + $0x1e0] sm:$0xff] %v2404_v3 }
 0x648   :  { %v2492_v1 = vpop.f32.mrf.mxu2 }
 0x649   :  { %v2493_v49 = vadd.f32 %v2492_v1, %v4051_v45 }
 0x64a   :  { %v2405_v2 = vpop.f32.mrf.mxu1 }
 0x64b   :  { %2558 = vst [vmem:[#allocation20 + $0x1e8] sm:$0xff] %v2493_v49  ;;  %v2406_v5 = vadd.f32 %v2405_v2, %v4048_v13 }
 0x64d   :  { %2559 = vst [vmem:[#allocation20 + $0x1f0] sm:$0xff] %v2406_v5 }
 0x650   :  { %v2494_v6 = vpop.f32.mrf.mxu2 }
 0x651   :  { %v2495_v7 = vadd.f32 %v2494_v6, %v4051_v45 }
 0x653   :  { %2560 = vst [vmem:[#allocation20 + $0x1f8] sm:$0xff] %v2495_v7 }
 0x654   :  { %2573 = dma.vmem_to_hbm [thread:$0]  %s2566_s15, 8192, %s2568_s2, [#allocation4], %s3553_s21, %s3553_s21, %s3554_s22  }
 0x655   :  { %3535 = dma.done.wait [#allocation4], 8192  }
 0x656   :  { %3536 = vsyncadd [#allocation4], 4294959104 }
 0x657   :  { %2578 = vsyncpa [#allocation3], 1 }
 0x658   :  { %2579 = vsyncpa [#allocation6], 1 }
 0x659   :  { %2580 = vsyncpa [#allocation9], 1 }
 0x65a   :  { %2581 = vsyncpa [#allocation12], 1 }
 0x65b   :  { %2582 = vsyncpa [#allocation15], 1 }
 0x65c   :  { %2583 = vsyncpa [#allocation18], 1 }
 0x65d   :  { %2584 = vsyncpa [#allocation4], 1 }

</bundles_post_ra>
